<compile_context>
chip_gen: v5e
topology: v5e:2x2
jax: 0.10.0
libtpu: 0.0.40
codegen_flags: <defaults>
</compile_context>

<pallas_src>
import functools

import jax
import jax.numpy as jnp
import numpy as np
from jax.experimental import pallas as pl
from jax.experimental.pallas import tpu as pltpu


def _mixer_kernel(x_ref, wl_ref, bl_ref, wdw_ref, bg_ref, w1_ref, b1_ref,
                  o_ref, buf_ref, *, W):
    """MixerDecoder forward for a block of NB images.

    Layout: channels-first, spatial flattened onto the lane axis.
      x_ref   : (NB, C, P)   P = H*W (lane-dense)
      wl_ref  : (9, C, C)    3x3 conv weight (BN folded), bf16, [k=dy*3+dx, out, in]
      bl_ref  : (C, 1)       folded bias (f32)
      wdw_ref : (C, 49)      depthwise 7x7 weight (BN folded), f32, col k = dy*7+dx
      bg_ref  : (C, 1)       folded bias (f32)
      w1_ref  : (C, C)       1x1 conv weight (BN folded), bf16, (out, in)
      b1_ref  : (C, 1)       folded bias (f32)
      o_ref   : (NB, C, P)   output
      buf_ref : (C, L)       flat scratch: [3W+3 zero lead][image, P lanes][zero trail]
    """
    NB, C, P = x_ref.shape
    L = buf_ref.shape[1]
    LEAD = 3 * W + 3  # covers the 7x7 halo (3W+3); the 3x3 only needs W+1 of it.

    # Zero only the small halo; the center is fully overwritten per image.
    # (Not guarded by pl.when(pid==0): with a "parallel" batch axis each TensorCore
    #  owns a private scratch, so a pid==0-only init would be unsafe.)
    buf_ref[:, :LEAD] = jnp.zeros((C, LEAD), jnp.float32)
    buf_ref[:, LEAD + P:] = jnp.zeros((C, L - LEAD - P), jnp.float32)

    # Horizontal wrap masks: the scratch is only zero-padded vertically, so a
    # horizontal shift of +-d wraps across row boundaries and must be zeroed.
    col = jax.lax.broadcasted_iota(jnp.int32, (1, P), 1) % W  # w coordinate per lane
    mask_l = (col >= 1).astype(jnp.float32)                   # 3x3 shift dx-1 == -1
    mask_r = (col <= W - 2).astype(jnp.float32)               # 3x3 shift dx-1 == +1
    dw_masks = [jnp.logical_and(col + (dx - 3) >= 0,
                                col + (dx - 3) <= W - 1).astype(jnp.float32)
                for dx in range(7)]

    # ---- hoist ALL weights/biases out of the per-image loop (one load each) ----
    wl_taps = [wl_ref[k] for k in range(9)]        # 9 x (C, C) bf16
    bl = bl_ref[...].astype(jnp.float32)           # (C, 1)
    wdw = wdw_ref[...].astype(jnp.float32)         # (C, 49) - single register copy
    w_taps = [wdw[:, k:k + 1] for k in range(49)]  # 49 x (C, 1) register slices
    bg = bg_ref[...].astype(jnp.float32)
    w1 = w1_ref[...]                               # (C, C) bf16
    b1 = b1_ref[...].astype(jnp.float32)

    # Static (fully unrolled) loop over the NB images of this grid step.
    for b in range(NB):
        x2d = x_ref[b].astype(jnp.float32)            # (C, P)
        buf_ref[:, LEAD:LEAD + P] = x2d               # one contiguous copy

        # ---- LocalMixer: dense 3x3 conv (pad=1) + folded BN + ReLU ----
        # 9 accumulated MXU matmuls straight from halo-buffer slices (no im2col scratch).
        y1 = jnp.zeros((C, P), jnp.float32)
        for dy in range(3):
            for dx in range(3):
                start = LEAD + (dy - 1) * W + (dx - 1)
                piece = buf_ref[:, start:start + P]
                if dx == 0:
                    piece = piece * mask_l
                elif dx == 2:
                    piece = piece * mask_r
                y1 = y1 + jnp.dot(wl_taps[dy * 3 + dx],
                                  piece.astype(jnp.bfloat16),
                                  preferred_element_type=jnp.float32)
        y1 = jnp.maximum(y1 + bl, 0.0)                # (C, P)

        # ---- GlobalMixer: depthwise 7x7 (pad=3) + folded BN + ReLU + residual ----
        buf_ref[:, LEAD:LEAD + P] = y1                # one contiguous copy
        acc = jnp.zeros((C, P), jnp.float32)
        for dx in range(7):
            # One strip load per horizontal tap; vertical taps are in-register slices.
            strip = buf_ref[:, dx:dx + 6 * W + P]     # (C, 6W + P)
            acc_dx = jnp.zeros((C, P), jnp.float32)
            for dy in range(7):
                tap = strip[:, dy * W:dy * W + P]
                acc_dx = acc_dx + w_taps[dy * 7 + dx] * tap
            acc = acc + (acc_dx if dx == 3 else acc_dx * dw_masks[dx])
        y2 = jnp.maximum(acc + bg, 0.0) + y1

        # ---- conv1x1 + folded BN + ReLU + outer residual ----
        y3 = jnp.dot(w1, y2.astype(jnp.bfloat16), preferred_element_type=jnp.float32)
        y3 = jnp.maximum(y3 + b1, 0.0)
        o_ref[b] = (y3 + x2d).astype(o_ref.dtype)     # lane-dense (P-wide) store


def _fold_bn(w_oihw, b, gamma, beta, mean, var, eps=1e-5):
    """Fold eval-mode BatchNorm into the preceding conv (exact)."""
    scale = gamma / jnp.sqrt(var + eps)
    w_f = w_oihw * scale[:, None, None, None]
    b_f = (b - mean) * scale + beta
    return w_f, b_f


def _pick_nb(N, C, P, itemsize, L):
    """Images per grid step: the largest divisor of N that
       (a) leaves >= 2 grid steps when N >= 2 (so the 'parallel' batch axis can
           shard across v7x's two TensorCores and DMA/compute can overlap), and
       (b) fits a conservative VMEM budget (double-buffered in+out blocks + halo buf)."""
    budget = 24 * 1024 * 1024          # conservative vs v5e/v6e/v7x scoped-VMEM ceilings
    grid_min = 2 if N >= 2 else 1
    for nb in range(N, 0, -1):
        if N % nb or (N // nb) < grid_min:
            continue
        est = 2 * 2 * nb * C * P * itemsize + C * L * 4   # 2 bufs x (in + out) + buf scratch
        if est <= budget:
            return nb
    return 1


def mixer_decoder_pallas(x_nchw, params):
    N, C, H, W = x_nchw.shape
    P = H * W

    # Fold eval-mode BN into the convs (exact algebra).
    wl, bl = _fold_bn(params['wl'], params['bl'], *params['bn_l'])
    wg, bg = _fold_bn(params['wg'], params['bg'], *params['bn_g'])
    w1, b1 = _fold_bn(params['w1'], params['b1'], *params['bn_1'])

    # Kernel-side weight layouts (channels-first, spatial-on-lanes).
    # MXU weights in bf16 (f32 accumulation happens in the kernel); VPU weights stay f32.
    wl_stk = jnp.transpose(wl, (2, 3, 0, 1)).reshape(9, C, C).astype(jnp.bfloat16)
    wdw_c = jnp.transpose(wg[:, 0, :, :], (1, 2, 0)).reshape(49, C).T.astype(jnp.float32)
    w1_m = w1[:, :, 0, 0].astype(jnp.bfloat16)               # (Cout, Cin)
    blm = bl.reshape(C, 1).astype(jnp.float32)
    bgm = bg.reshape(C, 1).astype(jnp.float32)
    b1m = b1.reshape(C, 1).astype(jnp.float32)

    # NCHW consumed directly: reshape is a free view (no HBM transpose round trip).
    x2 = x_nchw.reshape(N, C, P)

    # Flat scratch length: lead (3W+3) + image (P) + trail, rounded up to 128 lanes.
    L = -(-(P + 6 * W + 6) // 128) * 128

    NB = _pick_nb(N, C, P, x_nchw.dtype.itemsize, L)
    grid = (N // NB,)

    def _rep(shape):
        nd = len(shape)
        return pl.BlockSpec(shape, lambda n, _nd=nd: (0,) * _nd)

    kernel = functools.partial(_mixer_kernel, W=W)

    out = pl.pallas_call(
        kernel,
        out_shape=jax.ShapeDtypeStruct((N, C, P), x_nchw.dtype),
        grid=grid,
        in_specs=[
            pl.BlockSpec((NB, C, P), lambda n: (n, 0, 0)),
            _rep(wl_stk.shape), _rep(blm.shape), _rep(wdw_c.shape),
            _rep(bgm.shape), _rep(w1_m.shape), _rep(b1m.shape),
        ],
        out_specs=pl.BlockSpec((NB, C, P), lambda n: (n, 0, 0)),
        scratch_shapes=[
            pltpu.VMEM((C, L), jnp.float32),      # halo buffer (no col scratch anymore)
        ],
        compiler_params=pltpu.CompilerParams(
            dimension_semantics=("parallel",),    # batch axis can shard across v7x's 2 TCs
            vmem_limit_bytes=32 * 1024 * 1024),
    )(x2, wl_stk, blm, wdw_c, bgm, w1_m, b1m)

    return out.reshape(N, C, H, W)


# ---------------- pure-JAX reference (for correctness check) ----------------
def _bn_ref(x_nchw, gamma, beta, mean, var, eps=1e-5):
    inv = 1.0 / jnp.sqrt(var + eps)
    return ((x_nchw - mean[None, :, None, None]) * (gamma * inv)[None, :, None, None]
            + beta[None, :, None, None])


def _conv_ref(x_nchw, w_oihw, b, pad, groups=1):
    y = jax.lax.conv_general_dilated(
        x_nchw, w_oihw, (1, 1), [(pad, pad), (pad, pad)],
        dimension_numbers=('NCHW', 'OIHW', 'NCHW'),
        feature_group_count=groups)
    return y + b[None, :, None, None]


def mixer_decoder_ref(x_nchw, params):
    C = x_nchw.shape[1]
    x = x_nchw.astype(jnp.float32)
    residual = x
    y = jnp.maximum(
        _bn_ref(_conv_ref(x, params['wl'], params['bl'], 1), *params['bn_l']), 0.0)
    y2 = jnp.maximum(
        _bn_ref(_conv_ref(y, params['wg'], params['bg'], 3, groups=C),
                *params['bn_g']), 0.0) + y
    y3 = jnp.maximum(
        _bn_ref(_conv_ref(y2, params['w1'], params['b1'], 0), *params['bn_1']), 0.0)
    return y3 + residual


if __name__ == "__main__":
    N, C, H, W = 2, 4, 16, 16
    key = jax.random.PRNGKey(0)
    ks = jax.random.split(key, 17)

    def normal(k, shape, s=0.1):
        return s * jax.random.normal(k, shape, jnp.float32)

    params = dict(
        # LocalMixer: Conv2d(C, C, 3, 1, 1) + BN
        wl=normal(ks[0], (C, C, 3, 3)), bl=normal(ks[1], (C,)),
        bn_l=(1.0 + 0.1 * jax.random.normal(ks[2], (C,)),   # gamma
              normal(ks[3], (C,)),                           # beta
              normal(ks[4], (C,)),                           # running_mean
              0.5 + jax.random.uniform(ks[5], (C,))),        # running_var
        # GlobalMixer: Conv2d(C, C, 7, 1, 3, groups=C) + BN
        wg=normal(ks[6], (C, 1, 7, 7)), bg=normal(ks[7], (C,)),
        bn_g=(1.0 + 0.1 * jax.random.normal(ks[8], (C,)),
              normal(ks[9], (C,)),
              normal(ks[10], (C,)),
              0.5 + jax.random.uniform(ks[11], (C,))),
        # conv1x1: Conv2d(C, C, 1, 1, 0) + BN
        w1=normal(ks[12], (C, C, 1, 1)), b1=normal(ks[13], (C,)),
        bn_1=(1.0 + 0.1 * jax.random.normal(ks[14], (C,)),
              normal(ks[15], (C,)),
              jnp.zeros((C,), jnp.float32),
              jnp.ones((C,), jnp.float32)),
    )

    x = jax.random.normal(ks[16], (N, C, H, W), jnp.float32)

    out = jax.block_until_ready(mixer_decoder_pallas(x, params))
    ref = mixer_decoder_ref(x, params)

    assert out.shape == (N, C, H, W)
    # Tolerance widened vs pure f32: the two conv matmuls use bf16 operands with f32
    # accumulation (per the perf review); measured drift is ~1e-2 worst case here.
    np.testing.assert_allclose(np.asarray(out), np.asarray(ref),
                               atol=5e-2, rtol=5e-2)
    print("KERNEL_OK")
</pallas_src>

<mosaic_0001>
module attributes {stable_mosaic.version = 11 : i64} {
  func.func @_mixer_kernel(%arg0: i32, %arg1: memref<1x4x256xf32, #tpu.memory_space<vmem>>, %arg2: memref<9x4x4xbf16, #tpu.memory_space<vmem>>, %arg3: memref<4x1xf32, #tpu.memory_space<vmem>>, %arg4: memref<4x49xf32, #tpu.memory_space<vmem>>, %arg5: memref<4x1xf32, #tpu.memory_space<vmem>>, %arg6: memref<4x4xbf16, #tpu.memory_space<vmem>>, %arg7: memref<4x1xf32, #tpu.memory_space<vmem>>, %arg8: memref<1x4x256xf32, #tpu.memory_space<vmem>>, %arg9: memref<4x384xf32, #tpu.memory_space<vmem>>) attributes {dimension_semantics = [#tpu.dimension_semantics<parallel>], iteration_bounds = array<i64: 2>, scalar_prefetch = 0 : i64, scratch_operands = 1 : i64, tpu.core_type = #tpu.core_type<tc>, window_params = [{transform_indices = @transform_0, window_bounds = array<i64: 1, 4, 256>}, {pipeline_mode = #tpu.pipeline_mode<synchronous>, transform_indices = @transform_1, window_bounds = array<i64: 9, 4, 4>}, {pipeline_mode = #tpu.pipeline_mode<synchronous>, transform_indices = @transform_2, window_bounds = array<i64: 4, 1>}, {pipeline_mode = #tpu.pipeline_mode<synchronous>, transform_indices = @transform_3, window_bounds = array<i64: 4, 49>}, {pipeline_mode = #tpu.pipeline_mode<synchronous>, transform_indices = @transform_4, window_bounds = array<i64: 4, 1>}, {pipeline_mode = #tpu.pipeline_mode<synchronous>, transform_indices = @transform_5, window_bounds = array<i64: 4, 4>}, {pipeline_mode = #tpu.pipeline_mode<synchronous>, transform_indices = @transform_6, window_bounds = array<i64: 4, 1>}, {transform_indices = @transform_7, window_bounds = array<i64: 1, 4, 256>}]} {
    %cst = arith.constant 0.000000e+00 : f32
    %0 = vector.broadcast %cst : f32 to vector<4x51xf32>
    %c0 = arith.constant 0 : index
    %c0_0 = arith.constant 0 : index
    %1 = vector.load %arg9[%c0, %c0_0] : memref<4x384xf32, #tpu.memory_space<vmem>>, vector<4x51xf32>
    tpu.vector_store %arg9[%c0, %c0_0], %0 {strides = array<i32>} : memref<4x384xf32, #tpu.memory_space<vmem>>, vector<4x51xf32>,
    %cst_1 = arith.constant 0.000000e+00 : f32
    %2 = vector.broadcast %cst_1 : f32 to vector<4x77xf32>
    %c0_2 = arith.constant 0 : index
    %c307 = arith.constant 307 : index
    %3 = vector.load %arg9[%c0_2, %c307] : memref<4x384xf32, #tpu.memory_space<vmem>>, vector<4x77xf32>
    tpu.vector_store %arg9[%c0_2, %c307], %2 {strides = array<i32>} : memref<4x384xf32, #tpu.memory_space<vmem>>, vector<4x77xf32>,
    %4 = tpu.iota {dimensions = array<i32: 1>} : vector<1x256xi32>
    %c16_i32 = arith.constant 16 : i32
    %c0_i32 = arith.constant 0 : i32
    %5 = arith.cmpi eq, %c16_i32, %c0_i32 : i32
    %c1_i32 = arith.constant 1 : i32
    %6 = arith.select %5, %c1_i32, %c16_i32 : i32
    %7 = vector.broadcast %6 : i32 to vector<1x256xi32>
    %8 = arith.remsi %4, %7 : vector<1x256xi32>
    %c0_i32_3 = arith.constant 0 : i32
    %9 = vector.broadcast %c0_i32_3 : i32 to vector<1x256xi32>
    %10 = arith.cmpi ne, %8, %9 : vector<1x256xi32>
    %c0_i32_4 = arith.constant 0 : i32
    %11 = vector.broadcast %c0_i32_4 : i32 to vector<1x256xi32>
    %12 = arith.cmpi slt, %8, %11 : vector<1x256xi32>
    %c0_i32_5 = arith.constant 0 : i32
    %13 = arith.cmpi slt, %6, %c0_i32_5 : i32
    %14 = vector.broadcast %13 : i1 to vector<1x256xi1>
    %15 = vector.broadcast %14 : vector<1x256xi1> to vector<1x256xi1>
    %16 = arith.xori %12, %15 : vector<1x256xi1>
    %17 = arith.andi %16, %10 : vector<1x256xi1>
    %18 = vector.broadcast %6 : i32 to vector<1x256xi32>
    %19 = arith.addi %8, %18 : vector<1x256xi32>
    %20 = arith.select %17, %19, %8 : vector<1x256xi1>, vector<1x256xi32>
    %c1_i32_6 = arith.constant 1 : i32
    %21 = vector.broadcast %c1_i32_6 : i32 to vector<1x256xi32>
    %22 = arith.cmpi sge, %20, %21 : vector<1x256xi32>
    %23 = arith.extui %22 : vector<1x256xi1> to vector<1x256xi32>
    %24 = arith.sitofp %23 : vector<1x256xi32> to vector<1x256xf32>
    %c14_i32 = arith.constant 14 : i32
    %25 = vector.broadcast %c14_i32 : i32 to vector<1x256xi32>
    %26 = arith.cmpi sle, %20, %25 : vector<1x256xi32>
    %27 = arith.extui %26 : vector<1x256xi1> to vector<1x256xi32>
    %28 = arith.sitofp %27 : vector<1x256xi32> to vector<1x256xf32>
    %c-3_i32 = arith.constant -3 : i32
    %29 = vector.broadcast %c-3_i32 : i32 to vector<1x256xi32>
    %30 = arith.addi %20, %29 : vector<1x256xi32>
    %c0_i32_7 = arith.constant 0 : i32
    %31 = vector.broadcast %c0_i32_7 : i32 to vector<1x256xi32>
    %32 = arith.cmpi sge, %30, %31 : vector<1x256xi32>
    %c-3_i32_8 = arith.constant -3 : i32
    %33 = vector.broadcast %c-3_i32_8 : i32 to vector<1x256xi32>
    %34 = arith.addi %20, %33 : vector<1x256xi32>
    %c15_i32 = arith.constant 15 : i32
    %35 = vector.broadcast %c15_i32 : i32 to vector<1x256xi32>
    %36 = arith.cmpi sle, %34, %35 : vector<1x256xi32>
    %37 = arith.andi %32, %36 : vector<1x256xi1>
    %38 = arith.extui %37 : vector<1x256xi1> to vector<1x256xi32>
    %39 = arith.sitofp %38 : vector<1x256xi32> to vector<1x256xf32>
    %c-2_i32 = arith.constant -2 : i32
    %40 = vector.broadcast %c-2_i32 : i32 to vector<1x256xi32>
    %41 = arith.addi %20, %40 : vector<1x256xi32>
    %c0_i32_9 = arith.constant 0 : i32
    %42 = vector.broadcast %c0_i32_9 : i32 to vector<1x256xi32>
    %43 = arith.cmpi sge, %41, %42 : vector<1x256xi32>
    %c-2_i32_10 = arith.constant -2 : i32
    %44 = vector.broadcast %c-2_i32_10 : i32 to vector<1x256xi32>
    %45 = arith.addi %20, %44 : vector<1x256xi32>
    %c15_i32_11 = arith.constant 15 : i32
    %46 = vector.broadcast %c15_i32_11 : i32 to vector<1x256xi32>
    %47 = arith.cmpi sle, %45, %46 : vector<1x256xi32>
    %48 = arith.andi %43, %47 : vector<1x256xi1>
    %49 = arith.extui %48 : vector<1x256xi1> to vector<1x256xi32>
    %50 = arith.sitofp %49 : vector<1x256xi32> to vector<1x256xf32>
    %c-1_i32 = arith.constant -1 : i32
    %51 = vector.broadcast %c-1_i32 : i32 to vector<1x256xi32>
    %52 = arith.addi %20, %51 : vector<1x256xi32>
    %c0_i32_12 = arith.constant 0 : i32
    %53 = vector.broadcast %c0_i32_12 : i32 to vector<1x256xi32>
    %54 = arith.cmpi sge, %52, %53 : vector<1x256xi32>
    %c-1_i32_13 = arith.constant -1 : i32
    %55 = vector.broadcast %c-1_i32_13 : i32 to vector<1x256xi32>
    %56 = arith.addi %20, %55 : vector<1x256xi32>
    %c15_i32_14 = arith.constant 15 : i32
    %57 = vector.broadcast %c15_i32_14 : i32 to vector<1x256xi32>
    %58 = arith.cmpi sle, %56, %57 : vector<1x256xi32>
    %59 = arith.andi %54, %58 : vector<1x256xi1>
    %60 = arith.extui %59 : vector<1x256xi1> to vector<1x256xi32>
    %61 = arith.sitofp %60 : vector<1x256xi32> to vector<1x256xf32>
    %c1_i32_15 = arith.constant 1 : i32
    %62 = vector.broadcast %c1_i32_15 : i32 to vector<1x256xi32>
    %63 = arith.addi %20, %62 : vector<1x256xi32>
    %c0_i32_16 = arith.constant 0 : i32
    %64 = vector.broadcast %c0_i32_16 : i32 to vector<1x256xi32>
    %65 = arith.cmpi sge, %63, %64 : vector<1x256xi32>
    %c1_i32_17 = arith.constant 1 : i32
    %66 = vector.broadcast %c1_i32_17 : i32 to vector<1x256xi32>
    %67 = arith.addi %20, %66 : vector<1x256xi32>
    %c15_i32_18 = arith.constant 15 : i32
    %68 = vector.broadcast %c15_i32_18 : i32 to vector<1x256xi32>
    %69 = arith.cmpi sle, %67, %68 : vector<1x256xi32>
    %70 = arith.andi %65, %69 : vector<1x256xi1>
    %71 = arith.extui %70 : vector<1x256xi1> to vector<1x256xi32>
    %72 = arith.sitofp %71 : vector<1x256xi32> to vector<1x256xf32>
    %c2_i32 = arith.constant 2 : i32
    %73 = vector.broadcast %c2_i32 : i32 to vector<1x256xi32>
    %74 = arith.addi %20, %73 : vector<1x256xi32>
    %c0_i32_19 = arith.constant 0 : i32
    %75 = vector.broadcast %c0_i32_19 : i32 to vector<1x256xi32>
    %76 = arith.cmpi sge, %74, %75 : vector<1x256xi32>
    %c2_i32_20 = arith.constant 2 : i32
    %77 = vector.broadcast %c2_i32_20 : i32 to vector<1x256xi32>
    %78 = arith.addi %20, %77 : vector<1x256xi32>
    %c15_i32_21 = arith.constant 15 : i32
    %79 = vector.broadcast %c15_i32_21 : i32 to vector<1x256xi32>
    %80 = arith.cmpi sle, %78, %79 : vector<1x256xi32>
    %81 = arith.andi %76, %80 : vector<1x256xi1>
    %82 = arith.extui %81 : vector<1x256xi1> to vector<1x256xi32>
    %83 = arith.sitofp %82 : vector<1x256xi32> to vector<1x256xf32>
    %c3_i32 = arith.constant 3 : i32
    %84 = vector.broadcast %c3_i32 : i32 to vector<1x256xi32>
    %85 = arith.addi %20, %84 : vector<1x256xi32>
    %c0_i32_22 = arith.constant 0 : i32
    %86 = vector.broadcast %c0_i32_22 : i32 to vector<1x256xi32>
    %87 = arith.cmpi sge, %85, %86 : vector<1x256xi32>
    %c3_i32_23 = arith.constant 3 : i32
    %88 = vector.broadcast %c3_i32_23 : i32 to vector<1x256xi32>
    %89 = arith.addi %20, %88 : vector<1x256xi32>
    %c15_i32_24 = arith.constant 15 : i32
    %90 = vector.broadcast %c15_i32_24 : i32 to vector<1x256xi32>
    %91 = arith.cmpi sle, %89, %90 : vector<1x256xi32>
    %92 = arith.andi %87, %91 : vector<1x256xi1>
    %93 = arith.extui %92 : vector<1x256xi1> to vector<1x256xi32>
    %94 = arith.sitofp %93 : vector<1x256xi32> to vector<1x256xf32>
    %c0_25 = arith.constant 0 : index
    %c0_26 = arith.constant 0 : index
    %c0_27 = arith.constant 0 : index
    %95 = vector.load %arg2[%c0_25, %c0_26, %c0_27] : memref<9x4x4xbf16, #tpu.memory_space<vmem>>, vector<1x4x4xbf16>
    %96 = vector.shape_cast %95 : vector<1x4x4xbf16> to vector<4x4xbf16>
    %c1 = arith.constant 1 : index
    %c0_28 = arith.constant 0 : index
    %c0_29 = arith.constant 0 : index
    %97 = vector.load %arg2[%c1, %c0_28, %c0_29] : memref<9x4x4xbf16, #tpu.memory_space<vmem>>, vector<1x4x4xbf16>
    %98 = vector.shape_cast %97 : vector<1x4x4xbf16> to vector<4x4xbf16>
    %c2 = arith.constant 2 : index
    %c0_30 = arith.constant 0 : index
    %c0_31 = arith.constant 0 : index
    %99 = vector.load %arg2[%c2, %c0_30, %c0_31] : memref<9x4x4xbf16, #tpu.memory_space<vmem>>, vector<1x4x4xbf16>
    %100 = vector.shape_cast %99 : vector<1x4x4xbf16> to vector<4x4xbf16>
    %c3 = arith.constant 3 : index
    %c0_32 = arith.constant 0 : index
    %c0_33 = arith.constant 0 : index
    %101 = vector.load %arg2[%c3, %c0_32, %c0_33] : memref<9x4x4xbf16, #tpu.memory_space<vmem>>, vector<1x4x4xbf16>
    %102 = vector.shape_cast %101 : vector<1x4x4xbf16> to vector<4x4xbf16>
    %c4 = arith.constant 4 : index
    %c0_34 = arith.constant 0 : index
    %c0_35 = arith.constant 0 : index
    %103 = vector.load %arg2[%c4, %c0_34, %c0_35] : memref<9x4x4xbf16, #tpu.memory_space<vmem>>, vector<1x4x4xbf16>
    %104 = vector.shape_cast %103 : vector<1x4x4xbf16> to vector<4x4xbf16>
    %c5 = arith.constant 5 : index
    %c0_36 = arith.constant 0 : index
    %c0_37 = arith.constant 0 : index
    %105 = vector.load %arg2[%c5, %c0_36, %c0_37] : memref<9x4x4xbf16, #tpu.memory_space<vmem>>, vector<1x4x4xbf16>
    %106 = vector.shape_cast %105 : vector<1x4x4xbf16> to vector<4x4xbf16>
    %c6 = arith.constant 6 : index
    %c0_38 = arith.constant 0 : index
    %c0_39 = arith.constant 0 : index
    %107 = vector.load %arg2[%c6, %c0_38, %c0_39] : memref<9x4x4xbf16, #tpu.memory_space<vmem>>, vector<1x4x4xbf16>
    %108 = vector.shape_cast %107 : vector<1x4x4xbf16> to vector<4x4xbf16>
    %c7 = arith.constant 7 : index
    %c0_40 = arith.constant 0 : index
    %c0_41 = arith.constant 0 : index
    %109 = vector.load %arg2[%c7, %c0_40, %c0_41] : memref<9x4x4xbf16, #tpu.memory_space<vmem>>, vector<1x4x4xbf16>
    %110 = vector.shape_cast %109 : vector<1x4x4xbf16> to vector<4x4xbf16>
    %c8 = arith.constant 8 : index
    %c0_42 = arith.constant 0 : index
    %c0_43 = arith.constant 0 : index
    %111 = vector.load %arg2[%c8, %c0_42, %c0_43] : memref<9x4x4xbf16, #tpu.memory_space<vmem>>, vector<1x4x4xbf16>
    %112 = vector.shape_cast %111 : vector<1x4x4xbf16> to vector<4x4xbf16>
    %c0_44 = arith.constant 0 : index
    %c0_45 = arith.constant 0 : index
    %113 = vector.load %arg3[%c0_44, %c0_45] : memref<4x1xf32, #tpu.memory_space<vmem>>, vector<4x1xf32>
    %c0_46 = arith.constant 0 : index
    %c0_47 = arith.constant 0 : index
    %114 = vector.load %arg4[%c0_46, %c0_47] : memref<4x49xf32, #tpu.memory_space<vmem>>, vector<4x49xf32>
    %115 = vector.extract_strided_slice %114 {offsets = [0, 0], sizes = [4, 1], strides = [1, 1]} : vector<4x49xf32> to vector<4x1xf32>
    %116 = vector.extract_strided_slice %114 {offsets = [0, 1], sizes = [4, 1], strides = [1, 1]} : vector<4x49xf32> to vector<4x1xf32>
    %117 = vector.extract_strided_slice %114 {offsets = [0, 2], sizes = [4, 1], strides = [1, 1]} : vector<4x49xf32> to vector<4x1xf32>
    %118 = vector.extract_strided_slice %114 {offsets = [0, 3], sizes = [4, 1], strides = [1, 1]} : vector<4x49xf32> to vector<4x1xf32>
    %119 = vector.extract_strided_slice %114 {offsets = [0, 4], sizes = [4, 1], strides = [1, 1]} : vector<4x49xf32> to vector<4x1xf32>
    %120 = vector.extract_strided_slice %114 {offsets = [0, 5], sizes = [4, 1], strides = [1, 1]} : vector<4x49xf32> to vector<4x1xf32>
    %121 = vector.extract_strided_slice %114 {offsets = [0, 6], sizes = [4, 1], strides = [1, 1]} : vector<4x49xf32> to vector<4x1xf32>
    %122 = vector.extract_strided_slice %114 {offsets = [0, 7], sizes = [4, 1], strides = [1, 1]} : vector<4x49xf32> to vector<4x1xf32>
    %123 = vector.extract_strided_slice %114 {offsets = [0, 8], sizes = [4, 1], strides = [1, 1]} : vector<4x49xf32> to vector<4x1xf32>
    %124 = vector.extract_strided_slice %114 {offsets = [0, 9], sizes = [4, 1], strides = [1, 1]} : vector<4x49xf32> to vector<4x1xf32>
    %125 = vector.extract_strided_slice %114 {offsets = [0, 10], sizes = [4, 1], strides = [1, 1]} : vector<4x49xf32> to vector<4x1xf32>
    %126 = vector.extract_strided_slice %114 {offsets = [0, 11], sizes = [4, 1], strides = [1, 1]} : vector<4x49xf32> to vector<4x1xf32>
    %127 = vector.extract_strided_slice %114 {offsets = [0, 12], sizes = [4, 1], strides = [1, 1]} : vector<4x49xf32> to vector<4x1xf32>
    %128 = vector.extract_strided_slice %114 {offsets = [0, 13], sizes = [4, 1], strides = [1, 1]} : vector<4x49xf32> to vector<4x1xf32>
    %129 = vector.extract_strided_slice %114 {offsets = [0, 14], sizes = [4, 1], strides = [1, 1]} : vector<4x49xf32> to vector<4x1xf32>
    %130 = vector.extract_strided_slice %114 {offsets = [0, 15], sizes = [4, 1], strides = [1, 1]} : vector<4x49xf32> to vector<4x1xf32>
    %131 = vector.extract_strided_slice %114 {offsets = [0, 16], sizes = [4, 1], strides = [1, 1]} : vector<4x49xf32> to vector<4x1xf32>
    %132 = vector.extract_strided_slice %114 {offsets = [0, 17], sizes = [4, 1], strides = [1, 1]} : vector<4x49xf32> to vector<4x1xf32>
    %133 = vector.extract_strided_slice %114 {offsets = [0, 18], sizes = [4, 1], strides = [1, 1]} : vector<4x49xf32> to vector<4x1xf32>
    %134 = vector.extract_strided_slice %114 {offsets = [0, 19], sizes = [4, 1], strides = [1, 1]} : vector<4x49xf32> to vector<4x1xf32>
    %135 = vector.extract_strided_slice %114 {offsets = [0, 20], sizes = [4, 1], strides = [1, 1]} : vector<4x49xf32> to vector<4x1xf32>
    %136 = vector.extract_strided_slice %114 {offsets = [0, 21], sizes = [4, 1], strides = [1, 1]} : vector<4x49xf32> to vector<4x1xf32>
    %137 = vector.extract_strided_slice %114 {offsets = [0, 22], sizes = [4, 1], strides = [1, 1]} : vector<4x49xf32> to vector<4x1xf32>
    %138 = vector.extract_strided_slice %114 {offsets = [0, 23], sizes = [4, 1], strides = [1, 1]} : vector<4x49xf32> to vector<4x1xf32>
    %139 = vector.extract_strided_slice %114 {offsets = [0, 24], sizes = [4, 1], strides = [1, 1]} : vector<4x49xf32> to vector<4x1xf32>
    %140 = vector.extract_strided_slice %114 {offsets = [0, 25], sizes = [4, 1], strides = [1, 1]} : vector<4x49xf32> to vector<4x1xf32>
    %141 = vector.extract_strided_slice %114 {offsets = [0, 26], sizes = [4, 1], strides = [1, 1]} : vector<4x49xf32> to vector<4x1xf32>
    %142 = vector.extract_strided_slice %114 {offsets = [0, 27], sizes = [4, 1], strides = [1, 1]} : vector<4x49xf32> to vector<4x1xf32>
    %143 = vector.extract_strided_slice %114 {offsets = [0, 28], sizes = [4, 1], strides = [1, 1]} : vector<4x49xf32> to vector<4x1xf32>
    %144 = vector.extract_strided_slice %114 {offsets = [0, 29], sizes = [4, 1], strides = [1, 1]} : vector<4x49xf32> to vector<4x1xf32>
    %145 = vector.extract_strided_slice %114 {offsets = [0, 30], sizes = [4, 1], strides = [1, 1]} : vector<4x49xf32> to vector<4x1xf32>
    %146 = vector.extract_strided_slice %114 {offsets = [0, 31], sizes = [4, 1], strides = [1, 1]} : vector<4x49xf32> to vector<4x1xf32>
    %147 = vector.extract_strided_slice %114 {offsets = [0, 32], sizes = [4, 1], strides = [1, 1]} : vector<4x49xf32> to vector<4x1xf32>
    %148 = vector.extract_strided_slice %114 {offsets = [0, 33], sizes = [4, 1], strides = [1, 1]} : vector<4x49xf32> to vector<4x1xf32>
    %149 = vector.extract_strided_slice %114 {offsets = [0, 34], sizes = [4, 1], strides = [1, 1]} : vector<4x49xf32> to vector<4x1xf32>
    %150 = vector.extract_strided_slice %114 {offsets = [0, 35], sizes = [4, 1], strides = [1, 1]} : vector<4x49xf32> to vector<4x1xf32>
    %151 = vector.extract_strided_slice %114 {offsets = [0, 36], sizes = [4, 1], strides = [1, 1]} : vector<4x49xf32> to vector<4x1xf32>
    %152 = vector.extract_strided_slice %114 {offsets = [0, 37], sizes = [4, 1], strides = [1, 1]} : vector<4x49xf32> to vector<4x1xf32>
    %153 = vector.extract_strided_slice %114 {offsets = [0, 38], sizes = [4, 1], strides = [1, 1]} : vector<4x49xf32> to vector<4x1xf32>
    %154 = vector.extract_strided_slice %114 {offsets = [0, 39], sizes = [4, 1], strides = [1, 1]} : vector<4x49xf32> to vector<4x1xf32>
    %155 = vector.extract_strided_slice %114 {offsets = [0, 40], sizes = [4, 1], strides = [1, 1]} : vector<4x49xf32> to vector<4x1xf32>
    %156 = vector.extract_strided_slice %114 {offsets = [0, 41], sizes = [4, 1], strides = [1, 1]} : vector<4x49xf32> to vector<4x1xf32>
    %157 = vector.extract_strided_slice %114 {offsets = [0, 42], sizes = [4, 1], strides = [1, 1]} : vector<4x49xf32> to vector<4x1xf32>
    %158 = vector.extract_strided_slice %114 {offsets = [0, 43], sizes = [4, 1], strides = [1, 1]} : vector<4x49xf32> to vector<4x1xf32>
    %159 = vector.extract_strided_slice %114 {offsets = [0, 44], sizes = [4, 1], strides = [1, 1]} : vector<4x49xf32> to vector<4x1xf32>
    %160 = vector.extract_strided_slice %114 {offsets = [0, 45], sizes = [4, 1], strides = [1, 1]} : vector<4x49xf32> to vector<4x1xf32>
    %161 = vector.extract_strided_slice %114 {offsets = [0, 46], sizes = [4, 1], strides = [1, 1]} : vector<4x49xf32> to vector<4x1xf32>
    %162 = vector.extract_strided_slice %114 {offsets = [0, 47], sizes = [4, 1], strides = [1, 1]} : vector<4x49xf32> to vector<4x1xf32>
    %163 = vector.extract_strided_slice %114 {offsets = [0, 48], sizes = [4, 1], strides = [1, 1]} : vector<4x49xf32> to vector<4x1xf32>
    %c0_48 = arith.constant 0 : index
    %c0_49 = arith.constant 0 : index
    %164 = vector.load %arg5[%c0_48, %c0_49] : memref<4x1xf32, #tpu.memory_space<vmem>>, vector<4x1xf32>
    %c0_50 = arith.constant 0 : index
    %c0_51 = arith.constant 0 : index
    %165 = vector.load %arg6[%c0_50, %c0_51] : memref<4x4xbf16, #tpu.memory_space<vmem>>, vector<4x4xbf16>
    %c0_52 = arith.constant 0 : index
    %c0_53 = arith.constant 0 : index
    %166 = vector.load %arg7[%c0_52, %c0_53] : memref<4x1xf32, #tpu.memory_space<vmem>>, vector<4x1xf32>
    %c0_54 = arith.constant 0 : index
    %c0_55 = arith.constant 0 : index
    %c0_56 = arith.constant 0 : index
    %167 = vector.load %arg1[%c0_54, %c0_55, %c0_56] : memref<1x4x256xf32, #tpu.memory_space<vmem>>, vector<1x4x256xf32>
    %168 = vector.shape_cast %167 : vector<1x4x256xf32> to vector<4x256xf32>
    %c0_57 = arith.constant 0 : index
    %c51 = arith.constant 51 : index
    %169 = vector.load %arg9[%c0_57, %c51] : memref<4x384xf32, #tpu.memory_space<vmem>>, vector<4x256xf32>
    tpu.vector_store %arg9[%c0_57, %c51], %168 {strides = array<i32>} : memref<4x384xf32, #tpu.memory_space<vmem>>, vector<4x256xf32>,
    %cst_58 = arith.constant 0.000000e+00 : f32
    %170 = vector.broadcast %cst_58 : f32 to vector<4x256xf32>
    %c0_59 = arith.constant 0 : index
    %c34 = arith.constant 34 : index
    %171 = vector.load %arg9[%c0_59, %c34] : memref<4x384xf32, #tpu.memory_space<vmem>>, vector<4x256xf32>
    %172 = vector.broadcast %24 : vector<1x256xf32> to vector<4x256xf32>
    %173 = arith.mulf %171, %172 : vector<4x256xf32>
    %174 = arith.truncf %173 : vector<4x256xf32> to vector<4x256xbf16>
    %cst_60 = arith.constant dense<0.000000e+00> : vector<4x256xf32>
    %175 = tpu.matmul %96, %174, %cst_60 {dimension_numbers = #tpu.dot_dimension_numbers<[1], [0], [0], [1], [0, 0, 1, 1], [], []>} : vector<4x4xbf16>, vector<4x256xbf16>, vector<4x256xf32> -> vector<4x256xf32>
    %176 = arith.addf %170, %175 : vector<4x256xf32>
    %c0_61 = arith.constant 0 : index
    %c35 = arith.constant 35 : index
    %177 = vector.load %arg9[%c0_61, %c35] : memref<4x384xf32, #tpu.memory_space<vmem>>, vector<4x256xf32>
    %178 = arith.truncf %177 : vector<4x256xf32> to vector<4x256xbf16>
    %cst_62 = arith.constant dense<0.000000e+00> : vector<4x256xf32>
    %179 = tpu.matmul %98, %178, %cst_62 {dimension_numbers = #tpu.dot_dimension_numbers<[1], [0], [0], [1], [0, 0, 1, 1], [], []>} : vector<4x4xbf16>, vector<4x256xbf16>, vector<4x256xf32> -> vector<4x256xf32>
    %180 = arith.addf %176, %179 : vector<4x256xf32>
    %c0_63 = arith.constant 0 : index
    %c36 = arith.constant 36 : index
    %181 = vector.load %arg9[%c0_63, %c36] : memref<4x384xf32, #tpu.memory_space<vmem>>, vector<4x256xf32>
    %182 = vector.broadcast %28 : vector<1x256xf32> to vector<4x256xf32>
    %183 = arith.mulf %181, %182 : vector<4x256xf32>
    %184 = arith.truncf %183 : vector<4x256xf32> to vector<4x256xbf16>
    %cst_64 = arith.constant dense<0.000000e+00> : vector<4x256xf32>
    %185 = tpu.matmul %100, %184, %cst_64 {dimension_numbers = #tpu.dot_dimension_numbers<[1], [0], [0], [1], [0, 0, 1, 1], [], []>} : vector<4x4xbf16>, vector<4x256xbf16>, vector<4x256xf32> -> vector<4x256xf32>
    %186 = arith.addf %180, %185 : vector<4x256xf32>
    %c0_65 = arith.constant 0 : index
    %c50 = arith.constant 50 : index
    %187 = vector.load %arg9[%c0_65, %c50] : memref<4x384xf32, #tpu.memory_space<vmem>>, vector<4x256xf32>
    %188 = vector.broadcast %24 : vector<1x256xf32> to vector<4x256xf32>
    %189 = arith.mulf %187, %188 : vector<4x256xf32>
    %190 = arith.truncf %189 : vector<4x256xf32> to vector<4x256xbf16>
    %cst_66 = arith.constant dense<0.000000e+00> : vector<4x256xf32>
    %191 = tpu.matmul %102, %190, %cst_66 {dimension_numbers = #tpu.dot_dimension_numbers<[1], [0], [0], [1], [0, 0, 1, 1], [], []>} : vector<4x4xbf16>, vector<4x256xbf16>, vector<4x256xf32> -> vector<4x256xf32>
    %192 = arith.addf %186, %191 : vector<4x256xf32>
    %c0_67 = arith.constant 0 : index
    %c51_68 = arith.constant 51 : index
    %193 = vector.load %arg9[%c0_67, %c51_68] : memref<4x384xf32, #tpu.memory_space<vmem>>, vector<4x256xf32>
    %194 = arith.truncf %193 : vector<4x256xf32> to vector<4x256xbf16>
    %cst_69 = arith.constant dense<0.000000e+00> : vector<4x256xf32>
    %195 = tpu.matmul %104, %194, %cst_69 {dimension_numbers = #tpu.dot_dimension_numbers<[1], [0], [0], [1], [0, 0, 1, 1], [], []>} : vector<4x4xbf16>, vector<4x256xbf16>, vector<4x256xf32> -> vector<4x256xf32>
    %196 = arith.addf %192, %195 : vector<4x256xf32>
    %c0_70 = arith.constant 0 : index
    %c52 = arith.constant 52 : index
    %197 = vector.load %arg9[%c0_70, %c52] : memref<4x384xf32, #tpu.memory_space<vmem>>, vector<4x256xf32>
    %198 = vector.broadcast %28 : vector<1x256xf32> to vector<4x256xf32>
    %199 = arith.mulf %197, %198 : vector<4x256xf32>
    %200 = arith.truncf %199 : vector<4x256xf32> to vector<4x256xbf16>
    %cst_71 = arith.constant dense<0.000000e+00> : vector<4x256xf32>
    %201 = tpu.matmul %106, %200, %cst_71 {dimension_numbers = #tpu.dot_dimension_numbers<[1], [0], [0], [1], [0, 0, 1, 1], [], []>} : vector<4x4xbf16>, vector<4x256xbf16>, vector<4x256xf32> -> vector<4x256xf32>
    %202 = arith.addf %196, %201 : vector<4x256xf32>
    %c0_72 = arith.constant 0 : index
    %c66 = arith.constant 66 : index
    %203 = vector.load %arg9[%c0_72, %c66] : memref<4x384xf32, #tpu.memory_space<vmem>>, vector<4x256xf32>
    %204 = vector.broadcast %24 : vector<1x256xf32> to vector<4x256xf32>
    %205 = arith.mulf %203, %204 : vector<4x256xf32>
    %206 = arith.truncf %205 : vector<4x256xf32> to vector<4x256xbf16>
    %cst_73 = arith.constant dense<0.000000e+00> : vector<4x256xf32>
    %207 = tpu.matmul %108, %206, %cst_73 {dimension_numbers = #tpu.dot_dimension_numbers<[1], [0], [0], [1], [0, 0, 1, 1], [], []>} : vector<4x4xbf16>, vector<4x256xbf16>, vector<4x256xf32> -> vector<4x256xf32>
    %208 = arith.addf %202, %207 : vector<4x256xf32>
    %c0_74 = arith.constant 0 : index
    %c67 = arith.constant 67 : index
    %209 = vector.load %arg9[%c0_74, %c67] : memref<4x384xf32, #tpu.memory_space<vmem>>, vector<4x256xf32>
    %210 = arith.truncf %209 : vector<4x256xf32> to vector<4x256xbf16>
    %cst_75 = arith.constant dense<0.000000e+00> : vector<4x256xf32>
    %211 = tpu.matmul %110, %210, %cst_75 {dimension_numbers = #tpu.dot_dimension_numbers<[1], [0], [0], [1], [0, 0, 1, 1], [], []>} : vector<4x4xbf16>, vector<4x256xbf16>, vector<4x256xf32> -> vector<4x256xf32>
    %212 = arith.addf %208, %211 : vector<4x256xf32>
    %c0_76 = arith.constant 0 : index
    %c68 = arith.constant 68 : index
    %213 = vector.load %arg9[%c0_76, %c68] : memref<4x384xf32, #tpu.memory_space<vmem>>, vector<4x256xf32>
    %214 = vector.broadcast %28 : vector<1x256xf32> to vector<4x256xf32>
    %215 = arith.mulf %213, %214 : vector<4x256xf32>
    %216 = arith.truncf %215 : vector<4x256xf32> to vector<4x256xbf16>
    %cst_77 = arith.constant dense<0.000000e+00> : vector<4x256xf32>
    %217 = tpu.matmul %112, %216, %cst_77 {dimension_numbers = #tpu.dot_dimension_numbers<[1], [0], [0], [1], [0, 0, 1, 1], [], []>} : vector<4x4xbf16>, vector<4x256xbf16>, vector<4x256xf32> -> vector<4x256xf32>
    %218 = arith.addf %212, %217 : vector<4x256xf32>
    %219 = vector.broadcast %113 : vector<4x1xf32> to vector<4x256xf32>
    %220 = arith.addf %218, %219 : vector<4x256xf32>
    %cst_78 = arith.constant 0.000000e+00 : f32
    %221 = vector.broadcast %cst_78 : f32 to vector<4x256xf32>
    %222 = arith.maximumf %220, %221 : vector<4x256xf32>
    %c0_79 = arith.constant 0 : index
    %c51_80 = arith.constant 51 : index
    %223 = vector.load %arg9[%c0_79, %c51_80] : memref<4x384xf32, #tpu.memory_space<vmem>>, vector<4x256xf32>
    tpu.vector_store %arg9[%c0_79, %c51_80], %222 {strides = array<i32>} : memref<4x384xf32, #tpu.memory_space<vmem>>, vector<4x256xf32>,
    %cst_81 = arith.constant 0.000000e+00 : f32
    %224 = vector.broadcast %cst_81 : f32 to vector<4x256xf32>
    %c0_82 = arith.constant 0 : index
    %c0_83 = arith.constant 0 : index
    %225 = vector.load %arg9[%c0_82, %c0_83] : memref<4x384xf32, #tpu.memory_space<vmem>>, vector<4x352xf32>
    %cst_84 = arith.constant 0.000000e+00 : f32
    %226 = vector.broadcast %cst_84 : f32 to vector<4x256xf32>
    %227 = vector.extract_strided_slice %225 {offsets = [0, 0], sizes = [4, 256], strides = [1, 1]} : vector<4x352xf32> to vector<4x256xf32>
    %228 = vector.broadcast %115 : vector<4x1xf32> to vector<4x256xf32>
    %229 = arith.mulf %228, %227 : vector<4x256xf32>
    %230 = arith.addf %226, %229 : vector<4x256xf32>
    %231 = vector.extract_strided_slice %225 {offsets = [0, 16], sizes = [4, 256], strides = [1, 1]} : vector<4x352xf32> to vector<4x256xf32>
    %232 = vector.broadcast %122 : vector<4x1xf32> to vector<4x256xf32>
    %233 = arith.mulf %232, %231 : vector<4x256xf32>
    %234 = arith.addf %230, %233 : vector<4x256xf32>
    %235 = vector.extract_strided_slice %225 {offsets = [0, 32], sizes = [4, 256], strides = [1, 1]} : vector<4x352xf32> to vector<4x256xf32>
    %236 = vector.broadcast %129 : vector<4x1xf32> to vector<4x256xf32>
    %237 = arith.mulf %236, %235 : vector<4x256xf32>
    %238 = arith.addf %234, %237 : vector<4x256xf32>
    %239 = vector.extract_strided_slice %225 {offsets = [0, 48], sizes = [4, 256], strides = [1, 1]} : vector<4x352xf32> to vector<4x256xf32>
    %240 = vector.broadcast %136 : vector<4x1xf32> to vector<4x256xf32>
    %241 = arith.mulf %240, %239 : vector<4x256xf32>
    %242 = arith.addf %238, %241 : vector<4x256xf32>
    %243 = vector.extract_strided_slice %225 {offsets = [0, 64], sizes = [4, 256], strides = [1, 1]} : vector<4x352xf32> to vector<4x256xf32>
    %244 = vector.broadcast %143 : vector<4x1xf32> to vector<4x256xf32>
    %245 = arith.mulf %244, %243 : vector<4x256xf32>
    %246 = arith.addf %242, %245 : vector<4x256xf32>
    %247 = vector.extract_strided_slice %225 {offsets = [0, 80], sizes = [4, 256], strides = [1, 1]} : vector<4x352xf32> to vector<4x256xf32>
    %248 = vector.broadcast %150 : vector<4x1xf32> to vector<4x256xf32>
    %249 = arith.mulf %248, %247 : vector<4x256xf32>
    %250 = arith.addf %246, %249 : vector<4x256xf32>
    %251 = vector.extract_strided_slice %225 {offsets = [0, 96], sizes = [4, 256], strides = [1, 1]} : vector<4x352xf32> to vector<4x256xf32>
    %252 = vector.broadcast %157 : vector<4x1xf32> to vector<4x256xf32>
    %253 = arith.mulf %252, %251 : vector<4x256xf32>
    %254 = arith.addf %250, %253 : vector<4x256xf32>
    %255 = vector.broadcast %39 : vector<1x256xf32> to vector<4x256xf32>
    %256 = arith.mulf %254, %255 : vector<4x256xf32>
    %257 = arith.addf %224, %256 : vector<4x256xf32>
    %c0_85 = arith.constant 0 : index
    %c1_86 = arith.constant 1 : index
    %258 = vector.load %arg9[%c0_85, %c1_86] : memref<4x384xf32, #tpu.memory_space<vmem>>, vector<4x352xf32>
    %cst_87 = arith.constant 0.000000e+00 : f32
    %259 = vector.broadcast %cst_87 : f32 to vector<4x256xf32>
    %260 = vector.extract_strided_slice %258 {offsets = [0, 0], sizes = [4, 256], strides = [1, 1]} : vector<4x352xf32> to vector<4x256xf32>
    %261 = vector.broadcast %116 : vector<4x1xf32> to vector<4x256xf32>
    %262 = arith.mulf %261, %260 : vector<4x256xf32>
    %263 = arith.addf %259, %262 : vector<4x256xf32>
    %264 = vector.extract_strided_slice %258 {offsets = [0, 16], sizes = [4, 256], strides = [1, 1]} : vector<4x352xf32> to vector<4x256xf32>
    %265 = vector.broadcast %123 : vector<4x1xf32> to vector<4x256xf32>
    %266 = arith.mulf %265, %264 : vector<4x256xf32>
    %267 = arith.addf %263, %266 : vector<4x256xf32>
    %268 = vector.extract_strided_slice %258 {offsets = [0, 32], sizes = [4, 256], strides = [1, 1]} : vector<4x352xf32> to vector<4x256xf32>
    %269 = vector.broadcast %130 : vector<4x1xf32> to vector<4x256xf32>
    %270 = arith.mulf %269, %268 : vector<4x256xf32>
    %271 = arith.addf %267, %270 : vector<4x256xf32>
    %272 = vector.extract_strided_slice %258 {offsets = [0, 48], sizes = [4, 256], strides = [1, 1]} : vector<4x352xf32> to vector<4x256xf32>
    %273 = vector.broadcast %137 : vector<4x1xf32> to vector<4x256xf32>
    %274 = arith.mulf %273, %272 : vector<4x256xf32>
    %275 = arith.addf %271, %274 : vector<4x256xf32>
    %276 = vector.extract_strided_slice %258 {offsets = [0, 64], sizes = [4, 256], strides = [1, 1]} : vector<4x352xf32> to vector<4x256xf32>
    %277 = vector.broadcast %144 : vector<4x1xf32> to vector<4x256xf32>
    %278 = arith.mulf %277, %276 : vector<4x256xf32>
    %279 = arith.addf %275, %278 : vector<4x256xf32>
    %280 = vector.extract_strided_slice %258 {offsets = [0, 80], sizes = [4, 256], strides = [1, 1]} : vector<4x352xf32> to vector<4x256xf32>
    %281 = vector.broadcast %151 : vector<4x1xf32> to vector<4x256xf32>
    %282 = arith.mulf %281, %280 : vector<4x256xf32>
    %283 = arith.addf %279, %282 : vector<4x256xf32>
    %284 = vector.extract_strided_slice %258 {offsets = [0, 96], sizes = [4, 256], strides = [1, 1]} : vector<4x352xf32> to vector<4x256xf32>
    %285 = vector.broadcast %158 : vector<4x1xf32> to vector<4x256xf32>
    %286 = arith.mulf %285, %284 : vector<4x256xf32>
    %287 = arith.addf %283, %286 : vector<4x256xf32>
    %288 = vector.broadcast %50 : vector<1x256xf32> to vector<4x256xf32>
    %289 = arith.mulf %287, %288 : vector<4x256xf32>
    %290 = arith.addf %257, %289 : vector<4x256xf32>
    %c0_88 = arith.constant 0 : index
    %c2_89 = arith.constant 2 : index
    %291 = vector.load %arg9[%c0_88, %c2_89] : memref<4x384xf32, #tpu.memory_space<vmem>>, vector<4x352xf32>
    %cst_90 = arith.constant 0.000000e+00 : f32
    %292 = vector.broadcast %cst_90 : f32 to vector<4x256xf32>
    %293 = vector.extract_strided_slice %291 {offsets = [0, 0], sizes = [4, 256], strides = [1, 1]} : vector<4x352xf32> to vector<4x256xf32>
    %294 = vector.broadcast %117 : vector<4x1xf32> to vector<4x256xf32>
    %295 = arith.mulf %294, %293 : vector<4x256xf32>
    %296 = arith.addf %292, %295 : vector<4x256xf32>
    %297 = vector.extract_strided_slice %291 {offsets = [0, 16], sizes = [4, 256], strides = [1, 1]} : vector<4x352xf32> to vector<4x256xf32>
    %298 = vector.broadcast %124 : vector<4x1xf32> to vector<4x256xf32>
    %299 = arith.mulf %298, %297 : vector<4x256xf32>
    %300 = arith.addf %296, %299 : vector<4x256xf32>
    %301 = vector.extract_strided_slice %291 {offsets = [0, 32], sizes = [4, 256], strides = [1, 1]} : vector<4x352xf32> to vector<4x256xf32>
    %302 = vector.broadcast %131 : vector<4x1xf32> to vector<4x256xf32>
    %303 = arith.mulf %302, %301 : vector<4x256xf32>
    %304 = arith.addf %300, %303 : vector<4x256xf32>
    %305 = vector.extract_strided_slice %291 {offsets = [0, 48], sizes = [4, 256], strides = [1, 1]} : vector<4x352xf32> to vector<4x256xf32>
    %306 = vector.broadcast %138 : vector<4x1xf32> to vector<4x256xf32>
    %307 = arith.mulf %306, %305 : vector<4x256xf32>
    %308 = arith.addf %304, %307 : vector<4x256xf32>
    %309 = vector.extract_strided_slice %291 {offsets = [0, 64], sizes = [4, 256], strides = [1, 1]} : vector<4x352xf32> to vector<4x256xf32>
    %310 = vector.broadcast %145 : vector<4x1xf32> to vector<4x256xf32>
    %311 = arith.mulf %310, %309 : vector<4x256xf32>
    %312 = arith.addf %308, %311 : vector<4x256xf32>
    %313 = vector.extract_strided_slice %291 {offsets = [0, 80], sizes = [4, 256], strides = [1, 1]} : vector<4x352xf32> to vector<4x256xf32>
    %314 = vector.broadcast %152 : vector<4x1xf32> to vector<4x256xf32>
    %315 = arith.mulf %314, %313 : vector<4x256xf32>
    %316 = arith.addf %312, %315 : vector<4x256xf32>
    %317 = vector.extract_strided_slice %291 {offsets = [0, 96], sizes = [4, 256], strides = [1, 1]} : vector<4x352xf32> to vector<4x256xf32>
    %318 = vector.broadcast %159 : vector<4x1xf32> to vector<4x256xf32>
    %319 = arith.mulf %318, %317 : vector<4x256xf32>
    %320 = arith.addf %316, %319 : vector<4x256xf32>
    %321 = vector.broadcast %61 : vector<1x256xf32> to vector<4x256xf32>
    %322 = arith.mulf %320, %321 : vector<4x256xf32>
    %323 = arith.addf %290, %322 : vector<4x256xf32>
    %c0_91 = arith.constant 0 : index
    %c3_92 = arith.constant 3 : index
    %324 = vector.load %arg9[%c0_91, %c3_92] : memref<4x384xf32, #tpu.memory_space<vmem>>, vector<4x352xf32>
    %cst_93 = arith.constant 0.000000e+00 : f32
    %325 = vector.broadcast %cst_93 : f32 to vector<4x256xf32>
    %326 = vector.extract_strided_slice %324 {offsets = [0, 0], sizes = [4, 256], strides = [1, 1]} : vector<4x352xf32> to vector<4x256xf32>
    %327 = vector.broadcast %118 : vector<4x1xf32> to vector<4x256xf32>
    %328 = arith.mulf %327, %326 : vector<4x256xf32>
    %329 = arith.addf %325, %328 : vector<4x256xf32>
    %330 = vector.extract_strided_slice %324 {offsets = [0, 16], sizes = [4, 256], strides = [1, 1]} : vector<4x352xf32> to vector<4x256xf32>
    %331 = vector.broadcast %125 : vector<4x1xf32> to vector<4x256xf32>
    %332 = arith.mulf %331, %330 : vector<4x256xf32>
    %333 = arith.addf %329, %332 : vector<4x256xf32>
    %334 = vector.extract_strided_slice %324 {offsets = [0, 32], sizes = [4, 256], strides = [1, 1]} : vector<4x352xf32> to vector<4x256xf32>
    %335 = vector.broadcast %132 : vector<4x1xf32> to vector<4x256xf32>
    %336 = arith.mulf %335, %334 : vector<4x256xf32>
    %337 = arith.addf %333, %336 : vector<4x256xf32>
    %338 = vector.extract_strided_slice %324 {offsets = [0, 48], sizes = [4, 256], strides = [1, 1]} : vector<4x352xf32> to vector<4x256xf32>
    %339 = vector.broadcast %139 : vector<4x1xf32> to vector<4x256xf32>
    %340 = arith.mulf %339, %338 : vector<4x256xf32>
    %341 = arith.addf %337, %340 : vector<4x256xf32>
    %342 = vector.extract_strided_slice %324 {offsets = [0, 64], sizes = [4, 256], strides = [1, 1]} : vector<4x352xf32> to vector<4x256xf32>
    %343 = vector.broadcast %146 : vector<4x1xf32> to vector<4x256xf32>
    %344 = arith.mulf %343, %342 : vector<4x256xf32>
    %345 = arith.addf %341, %344 : vector<4x256xf32>
    %346 = vector.extract_strided_slice %324 {offsets = [0, 80], sizes = [4, 256], strides = [1, 1]} : vector<4x352xf32> to vector<4x256xf32>
    %347 = vector.broadcast %153 : vector<4x1xf32> to vector<4x256xf32>
    %348 = arith.mulf %347, %346 : vector<4x256xf32>
    %349 = arith.addf %345, %348 : vector<4x256xf32>
    %350 = vector.extract_strided_slice %324 {offsets = [0, 96], sizes = [4, 256], strides = [1, 1]} : vector<4x352xf32> to vector<4x256xf32>
    %351 = vector.broadcast %160 : vector<4x1xf32> to vector<4x256xf32>
    %352 = arith.mulf %351, %350 : vector<4x256xf32>
    %353 = arith.addf %349, %352 : vector<4x256xf32>
    %354 = arith.addf %323, %353 : vector<4x256xf32>
    %c0_94 = arith.constant 0 : index
    %c4_95 = arith.constant 4 : index
    %355 = vector.load %arg9[%c0_94, %c4_95] : memref<4x384xf32, #tpu.memory_space<vmem>>, vector<4x352xf32>
    %cst_96 = arith.constant 0.000000e+00 : f32
    %356 = vector.broadcast %cst_96 : f32 to vector<4x256xf32>
    %357 = vector.extract_strided_slice %355 {offsets = [0, 0], sizes = [4, 256], strides = [1, 1]} : vector<4x352xf32> to vector<4x256xf32>
    %358 = vector.broadcast %119 : vector<4x1xf32> to vector<4x256xf32>
    %359 = arith.mulf %358, %357 : vector<4x256xf32>
    %360 = arith.addf %356, %359 : vector<4x256xf32>
    %361 = vector.extract_strided_slice %355 {offsets = [0, 16], sizes = [4, 256], strides = [1, 1]} : vector<4x352xf32> to vector<4x256xf32>
    %362 = vector.broadcast %126 : vector<4x1xf32> to vector<4x256xf32>
    %363 = arith.mulf %362, %361 : vector<4x256xf32>
    %364 = arith.addf %360, %363 : vector<4x256xf32>
    %365 = vector.extract_strided_slice %355 {offsets = [0, 32], sizes = [4, 256], strides = [1, 1]} : vector<4x352xf32> to vector<4x256xf32>
    %366 = vector.broadcast %133 : vector<4x1xf32> to vector<4x256xf32>
    %367 = arith.mulf %366, %365 : vector<4x256xf32>
    %368 = arith.addf %364, %367 : vector<4x256xf32>
    %369 = vector.extract_strided_slice %355 {offsets = [0, 48], sizes = [4, 256], strides = [1, 1]} : vector<4x352xf32> to vector<4x256xf32>
    %370 = vector.broadcast %140 : vector<4x1xf32> to vector<4x256xf32>
    %371 = arith.mulf %370, %369 : vector<4x256xf32>
    %372 = arith.addf %368, %371 : vector<4x256xf32>
    %373 = vector.extract_strided_slice %355 {offsets = [0, 64], sizes = [4, 256], strides = [1, 1]} : vector<4x352xf32> to vector<4x256xf32>
    %374 = vector.broadcast %147 : vector<4x1xf32> to vector<4x256xf32>
    %375 = arith.mulf %374, %373 : vector<4x256xf32>
    %376 = arith.addf %372, %375 : vector<4x256xf32>
    %377 = vector.extract_strided_slice %355 {offsets = [0, 80], sizes = [4, 256], strides = [1, 1]} : vector<4x352xf32> to vector<4x256xf32>
    %378 = vector.broadcast %154 : vector<4x1xf32> to vector<4x256xf32>
    %379 = arith.mulf %378, %377 : vector<4x256xf32>
    %380 = arith.addf %376, %379 : vector<4x256xf32>
    %381 = vector.extract_strided_slice %355 {offsets = [0, 96], sizes = [4, 256], strides = [1, 1]} : vector<4x352xf32> to vector<4x256xf32>
    %382 = vector.broadcast %161 : vector<4x1xf32> to vector<4x256xf32>
    %383 = arith.mulf %382, %381 : vector<4x256xf32>
    %384 = arith.addf %380, %383 : vector<4x256xf32>
    %385 = vector.broadcast %72 : vector<1x256xf32> to vector<4x256xf32>
    %386 = arith.mulf %384, %385 : vector<4x256xf32>
    %387 = arith.addf %354, %386 : vector<4x256xf32>
    %c0_97 = arith.constant 0 : index
    %c5_98 = arith.constant 5 : index
    %388 = vector.load %arg9[%c0_97, %c5_98] : memref<4x384xf32, #tpu.memory_space<vmem>>, vector<4x352xf32>
    %cst_99 = arith.constant 0.000000e+00 : f32
    %389 = vector.broadcast %cst_99 : f32 to vector<4x256xf32>
    %390 = vector.extract_strided_slice %388 {offsets = [0, 0], sizes = [4, 256], strides = [1, 1]} : vector<4x352xf32> to vector<4x256xf32>
    %391 = vector.broadcast %120 : vector<4x1xf32> to vector<4x256xf32>
    %392 = arith.mulf %391, %390 : vector<4x256xf32>
    %393 = arith.addf %389, %392 : vector<4x256xf32>
    %394 = vector.extract_strided_slice %388 {offsets = [0, 16], sizes = [4, 256], strides = [1, 1]} : vector<4x352xf32> to vector<4x256xf32>
    %395 = vector.broadcast %127 : vector<4x1xf32> to vector<4x256xf32>
    %396 = arith.mulf %395, %394 : vector<4x256xf32>
    %397 = arith.addf %393, %396 : vector<4x256xf32>
    %398 = vector.extract_strided_slice %388 {offsets = [0, 32], sizes = [4, 256], strides = [1, 1]} : vector<4x352xf32> to vector<4x256xf32>
    %399 = vector.broadcast %134 : vector<4x1xf32> to vector<4x256xf32>
    %400 = arith.mulf %399, %398 : vector<4x256xf32>
    %401 = arith.addf %397, %400 : vector<4x256xf32>
    %402 = vector.extract_strided_slice %388 {offsets = [0, 48], sizes = [4, 256], strides = [1, 1]} : vector<4x352xf32> to vector<4x256xf32>
    %403 = vector.broadcast %141 : vector<4x1xf32> to vector<4x256xf32>
    %404 = arith.mulf %403, %402 : vector<4x256xf32>
    %405 = arith.addf %401, %404 : vector<4x256xf32>
    %406 = vector.extract_strided_slice %388 {offsets = [0, 64], sizes = [4, 256], strides = [1, 1]} : vector<4x352xf32> to vector<4x256xf32>
    %407 = vector.broadcast %148 : vector<4x1xf32> to vector<4x256xf32>
    %408 = arith.mulf %407, %406 : vector<4x256xf32>
    %409 = arith.addf %405, %408 : vector<4x256xf32>
    %410 = vector.extract_strided_slice %388 {offsets = [0, 80], sizes = [4, 256], strides = [1, 1]} : vector<4x352xf32> to vector<4x256xf32>
    %411 = vector.broadcast %155 : vector<4x1xf32> to vector<4x256xf32>
    %412 = arith.mulf %411, %410 : vector<4x256xf32>
    %413 = arith.addf %409, %412 : vector<4x256xf32>
    %414 = vector.extract_strided_slice %388 {offsets = [0, 96], sizes = [4, 256], strides = [1, 1]} : vector<4x352xf32> to vector<4x256xf32>
    %415 = vector.broadcast %162 : vector<4x1xf32> to vector<4x256xf32>
    %416 = arith.mulf %415, %414 : vector<4x256xf32>
    %417 = arith.addf %413, %416 : vector<4x256xf32>
    %418 = vector.broadcast %83 : vector<1x256xf32> to vector<4x256xf32>
    %419 = arith.mulf %417, %418 : vector<4x256xf32>
    %420 = arith.addf %387, %419 : vector<4x256xf32>
    %c0_100 = arith.constant 0 : index
    %c6_101 = arith.constant 6 : index
    %421 = vector.load %arg9[%c0_100, %c6_101] : memref<4x384xf32, #tpu.memory_space<vmem>>, vector<4x352xf32>
    %cst_102 = arith.constant 0.000000e+00 : f32
    %422 = vector.broadcast %cst_102 : f32 to vector<4x256xf32>
    %423 = vector.extract_strided_slice %421 {offsets = [0, 0], sizes = [4, 256], strides = [1, 1]} : vector<4x352xf32> to vector<4x256xf32>
    %424 = vector.broadcast %121 : vector<4x1xf32> to vector<4x256xf32>
    %425 = arith.mulf %424, %423 : vector<4x256xf32>
    %426 = arith.addf %422, %425 : vector<4x256xf32>
    %427 = vector.extract_strided_slice %421 {offsets = [0, 16], sizes = [4, 256], strides = [1, 1]} : vector<4x352xf32> to vector<4x256xf32>
    %428 = vector.broadcast %128 : vector<4x1xf32> to vector<4x256xf32>
    %429 = arith.mulf %428, %427 : vector<4x256xf32>
    %430 = arith.addf %426, %429 : vector<4x256xf32>
    %431 = vector.extract_strided_slice %421 {offsets = [0, 32], sizes = [4, 256], strides = [1, 1]} : vector<4x352xf32> to vector<4x256xf32>
    %432 = vector.broadcast %135 : vector<4x1xf32> to vector<4x256xf32>
    %433 = arith.mulf %432, %431 : vector<4x256xf32>
    %434 = arith.addf %430, %433 : vector<4x256xf32>
    %435 = vector.extract_strided_slice %421 {offsets = [0, 48], sizes = [4, 256], strides = [1, 1]} : vector<4x352xf32> to vector<4x256xf32>
    %436 = vector.broadcast %142 : vector<4x1xf32> to vector<4x256xf32>
    %437 = arith.mulf %436, %435 : vector<4x256xf32>
    %438 = arith.addf %434, %437 : vector<4x256xf32>
    %439 = vector.extract_strided_slice %421 {offsets = [0, 64], sizes = [4, 256], strides = [1, 1]} : vector<4x352xf32> to vector<4x256xf32>
    %440 = vector.broadcast %149 : vector<4x1xf32> to vector<4x256xf32>
    %441 = arith.mulf %440, %439 : vector<4x256xf32>
    %442 = arith.addf %438, %441 : vector<4x256xf32>
    %443 = vector.extract_strided_slice %421 {offsets = [0, 80], sizes = [4, 256], strides = [1, 1]} : vector<4x352xf32> to vector<4x256xf32>
    %444 = vector.broadcast %156 : vector<4x1xf32> to vector<4x256xf32>
    %445 = arith.mulf %444, %443 : vector<4x256xf32>
    %446 = arith.addf %442, %445 : vector<4x256xf32>
    %447 = vector.extract_strided_slice %421 {offsets = [0, 96], sizes = [4, 256], strides = [1, 1]} : vector<4x352xf32> to vector<4x256xf32>
    %448 = vector.broadcast %163 : vector<4x1xf32> to vector<4x256xf32>
    %449 = arith.mulf %448, %447 : vector<4x256xf32>
    %450 = arith.addf %446, %449 : vector<4x256xf32>
    %451 = vector.broadcast %94 : vector<1x256xf32> to vector<4x256xf32>
    %452 = arith.mulf %450, %451 : vector<4x256xf32>
    %453 = arith.addf %420, %452 : vector<4x256xf32>
    %454 = vector.broadcast %164 : vector<4x1xf32> to vector<4x256xf32>
    %455 = arith.addf %453, %454 : vector<4x256xf32>
    %cst_103 = arith.constant 0.000000e+00 : f32
    %456 = vector.broadcast %cst_103 : f32 to vector<4x256xf32>
    %457 = arith.maximumf %455, %456 : vector<4x256xf32>
    %458 = arith.addf %457, %222 : vector<4x256xf32>
    %459 = arith.truncf %458 : vector<4x256xf32> to vector<4x256xbf16>
    %cst_104 = arith.constant dense<0.000000e+00> : vector<4x256xf32>
    %460 = tpu.matmul %165, %459, %cst_104 {dimension_numbers = #tpu.dot_dimension_numbers<[1], [0], [0], [1], [0, 0, 1, 1], [], []>} : vector<4x4xbf16>, vector<4x256xbf16>, vector<4x256xf32> -> vector<4x256xf32>
    %461 = vector.broadcast %166 : vector<4x1xf32> to vector<4x256xf32>
    %462 = arith.addf %460, %461 : vector<4x256xf32>
    %cst_105 = arith.constant 0.000000e+00 : f32
    %463 = vector.broadcast %cst_105 : f32 to vector<4x256xf32>
    %464 = arith.maximumf %462, %463 : vector<4x256xf32>
    %465 = arith.addf %464, %168 : vector<4x256xf32>
    %c0_106 = arith.constant 0 : index
    %c0_107 = arith.constant 0 : index
    %c0_108 = arith.constant 0 : index
    %466 = vector.load %arg8[%c0_106, %c0_107, %c0_108] : memref<1x4x256xf32, #tpu.memory_space<vmem>>, vector<1x4x256xf32>
    %467 = vector.shape_cast %466 : vector<1x4x256xf32> to vector<4x256xf32>
    %468 = vector.shape_cast %465 : vector<4x256xf32> to vector<1x4x256xf32>
    tpu.vector_store %arg8[%c0_106, %c0_107, %c0_108], %468 {strides = array<i32>} : memref<1x4x256xf32, #tpu.memory_space<vmem>>, vector<1x4x256xf32>,
    return
  }
  func.func @transform_0(%arg0: i32) -> (i32, i32, i32) {
    %c0_i32 = arith.constant 0 : i32
    %c0_i32_0 = arith.constant 0 : i32
    %c0_i32_1 = arith.constant 0 : i32
    return %arg0, %c0_i32, %c0_i32_0 : i32, i32, i32
  }
  func.func @transform_1(%arg0: i32) -> (i32, i32, i32) {
    %c0_i32 = arith.constant 0 : i32
    %c0_i32_0 = arith.constant 0 : i32
    %c0_i32_1 = arith.constant 0 : i32
    %c0_i32_2 = arith.constant 0 : i32
    return %c0_i32, %c0_i32_0, %c0_i32_1 : i32, i32, i32
  }
  func.func @transform_2(%arg0: i32) -> (i32, i32) {
    %c0_i32 = arith.constant 0 : i32
    %c0_i32_0 = arith.constant 0 : i32
    %c0_i32_1 = arith.constant 0 : i32
    return %c0_i32, %c0_i32_0 : i32, i32
  }
  func.func @transform_3(%arg0: i32) -> (i32, i32) {
    %c0_i32 = arith.constant 0 : i32
    %c0_i32_0 = arith.constant 0 : i32
    %c0_i32_1 = arith.constant 0 : i32
    return %c0_i32, %c0_i32_0 : i32, i32
  }
  func.func @transform_4(%arg0: i32) -> (i32, i32) {
    %c0_i32 = arith.constant 0 : i32
    %c0_i32_0 = arith.constant 0 : i32
    %c0_i32_1 = arith.constant 0 : i32
    return %c0_i32, %c0_i32_0 : i32, i32
  }
  func.func @transform_5(%arg0: i32) -> (i32, i32) {
    %c0_i32 = arith.constant 0 : i32
    %c0_i32_0 = arith.constant 0 : i32
    %c0_i32_1 = arith.constant 0 : i32
    return %c0_i32, %c0_i32_0 : i32, i32
  }
  func.func @transform_6(%arg0: i32) -> (i32, i32) {
    %c0_i32 = arith.constant 0 : i32
    %c0_i32_0 = arith.constant 0 : i32
    %c0_i32_1 = arith.constant 0 : i32
    return %c0_i32, %c0_i32_0 : i32, i32
  }
  func.func @transform_7(%arg0: i32) -> (i32, i32, i32) {
    %c0_i32 = arith.constant 0 : i32
    %c0_i32_0 = arith.constant 0 : i32
    %c0_i32_1 = arith.constant 0 : i32
    return %arg0, %c0_i32, %c0_i32_0 : i32, i32, i32
  }
}

</mosaic_0001>

<bundles_post_ra>
// kernel: tpu_custom_call.1
= control target key start
LH: loop header
LB: loop body
LE: loop exit
PB: predicated region body
PF: predicated region fallthrough
CT: control target
= control target key end

     0   :  { %12 = vsyncpa [#allocation4], 0  ;;  %s4100_s0 = inlined_call_operand.vmem [shape: f32[2,4,256], index: 0, kind: input, shape index: {}]   ;;  %s4101_s1 = inlined_call_operand.vmem [shape: bf16[9,4,4], index: 1, kind: input, shape index: {}]   ;;  %s4102_s2 = inlined_call_operand.vmem [shape: f32[4,1], index: 2, kind: input, shape index: {}]   ;;  %s4103_s3 = inlined_call_operand.vmem [shape: f32[4,49], index: 3, kind: input, shape index: {}]   ;;  %s4104_s4 = inlined_call_operand.vmem [shape: f32[4,1], index: 4, kind: input, shape index: {}]   ;;  %s4105_s5 = inlined_call_operand.vmem [shape: bf16[4,4], index: 5, kind: input, shape index: {}]   ;;  %s4106_s6 = inlined_call_operand.vmem [shape: f32[4,1], index: 6, kind: input, shape index: {}]   ;;  %s4107_s7 = inlined_call_operand.hbm [shape: f32[2,4,256], index: 7, kind: output, shape index: {}]  }
   0x1   :  { %14 = vsyncpa [#allocation4 + $0x1], 0  ;;  %s2970_s24 = smov 0   ;;  %s2972_s25 = smov 0  }
   0x2   :  { %s2974_s26 = smov 0   ;;  %s2976_s27 = smov 0  }
   0x3 LB: > { %s2991_s28 = sadd.s32 4294967295, %s2823_s27   ;;  %s2507_s29 = sadd.s32 4294967294, %s2823_s27   ;;  %s2823_s27 = sphi %s2976_s27, %s4215_s27   ;;  %s2819_s26 = sphi %s2974_s26, %s4214_s26   ;;  %s2815_s25 = sphi %s2972_s25, %s4213_s25   ;;  %s2811_s24 = sphi %s2970_s24, %s4212_s24  }
   0x4   : > { %s2995_s30 = sadd.s32 1, %s2823_s27   ;;  %s179_s8 = sadd.s32 1, %s2819_s26 }
   0x5   : > { %s176_s9 = ssub.s32 %s2823_s27, %s2995_s30  ;;  %p189_p0 = scmp.ne.s32.totalorder %s2819_s26, %s2815_s25 }
   0x6   : > { %p177_p1 = scmp.eq.s32.totalorder %s176_s9, 0  ;;  %p190_p2 = scmp.eq.s32.totalorder %s2991_s28, 1 }
   0x7   : > { %p195_p3 = scmp.ne.s32.totalorder %s2815_s25, %s2811_s24  ;;  %p196_p4 = scmp.eq.s32.totalorder %s2507_s29, 1 }
   0x8   : > { %s3006_s10 = scalar_select %p177_p1, %s2819_s26, %s179_s8  }
   0x9   : > { %p3008_p5 = por %p190_p2, %p189_p0  ;;  %p3012_p6 = por %p196_p4, %p195_p3 }
   0xa   : > { %p2510_p7 = scmp.ge.s32.totalorder %s2823_s27, 1  ;;  %p240_p8 = scmp.lt.s32.totalorder %s2823_s27, 3 }
   0xc   : > { %p241_p9 = pnand %p2510_p7, %p240_p8 }
   0xe   : > { %244 = sbr.rel (%p241_p9) target bundleno = 1491 (0x5d3), region = 48 }
  0x13   : > { %p272_p10 = scmp.lt.s32.totalorder %s2991_s28, 1  ;;  %v282_v0 = vlaneseq  ;;  %s2825_s18 = smov 51   ;;  %vm4141_vm3 = vcmask 1043456   ;;  %v4113_v6 = vmov 0.0   ;;  %vm278_vm5 = vcmask 412672  }
  0x14   : > { %s2827_s19 = smov 36   ;;  %s2828_s20 = smov 52   ;;  %vm280_vm6 = vcmask 1043864   ;;  %279 = vst.msk [vmem:[#allocation2] sm:$0xf] %vm278_vm5, %v4113_v6  ;;  %vm424_vm7 = vcmask 1047556  }
  0x15   : > { %s273_s13 = scalar_select %p272_p10, %s2991_s28, 1  ;;  %v283_v1 = vand.u32 127, %v282_v0  ;;  %281 = vst.msk [vmem:[#allocation2 + $0x8] sm:$0xf] %vm280_vm6, %v4113_v6  ;;  %vm420_vm8 = vcmask 416768   ;;  %vm3048_vm9 = vmor %vm424_vm7, %vm280_vm6  ;;  %vm438_vm10 = vcmask 277504  }
  0x16   : > { %s2829_s21 = smov 34   ;;  %s2830_s22 = smov 50   ;;  %vm579_vm11 = vcmask 293888   ;;  %vm653_vm12 = vcmask 408576   ;;  %vm792_vm13 = vcmask 424960   ;;  %vm866_vm14 = vcmask 539648  }
  0x17   : > { %s2563_s14 = sshll.u32 %s273_s13, 3  ;;  %v284_v2 = vadd.s32 128, %v283_v1  ;;  %v3020_v3 = vand.u32 15, %v283_v1  ;;  %s2831_s23 = smov 66   ;;  %vm483_vm15 = vcmask 760832   ;;  %vm1005_vm6 = vcmask 556032  }
  0x18   : > { %s276_s17 = scalar_lea.vmem %s4100_s0, %s2563_s14  ;;  %s2832_s29 = smov 93   ;;  %vm682_vm7 = vcmask 637952  }
  0x19   : > { %v3025_v4 = vld [vmem:[%s276_s17] sm:$0xff]  ;;  %v3027_v5 = vand.u32 15, %v284_v2  ;;  %vm315_vm0 = vcmp.le.s32.totalorder %v3020_v3, 14  ;;  %vm309_vm1 = vcmp.ge.s32.totalorder %v3020_v3, 1  ;;  %s2833_s8 = smov 94   ;;  %s2834_s9 = smov 68  }
  0x1a   : > { %417 = vrot.lane.b32.xlu0 %v3025_v4, %s2825_s18  ;;  %v2516_v7 = vsel %vm315_vm0, 1.0, %v4113_v6  ;;  %v2514_v9 = vsel %vm309_vm1, 1.0, %v4113_v6  ;;  %s2835_s13 = smov 92   ;;  %s2836_s14 = smov 78   ;;  %vm490_vm0 = vcmask 1041408   ;;  %vm486_vm1 = vcmask 31744  }
  0x1b   : > { %vm316_vm2 = vcmp.le.s32.totalorder %v3027_v5, 14  ;;  %vm310_vm4 = vcmp.ge.s32.totalorder %v3027_v5, 1  ;;  %s2837_s15 = smov 77   ;;  %s2838_s16 = smov 76  }
  0x1c   : > { %v2517_v8 = vsel %vm316_vm2, 1.0, %v4113_v6  ;;  %v2515_v10 = vsel %vm310_vm4, 1.0, %v4113_v6  ;;  %s2839_s17 = smov 62   ;;  %vm532_vm2 = vcmask 769024   ;;  %vm608_vm4 = vcmask 752640  }
  0x1d   : > { %v574_v11 = vrot.slane %v2517_v8, 4  ;;  %v432_v12 = vrot.slane %v2515_v10, 4 }
  0x1f   : > { %v3040_v13 = vsel %vm4141_vm3, %v2516_v7, %v574_v11  ;;  %v434_v14 = vsel %vm4141_vm3, %v2514_v9, %v432_v12 }
  0x20   : > { %576 = vrot.lane.b32.xlu1 %v3040_v13, %s2827_s19  ;;  %789 = vrot.lane.b32.xlu2 %v3040_v13, %s2828_s20  ;;  %s2840_s19 = smov 61   ;;  %s2894_s20 = smov 48  }
  0x22   : > { %435 = vrot.lane.b32.xlu0 %v434_v14, %s2829_s21  ;;  %s2891_s21 = smov 96  }
  0x28   : > { %650 = vrot.lane.b32.xlu1 %v434_v14, %s2830_s22  ;;  %863 = vrot.lane.b32.xlu2 %v434_v14, %s2831_s23  ;;  %s4109_s23 = smov 60   ;;  %s2892_s22 = smov 80  }
  0x7a   : > { %v790_v53 = vpop.permute.xlu2 %789 }
  0x7b   : > { %v791_v55 = vrot.slane %v790_v53, 4 }
  0x7d   : > { %v793_v62 = vsel %vm792_vm13, %v791_v55, %v790_v53  ;;  %vm960_vm13 = vcmask 498688  }
  0x82   : > { %v864_v63 = vpop.permute.xlu2 %863 }
  0x83   : > { %v865_v2 = vrot.slane %v864_v63, 4 }
  0x85   : > { %v867_v14 = vsel %vm866_vm14, %v865_v2, %v864_v63  ;;  %vm1034_vm14 = vcmask 490496  }
  0x8c   : > { %v418_v15 = vpop.permute.xlu0 %417 }
  0x8d   : > { %v419_v17 = vrot.slane %v418_v15, 4 }
  0x8f   : > { %v421_v18 = vsel %vm420_vm8, %v419_v17, %v418_v15  ;;  %427 = vst.msk [vmem:[#allocation2 + $0x8] sm:$0xf] %vm278_vm5, %v419_v17 }
  0x90   : > { %426 = vst.msk [vmem:[#allocation2] sm:$0xff] %vm3048_vm9, %v421_v18 }
  0x92   : > { %v577_v26 = vpop.permute.xlu1 %576 }
  0x93   : > { %v578_v27 = vrot.slane %v577_v26, 4 }
  0x94   : > { %v436_v19 = vpop.permute.xlu0 %435 }
  0x95   : > { %v437_v20 = vrot.slane %v436_v19, 4  ;;  %v580_v32 = vsel %vm579_vm11, %v578_v27, %v577_v26  ;;  %vm821_vm11 = vcmask 621568  }
  0x96   : > { %v429_v22 = vld [vmem:[#allocation2 + $0x8] sm:$0xf] }
  0x97   : > { %v3056_v21 = vld [vmem:[#allocation2] sm:$0xff]  ;;  %v439_v23 = vsel %vm438_vm10, %v437_v20, %v436_v19  ;;  %v443_v25 = vmul.f32 %v437_v20, %v429_v22  ;;  %v459_v28 = vld [vmem:[#allocation2 + $0x8] sm:$0xf]  ;;  %vm747_vm10 = vcmask 629760  }
  0x98   : > { %v442_v24 = vmul.f32 %v3056_v21, %v439_v23  ;;  %v571_v34 = vld [vmem:[#allocation2 + $0x8] sm:$0xf]  ;;  %v583_v35 = vmul.f32 %v3056_v21, %v580_v32  ;;  %v796_v1 = vmul.f32 %v793_v62, %v3056_v21  ;;  %v870_v17 = vmul.f32 %v867_v14, %v3056_v21 }
  0x99   : > { %448 = vst [vmem:[#allocation1 + $0x10] ss:$2 sm:$0xff] %v443_v25  ;;  %v584_v37 = vmul.f32 %v578_v27, %v571_v34  ;;  %v649_v45 = vld [vmem:[#allocation2 + $0x8] sm:$0xf] }
  0x9a   : > { %446 = vst [vmem:[#allocation1] ss:$2 sm:$0xff] %v442_v24  ;;  %v651_v33 = vpop.permute.xlu1 %650  ;;  %v723_v56 = vld [vmem:[#allocation2 + $0x8] sm:$0xf] }
  0x9b   : > { %v652_v36 = vrot.slane %v651_v33, 4  ;;  %v788_v0 = vld [vmem:[#allocation2 + $0x8] sm:$0xf] }
  0x9c   : > { %v797_v7 = vmul.f32 %v791_v55, %v788_v0  ;;  %v862_v15 = vld [vmem:[#allocation2 + $0x8] sm:$0xf] }
  0x9d   : > { %v654_v44 = vsel %vm653_vm12, %v652_v36, %v651_v33  ;;  %v658_v49 = vmul.f32 %v652_v36, %v649_v45  ;;  %v871_v18 = vmul.f32 %v865_v2, %v862_v15  ;;  %v936_v26 = vld [vmem:[#allocation2 + $0x8] sm:$0xf]  ;;  %vm895_vm12 = vcmask 506880  }
  0x9e   : > { %v657_v46 = vmul.f32 %v3056_v21, %v654_v44  ;;  %v1001_v0 = vld [vmem:[#allocation2 + $0x8] sm:$0xf] }
  0xa0   : > { %v451_v31 = vld.sshfl [vmem:[#allocation1 + $0x10] sm:$0xff pattern:$0x75316420] }
  0xa1   : > { %v449_v29 = vld.sshfl [vmem:[#allocation1] sm:$0xff pattern:$0x75316420]  ;;  %v450_v30 = vld.sshfl [vmem:[#allocation1 + $0x8] sm:$0xff pattern:$0x75316420]  ;;  %v457_v54 = vpack.c.bf16 %v451_v31, %v451_v31 }
  0xa2   : > { %462 = vst [vmem:[#allocation1] ss:$2 sm:$0xff] %v3056_v21  ;;  %v456_v51 = vpack.c.bf16 %v450_v30, %v450_v30  ;;  %v455_v52 = vpack.c.bf16 %v449_v29, %v449_v29 }
  0xa3   : > { %464 = vst [vmem:[#allocation1 + $0x10] ss:$2 sm:$0xff] %v459_v28 }
  0xa9   : > { %v465_v38 = vld.sshfl [vmem:[#allocation1] sm:$0xff pattern:$0x75316420]  ;;  %v466_v39 = vld.sshfl [vmem:[#allocation1 + $0x8] sm:$0xff pattern:$0x75316420] }
  0xaa   : > { %v467_v40 = vld.sshfl [vmem:[#allocation1 + $0x10] sm:$0xff pattern:$0x75316420]  ;;  %587 = vst [vmem:[#allocation1] ss:$2 sm:$0xff] %v583_v35  ;;  %v472_v41 = vpack.c.bf16 %v466_v39, %v466_v39  ;;  %v471_v42 = vpack.c.bf16 %v465_v38, %v465_v38 }
  0xab   : > { %589 = vst [vmem:[#allocation1 + $0x10] ss:$2 sm:$0xff] %v584_v37  ;;  %v473_v43 = vpack.c.bf16 %v467_v40, %v467_v40 }
  0xac   : > { %479 = vrot.lane.b32.xlu0 %v472_v41, %s2832_s29  ;;  %477 = vrot.lane.b32.xlu2 %v471_v42, %s2832_s29 }
  0xad   : > { %481 = vrot.lane.b32.xlu1 %v473_v43, %s2832_s29 }
  0xb1   : > { %v590_v47 = vld.sshfl [vmem:[#allocation1] sm:$0xff pattern:$0x75316420]  ;;  %v591_v48 = vld.sshfl [vmem:[#allocation1 + $0x8] sm:$0xff pattern:$0x75316420] }
  0xb2   : > { %v592_v50 = vld.sshfl [vmem:[#allocation1 + $0x10] sm:$0xff pattern:$0x75316420]  ;;  %661 = vst [vmem:[#allocation1] ss:$2 sm:$0xff] %v657_v46  ;;  %v597_v61 = vpack.c.bf16 %v591_v48, %v591_v48  ;;  %v596_v11 = vpack.c.bf16 %v590_v47, %v590_v47 }
  0xb3   : > { %663 = vst [vmem:[#allocation1 + $0x10] ss:$2 sm:$0xff] %v658_v49  ;;  %v598_v60 = vpack.c.bf16 %v592_v50, %v592_v50 }
  0xb4   : > { %528 = vrot.lane.b32.xlu0 %v456_v51, %s2833_s8  ;;  %526 = vrot.lane.b32.xlu2 %v455_v52, %s2833_s8  ;;  %v2530_v51 = vld [vmem:[%s4101_s1 + $0x2] sm:$0x3] }
  0xb5   : > { %530 = vrot.lane.b32.xlu1 %v457_v54, %s2833_s8 }
  0xb9   : > { %v664_v57 = vld.sshfl [vmem:[#allocation1] sm:$0xff pattern:$0x75316420]  ;;  %v665_v58 = vld.sshfl [vmem:[#allocation1 + $0x8] sm:$0xff pattern:$0x75316420] }
  0xba   : > { %v666_v59 = vld.sshfl [vmem:[#allocation1 + $0x10] sm:$0xff pattern:$0x75316420]  ;;  %726 = vst [vmem:[#allocation1] ss:$2 sm:$0xff] %v3056_v21  ;;  %v670_v23 = vpack.c.bf16 %v664_v57, %v664_v57 }
  0xbb   : > { %728 = vst [vmem:[#allocation1 + $0x10] ss:$2 sm:$0xff] %v723_v56  ;;  %v672_v12 = vpack.c.bf16 %v666_v59, %v666_v59  ;;  %v393_v59 = vld [vmem:[%s4101_s1] sm:$0x3] }
  0xbc   : > { %1002 = vrot.lane.b32.xlu0 %v3040_v13, %s2834_s9  ;;  %606 = vrot.lane.b32.xlu2 %v598_v60, %s2835_s13  ;;  %v671_v13 = vpack.c.bf16 %v665_v58, %v665_v58  ;;  %s2893_s9 = smov 64  }
  0xbd   : > { %604 = vrot.lane.b32.xlu1 %v597_v61, %s2835_s13 }
  0xc1   : > { %v729_v8 = vld.sshfl [vmem:[#allocation1] sm:$0xff pattern:$0x75316420]  ;;  %v730_v9 = vld.sshfl [vmem:[#allocation1 + $0x8] sm:$0xff pattern:$0x75316420] }
  0xc2   : > { %v731_v10 = vld.sshfl [vmem:[#allocation1 + $0x10] sm:$0xff pattern:$0x75316420]  ;;  %800 = vst [vmem:[#allocation1] ss:$2 sm:$0xff] %v796_v1  ;;  %v736_v25 = vpack.c.bf16 %v730_v9, %v730_v9  ;;  %v735_v30 = vpack.c.bf16 %v729_v8, %v729_v8 }
  0xc3   : > { %802 = vst [vmem:[#allocation1 + $0x10] ss:$2 sm:$0xff] %v797_v7  ;;  %v737_v24 = vpack.c.bf16 %v731_v10, %v731_v10  ;;  %v2531_v10 = vld [vmem:[%s4101_s1 + $0x4] sm:$0x3] }
  0xc4   : > { %602 = vrot.lane.b32.xlu0 %v596_v11, %s2835_s13  ;;  %680 = vrot.lane.b32.xlu2 %v672_v12, %s2836_s14 }
  0xc5   : > { %678 = vrot.lane.b32.xlu1 %v671_v13, %s2836_s14 }
  0xc9   : > { %v803_v19 = vld.sshfl [vmem:[#allocation1] sm:$0xff pattern:$0x75316420]  ;;  %v804_v20 = vld.sshfl [vmem:[#allocation1 + $0x8] sm:$0xff pattern:$0x75316420] }
  0xca   : > { %v805_v22 = vld.sshfl [vmem:[#allocation1 + $0x10] sm:$0xff pattern:$0x75316420]  ;;  %874 = vst [vmem:[#allocation1] ss:$2 sm:$0xff] %v870_v17  ;;  %v810_v32 = vpack.c.bf16 %v804_v20, %v804_v20  ;;  %v809_v33 = vpack.c.bf16 %v803_v19, %v803_v19 }
  0xcb   : > { %876 = vst [vmem:[#allocation1 + $0x10] ss:$2 sm:$0xff] %v871_v18  ;;  %v811_v31 = vpack.c.bf16 %v805_v22, %v805_v22  ;;  %v2532_v19 = vld [vmem:[%s4101_s1 + $0x6] sm:$0x3] }
  0xcc   : > { %676 = vrot.lane.b32.xlu0 %v670_v23, %s2836_s14  ;;  %745 = vrot.lane.b32.xlu2 %v737_v24, %s2837_s15 }
  0xcd   : > { %743 = vrot.lane.b32.xlu1 %v736_v25, %s2837_s15 }
  0xd1   : > { %v877_v27 = vld.sshfl [vmem:[#allocation1] sm:$0xff pattern:$0x75316420]  ;;  %v878_v28 = vld.sshfl [vmem:[#allocation1 + $0x8] sm:$0xff pattern:$0x75316420] }
  0xd2   : > { %v879_v29 = vld.sshfl [vmem:[#allocation1 + $0x10] sm:$0xff pattern:$0x75316420]  ;;  %939 = vst [vmem:[#allocation1] ss:$2 sm:$0xff] %v3056_v21  ;;  %v884_v35 = vpack.c.bf16 %v878_v28, %v878_v28  ;;  %v883_v38 = vpack.c.bf16 %v877_v27, %v877_v27 }
  0xd3   : > { %941 = vst [vmem:[#allocation1 + $0x10] ss:$2 sm:$0xff] %v936_v26  ;;  %v885_v34 = vpack.c.bf16 %v879_v29, %v879_v29 }
  0xd4   : > { %741 = vrot.lane.b32.xlu0 %v735_v30, %s2837_s15  ;;  %819 = vrot.lane.b32.xlu2 %v811_v31, %s2838_s16 }
  0xd5   : > { %817 = vrot.lane.b32.xlu1 %v810_v32, %s2838_s16  ;;  %v2533_v32 = vld [vmem:[%s4101_s1 + $0x8] sm:$0x3] }
  0xd9   : > { %v943_v37 = vld.sshfl [vmem:[#allocation1 + $0x8] sm:$0xff pattern:$0x75316420]  ;;  %v942_v41 = vld.sshfl [vmem:[#allocation1] sm:$0xff pattern:$0x75316420] }
  0xda   : > { %v944_v36 = vld.sshfl [vmem:[#allocation1 + $0x10] sm:$0xff pattern:$0x75316420]  ;;  %v949_v40 = vpack.c.bf16 %v943_v37, %v943_v37  ;;  %v948_v42 = vpack.c.bf16 %v942_v41, %v942_v41 }
  0xdb   : > { %v950_v39 = vpack.c.bf16 %v944_v36, %v944_v36 }
  0xdc   : > { %815 = vrot.lane.b32.xlu0 %v809_v33, %s2838_s16  ;;  %893 = vrot.lane.b32.xlu2 %v885_v34, %s2839_s17  ;;  %v2842_v33 = vmov 14  }
  0xdd   : > { %891 = vrot.lane.b32.xlu1 %v884_v35, %s2839_s17  ;;  %2711 = vset.pattern.permute.xlu0 %v2842_v33  ;;  %v3138_v35 = vld [vmem:[%s4103_s3] sm:$0xf] }
  0xe4   : > { %889 = vrot.lane.b32.xlu0 %v883_v38, %s2839_s17  ;;  %958 = vrot.lane.b32.xlu2 %v950_v39, %s2840_s19 }
  0xe5   : > { %956 = vrot.lane.b32.xlu1 %v949_v40, %s2840_s19 }
  0xec   : > { %954 = vrot.lane.b32.xlu0 %v948_v42, %s2840_s19  ;;  %v2534_v42 = vld [vmem:[%s4101_s1 + $0xa] sm:$0x3] }
 0x106   : > { %v478_v43 = vpop.permute.xlu2 %477 }
 0x10e   : > { %v527_v44 = vpop.permute.xlu2 %526 }
 0x116   : > { %v607_v52 = vpop.permute.xlu2 %606 }
 0x11e   : > { %v480_v45 = vpop.permute.xlu0 %479  ;;  %v681_v61 = vpop.permute.xlu2 %680 }
 0x11f   : > { %v482_v46 = vpop.permute.xlu1 %481  ;;  %v484_v47 = vsel %vm483_vm15, %v478_v43, %v480_v45 }
 0x120   : > { %v492_v48 = vsel %vm490_vm0, %v484_v47, 0  ;;  %v485_v49 = vsel %vm483_vm15, %v480_v45, %v482_v46  ;;  %v2843_v45 = vmov 28  }
 0x121   : > { %504 = vmatpush.bf16.msra.mxu0 %v492_v48  ;;  %v495_v50 = vsel %vm490_vm0, %v485_v49, 0 }
 0x122   : > { %517 = vmatpush.bf16.msra.mxu1 %v495_v50 }
 0x124   : > { %2538 = vmatmul.msk.bf16.vlgmr.msra.gmra.mxu0 %vm486_vm1, %v2530_v51 }
 0x125   : > { %2539 = vmatmul.msk.bf16.vlgmr.msra.gmra.mxu1 %vm486_vm1, %v2530_v51  ;;  %v2535_v51 = vld [vmem:[%s4101_s1 + $0xc] sm:$0x3] }
 0x126   : > { %v529_v53 = vpop.permute.xlu0 %528  ;;  %v746_v17 = vpop.permute.xlu2 %745 }
 0x127   : > { %v531_v54 = vpop.permute.xlu1 %530  ;;  %v533_v55 = vsel %vm532_vm2, %v527_v44, %v529_v53 }
 0x128   : > { %v539_v56 = vsel %vm490_vm0, %v533_v55, 0  ;;  %v534_v57 = vsel %vm532_vm2, %v529_v53, %v531_v54 }
 0x129   : > { %551 = vmatpush.bf16.msra.mxu2 %v539_v56  ;;  %v542_v58 = vsel %vm490_vm0, %v534_v57, 0  ;;  %v2844_v56 = vmov 42  }
 0x12a   : > { %564 = vmatpush.bf16.msra.mxu3 %v542_v58 }
 0x12c   : > { %2540 = vmatmul.msk.bf16.vlgmr.msra.gmra.mxu2 %vm486_vm1, %v393_v59 }
 0x12d   : > { %2541 = vmatmul.msk.bf16.vlgmr.msra.gmra.mxu3 %vm486_vm1, %v393_v59 }
 0x12e   : > { %v1003_v60 = vpop.permute.xlu0 %1002  ;;  %v820_v34 = vpop.permute.xlu2 %819 }
 0x12f   : > { %v605_v62 = vpop.permute.xlu1 %604  ;;  %v1004_v63 = vrot.slane %v1003_v60, 4 }
 0x130   : > { %v610_v1 = vsel %vm608_vm4, %v605_v62, %v607_v52 }
 0x131   : > { %v1006_v2 = vsel %vm1005_vm6, %v1004_v63, %v1003_v60  ;;  %v1010_v7 = vmul.f32 %v1004_v63, %v1001_v0  ;;  %v618_v8 = vsel %vm490_vm0, %v610_v1, 0  ;;  %v2536_v60 = vld [vmem:[%s4101_s1 + $0xe] sm:$0x3]  ;;  %v2845_v0 = vmov 8  }
 0x132   : > { %v1009_v9 = vmul.f32 %v1006_v2, %v3056_v21  ;;  %640 = vmatpush.bf16.msrb.mxu1 %v618_v8  ;;  %v2846_v1 = vmov 22   ;;  %v2847_v2 = vmov 36   ;;  %v2849_v8 = vmov 2  }
 0x133   : > { %1015 = vst [vmem:[#allocation1 + $0x10] ss:$2 sm:$0xff] %v1010_v7  ;;  %v2848_v7 = vmov 21   ;;  %vm1204_vm6 = vcmask 523264  }
 0x134   : > { %1013 = vst [vmem:[#allocation1] ss:$2 sm:$0xff] %v1009_v9  ;;  %2712 = vset.pattern.permute.xlu2 %v2848_v7  ;;  %v2850_v9 = vmov 16  }
 0x135   : > { %2543 = vmatmul.msk.bf16.vlgmr.msrb.gmra.mxu1 %vm486_vm1, %v2531_v10 }
 0x136   : > { %v603_v11 = vpop.permute.xlu0 %602  ;;  %v894_v43 = vpop.permute.xlu2 %893 }
 0x137   : > { %v679_v12 = vpop.permute.xlu1 %678  ;;  %v609_v13 = vsel %vm608_vm4, %v603_v11, %v605_v62  ;;  %v2851_v11 = vmov 35  }
 0x138   : > { %v684_v14 = vsel %vm682_vm7, %v679_v12, %v681_v61  ;;  %v615_v15 = vsel %vm490_vm0, %v609_v13, 0  ;;  %v2853_v13 = vmov 30  }
 0x139   : > { %v692_v21 = vsel %vm490_vm0, %v684_v14, 0  ;;  %627 = vmatpush.bf16.msrb.mxu0 %v615_v15  ;;  %v2854_v14 = vmov 1  }
 0x13a   : > { %v1018_v18 = vld.sshfl [vmem:[#allocation1 + $0x10] sm:$0xff pattern:$0x75316420]  ;;  %714 = vmatpush.bf16.msrb.mxu3 %v692_v21  ;;  %v2855_v21 = vmov 44  }
 0x13b   : > { %v1016_v20 = vld.sshfl [vmem:[#allocation1] sm:$0xff pattern:$0x75316420]  ;;  %v1017_v22 = vld.sshfl [vmem:[#allocation1 + $0x8] sm:$0xff pattern:$0x75316420]  ;;  %v1024_v23 = vpack.c.bf16 %v1018_v18, %v1018_v18 }
 0x13c   : > { %v1023_v24 = vpack.c.bf16 %v1017_v22, %v1017_v22  ;;  %v1022_v25 = vpack.c.bf16 %v1016_v20, %v1016_v20  ;;  %2542 = vmatmul.msk.bf16.vlgmr.msrb.gmra.mxu0 %vm486_vm1, %v2531_v10  ;;  %v410_v10 = vld [vmem:[%s4102_s2] sm:$0xf]  ;;  %v2856_v18 = vmov 15   ;;  %v2857_v22 = vmov 10  }
 0x13d   : > { %1032 = vrot.lane.b32.xlu2 %v1024_v23, %s4109_s23  ;;  %2545 = vmatmul.msk.bf16.vlgmr.msrb.gmra.mxu3 %vm486_vm1, %v2532_v19 }
 0x13e   : > { %1030 = vrot.lane.b32.xlu1 %v1023_v24, %s4109_s23  ;;  %1028 = vrot.lane.b32.xlu0 %v1022_v25, %s4109_s23  ;;  %v677_v26 = vpop.permute.xlu0 %676  ;;  %v959_v53 = vpop.permute.xlu2 %958  ;;  %s2901_s23 = smov 31  }
 0x13f   : > { %v744_v27 = vpop.permute.xlu1 %743  ;;  %v683_v28 = vsel %vm682_vm7, %v677_v26, %v679_v12  ;;  %v4112_v12 = vmov 0  }
 0x140   : > { %v749_v29 = vsel %vm747_vm10, %v744_v27, %v746_v17  ;;  %v689_v30 = vsel %vm490_vm0, %v683_v28, 0  ;;  %2709 = vset.pattern.permute.xlu1 %v4112_v12 }
 0x141   : > { %v757_v31 = vsel %vm490_vm0, %v749_v29, 0  ;;  %701 = vmatpush.bf16.msrb.mxu2 %v689_v30 }
 0x142   : > { %779 = vmatpush.bf16.msra.mxu1 %v757_v31 }
 0x144   : > { %2544 = vmatmul.msk.bf16.vlgmr.msrb.gmra.mxu2 %vm486_vm1, %v2532_v19 }
 0x145   : > { %2547 = vmatmul.msk.bf16.vlgmr.msra.gmra.mxu1 %vm486_vm1, %v2533_v32  ;;  %1164 = vperm.xlu2 %2712, %v3138_v35  }
 0x146   : > { %v742_v36 = vpop.permute.xlu0 %741  ;;  %1139 = vperm.xlu0 %2711, %v3138_v35   ;;  %1076 = vperm.xlu1 %2709, %v410_v10  }
 0x147   : > { %v818_v37 = vpop.permute.xlu1 %817  ;;  %v748_v38 = vsel %vm747_vm10, %v742_v36, %v744_v27 }
 0x148   : > { %v823_v39 = vsel %vm821_vm11, %v818_v37, %v820_v34  ;;  %v754_v40 = vsel %vm490_vm0, %v748_v38, 0  ;;  %v2858_v34 = vmov 29  }
 0x149   : > { %v831_v41 = vsel %vm490_vm0, %v823_v39, 0  ;;  %766 = vmatpush.bf16.msra.mxu0 %v754_v40  ;;  %v2859_v39 = vmov 24  }
 0x14a   : > { %853 = vmatpush.bf16.msra.mxu3 %v831_v41 }
 0x14c   : > { %2546 = vmatmul.msk.bf16.vlgmr.msra.gmra.mxu0 %vm486_vm1, %v2533_v32 }
 0x14d   : > { %2549 = vmatmul.msk.bf16.vlgmr.msra.gmra.mxu3 %vm486_vm1, %v2534_v42  ;;  %2714 = vset.pattern.permute.xlu2 %v2851_v11 }
 0x14e   : > { %v816_v44 = vpop.permute.xlu0 %815  ;;  %2713 = vset.pattern.permute.xlu0 %v2843_v45  ;;  %1214 = vperm.xlu2 %2714, %v3138_v35   ;;  %v2860_v45 = vmov 43  }
 0x14f   : > { %v892_v46 = vpop.permute.xlu1 %891  ;;  %v822_v47 = vsel %vm821_vm11, %v816_v44, %v818_v37  ;;  %1189 = vperm.xlu0 %2713, %v3138_v35   ;;  %v2537_v37 = vld [vmem:[%s4101_s1 + $0x10] sm:$0x3] }
 0x150   : > { %v897_v48 = vsel %vm895_vm12, %v892_v46, %v894_v43  ;;  %v828_v49 = vsel %vm490_vm0, %v822_v47, 0 }
 0x151   : > { %v905_v50 = vsel %vm490_vm0, %v897_v48, 0  ;;  %840 = vmatpush.bf16.msra.mxu2 %v828_v49 }
 0x152   : > { %927 = vmatpush.bf16.msrb.mxu1 %v905_v50 }
 0x154   : > { %2548 = vmatmul.msk.bf16.vlgmr.msra.gmra.mxu2 %vm486_vm1, %v2534_v42 }
 0x155   : > { %2551 = vmatmul.msk.bf16.vlgmr.msrb.gmra.mxu1 %vm486_vm1, %v2535_v51 }
 0x156   : > { %v890_v52 = vpop.permute.xlu0 %889  ;;  %2716 = vset.pattern.permute.xlu2 %v2854_v14 }
 0x157   : > { %v957_v54 = vpop.permute.xlu1 %956  ;;  %v896_v55 = vsel %vm895_vm12, %v890_v52, %v892_v46  ;;  %2715 = vset.pattern.permute.xlu0 %v2844_v56  ;;  %1270 = vperm.xlu2 %2716, %v3138_v35   ;;  %v2861_v46 = vmov 38   ;;  %v2862_v52 = vmov 9  }
 0x158   : > { %v962_v57 = vsel %vm960_vm13, %v957_v54, %v959_v53  ;;  %v902_v58 = vsel %vm490_vm0, %v896_v55, 0  ;;  %1239 = vperm.xlu0 %2715, %v3138_v35   ;;  %v2863_v55 = vmov 4  }
 0x159   : > { %v970_v59 = vsel %vm490_vm0, %v962_v57, 0  ;;  %914 = vmatpush.bf16.msrb.mxu0 %v902_v58 }
 0x15a   : > { %992 = vmatpush.bf16.msrb.mxu3 %v970_v59 }
 0x15c   : > { %2550 = vmatmul.msk.bf16.vlgmr.msrb.gmra.mxu0 %vm486_vm1, %v2535_v51 }
 0x15d   : > { %2553 = vmatmul.msk.bf16.vlgmr.msrb.gmra.mxu3 %vm486_vm1, %v2536_v60 }
 0x15e   : > { %v955_v61 = vpop.permute.xlu0 %954 }
 0x15f   : > { %v961_v62 = vsel %vm960_vm13, %v955_v61, %v957_v54  ;;  %2718 = vset.pattern.permute.xlu2 %v2856_v18  ;;  %v2868_v18 = vmov 3  }
 0x160   : > { %v967_v63 = vsel %vm490_vm0, %v961_v62, 0  ;;  %2717 = vset.pattern.permute.xlu0 %v2845_v0  ;;  %1322 = vperm.xlu2 %2718, %v3138_v35   ;;  %v2865_v0 = vmov 18  }
 0x161   : > { %979 = vmatpush.bf16.msrb.mxu2 %v967_v63  ;;  %1297 = vperm.xlu0 %2717, %v3138_v35  }
 0x164   : > { %2552 = vmatmul.msk.bf16.vlgmr.msrb.gmra.mxu2 %vm486_vm1, %v2536_v60  ;;  %v2864_v60 = vmov 23  }
 0x168   : > { %2720 = vset.pattern.permute.xlu2 %v2858_v34  ;;  %v2875_v34 = vmov 33  }
 0x169   : > { %2719 = vset.pattern.permute.xlu0 %v2846_v1  ;;  %1372 = vperm.xlu2 %2720, %v3138_v35  }
 0x16a   : > { %1347 = vperm.xlu0 %2719, %v3138_v35  }
 0x171   : > { %2722 = vset.pattern.permute.xlu2 %v2860_v45 }
 0x172   : > { %2721 = vset.pattern.permute.xlu0 %v2847_v2  ;;  %1422 = vperm.xlu2 %2722, %v3138_v35  }
 0x173   : > { %1397 = vperm.xlu0 %2721, %v3138_v35  }
 0x17a   : > { %2724 = vset.pattern.permute.xlu2 %v2862_v52 }
 0x17b   : > { %2723 = vset.pattern.permute.xlu0 %v2849_v8  ;;  %1480 = vperm.xlu2 %2724, %v3138_v35  }
 0x17c   : > { %1453 = vperm.xlu0 %2723, %v3138_v35  }
 0x183   : > { %2726 = vset.pattern.permute.xlu2 %v2864_v60 }
 0x184   : > { %2725 = vset.pattern.permute.xlu0 %v2850_v9  ;;  %1530 = vperm.xlu2 %2726, %v3138_v35   ;;  %v2866_v9 = vmov 37  }
 0x185   : > { %1505 = vperm.xlu0 %2725, %v3138_v35  }
 0x18c   : > { %2728 = vset.pattern.permute.xlu2 %v2866_v9 }
 0x18d   : > { %2727 = vset.pattern.permute.xlu0 %v2853_v13  ;;  %1580 = vperm.xlu2 %2728, %v3138_v35  }
 0x18e   : > { %1555 = vperm.xlu0 %2727, %v3138_v35  }
 0x195   : > { %2730 = vset.pattern.permute.xlu2 %v2868_v18 }
 0x196   : > { %2729 = vset.pattern.permute.xlu0 %v2855_v21  ;;  %1636 = vperm.xlu2 %2730, %v3138_v35  }
 0x197   : > { %1605 = vperm.xlu0 %2729, %v3138_v35   ;;  %v1033_v23 = vpop.permute.xlu2 %1032 }
 0x19f   : > { %2731 = vset.pattern.permute.xlu0 %v2857_v22 }
 0x1a0   : > { %1663 = vperm.xlu0 %2731, %v3138_v35  }
 0x1a1   : > { %v506_v15 = vpop.f32.mrf.mxu0 }
 0x1a2   : > { %v519_v17 = vpop.f32.mrf.mxu1 }
 0x1a8   : > { %2733 = vset.pattern.permute.xlu0 %v2859_v39 }
 0x1a9   : > { %v508_v19 = vpop.f32.mrf.mxu0  ;;  %1713 = vperm.xlu0 %2733, %v3138_v35  }
 0x1aa   : > { %v521_v20 = vpop.f32.mrf.mxu1 }
 0x1af   : > { %v553_v24 = vpop.f32.mrf.mxu2 }
 0x1b0   : > { %v1031_v25 = vpop.permute.xlu1 %1030  ;;  %v1029_v26 = vpop.permute.xlu0 %1028  ;;  %v554_v27 = vadd.f32 %v553_v24, %v506_v15 }
 0x1b1   : > { %v1036_v28 = vsel %vm1034_vm14, %v1031_v25, %v1033_v23  ;;  %v1035_v29 = vsel %vm1034_vm14, %v1029_v26, %v1031_v25  ;;  %v566_v30 = vpop.f32.mrf.mxu3  ;;  %2735 = vset.pattern.permute.xlu0 %v2861_v46  ;;  %v2869_v23 = vmov 46   ;;  %v2870_v26 = vmov 17  }
 0x1b2   : > { %v1041_v31 = vsel %vm490_vm0, %v1035_v29, 0  ;;  %v1044_v32 = vsel %vm490_vm0, %v1036_v28, 0  ;;  %v567_v33 = vadd.f32 %v566_v30, %v519_v17  ;;  %v642_v36 = vpop.f32.mrf.mxu1  ;;  %1763 = vperm.xlu0 %2735, %v3138_v35   ;;  %v2867_v17 = vmov 32   ;;  %2732 = vset.pattern.permute.xlu2 %v2870_v26 }
 0x1b3   : > { %1053 = vmatpush.bf16.msra.mxu0 %v1041_v31  ;;  %1066 = vmatpush.bf16.msra.mxu1 %v1044_v32  ;;  %v2871_v28 = vmov 13   ;;  %v2872_v30 = vmov 31   ;;  %v3215_v31 = vpop.permute.xlu2 %1164  ;;  %v2873_v32 = vmov 26  }
 0x1b4   : > { %v647_v38 = vadd.f32 %v642_v36, %v567_v33  ;;  %1688 = vperm.xlu2 %2732, %v3138_v35   ;;  %v2874_v33 = vmov 45  }
 0x1b6   : > { %2554 = vmatmul.msk.bf16.vlgmr.msra.gmra.mxu0 %vm486_vm1, %v2537_v37  ;;  %2555 = vmatmul.msk.bf16.vlgmr.msra.gmra.mxu1 %vm486_vm1, %v2537_v37  ;;  %v2876_v37 = vmov 11  }
 0x1b7   : > { %v555_v40 = vpop.f32.mrf.mxu2 }
 0x1b8   : > { %v2878_v40 = vmov 25   ;;  %v1077_v46 = vpop.permute.xlu1 %1076  ;;  %v3264_v9 = vpop.permute.xlu0 %1139 }
 0x1b9   : > { %v568_v41 = vpop.f32.mrf.mxu3  ;;  %v629_v42 = vpop.f32.mrf.mxu0 }
 0x1ba   : > { %v646_v43 = vadd.f32 %v629_v42, %v554_v27  ;;  %v644_v44 = vpop.f32.mrf.mxu1  ;;  %2737 = vset.pattern.permute.xlu0 %v2863_v55  ;;  %v2879_v41 = vmov 47  }
 0x1bb   : > { %1817 = vperm.xlu0 %2737, %v3138_v35   ;;  %v3219_v36 = vpop.permute.xlu2 %1214 }
 0x1bc   : > { %2734 = vset.pattern.permute.xlu2 %v2872_v30 }
 0x1bd   : > { %1738 = vperm.xlu2 %2734, %v3138_v35  }
 0x1c1   : > { %v716_v47 = vpop.f32.mrf.mxu3  ;;  %v631_v48 = vpop.f32.mrf.mxu0 }
 0x1c2   : > { %v721_v49 = vadd.f32 %v716_v47, %v647_v38  ;;  %v781_v50 = vpop.f32.mrf.mxu1  ;;  %v2877_v38 = vmov 40  }
 0x1c3   : > { %2739 = vset.pattern.permute.xlu0 %v2865_v0  ;;  %v3224_v39 = vpop.permute.xlu2 %1270  ;;  %v2883_v0 = vmov 5  }
 0x1c4   : > { %v786_v51 = vadd.f32 %v781_v50, %v721_v49  ;;  %1869 = vperm.xlu0 %2739, %v3138_v35  }
 0x1c5   : > { %2736 = vset.pattern.permute.xlu2 %v2874_v33 }
 0x1c6   : > { %1788 = vperm.xlu2 %2736, %v3138_v35  }
 0x1c7   : > { %v703_v53 = vpop.f32.mrf.mxu2 }
 0x1c8   : > { %v720_v54 = vadd.f32 %v703_v53, %v646_v43  ;;  %v2880_v43 = vmov 39  }
 0x1c9   : > { %v718_v56 = vpop.f32.mrf.mxu3  ;;  %v768_v57 = vpop.f32.mrf.mxu0 }
 0x1ca   : > { %v785_v58 = vadd.f32 %v768_v57, %v720_v54  ;;  %v783_v59 = vpop.f32.mrf.mxu1 }
 0x1cb   : > { %v3228_v42 = vpop.permute.xlu2 %1322  ;;  %v2881_v59 = vmov 7  }
 0x1cc   : > { %2741 = vset.pattern.permute.xlu0 %v2867_v17  ;;  %2710 = vset.pattern.permute.xlu1 %v2881_v59  ;;  %v2886_v17 = vmov 12  }
 0x1cd   : > { %1919 = vperm.xlu0 %2741, %v3138_v35   ;;  %1113 = vperm.xlu1 %2710, %v3138_v35  }
 0x1ce   : > { %2738 = vset.pattern.permute.xlu2 %v2876_v37 }
 0x1cf   : > { %v705_v61 = vpop.f32.mrf.mxu2  ;;  %1844 = vperm.xlu2 %2738, %v3138_v35  }
 0x1d1   : > { %v855_v62 = vpop.f32.mrf.mxu3  ;;  %v770_v63 = vpop.f32.mrf.mxu0 }
 0x1d2   : > { %v860_v1 = vadd.f32 %v855_v62, %v786_v51  ;;  %v929_v2 = vpop.f32.mrf.mxu1  ;;  %v2882_v62 = vmov 19  }
 0x1d3   : > { %v3233_v44 = vpop.permute.xlu2 %1372 }
 0x1d4   : > { %v934_v7 = vadd.f32 %v929_v2, %v860_v1  ;;  %v2884_v1 = vmov 20  }
 0x1d5   : > { %2743 = vset.pattern.permute.xlu0 %v2869_v23  ;;  %2746 = vset.pattern.permute.xlu1 %v2882_v62  ;;  %v2889_v23 = vmov 41  }
 0x1d6   : > { %1969 = vperm.xlu0 %2743, %v3138_v35   ;;  %2052 = vperm.xlu1 %2746, %v3138_v35  }
 0x1d7   : > { %v842_v8 = vpop.f32.mrf.mxu2  ;;  %2740 = vset.pattern.permute.xlu2 %v2878_v40 }
 0x1d8   : > { %v859_v10 = vadd.f32 %v842_v8, %v785_v58  ;;  %1894 = vperm.xlu2 %2740, %v3138_v35  }
 0x1d9   : > { %v857_v11 = vpop.f32.mrf.mxu3  ;;  %v916_v13 = vpop.f32.mrf.mxu0 }
 0x1da   : > { %v933_v14 = vadd.f32 %v916_v13, %v859_v10  ;;  %v931_v15 = vpop.f32.mrf.mxu1  ;;  %v3268_v11 = vpop.permute.xlu0 %1189 }
 0x1db   : > { %v3235_v45 = vpop.permute.xlu2 %1422 }
 0x1de   : > { %2748 = vset.pattern.permute.xlu0 %v2871_v28  ;;  %2750 = vset.pattern.permute.xlu1 %v2884_v1 }
 0x1df   : > { %v844_v21 = vpop.f32.mrf.mxu2  ;;  %2210 = vperm.xlu0 %2748, %v3138_v35   ;;  %2235 = vperm.xlu1 %2750, %v3138_v35  }
 0x1e0   : > { %2742 = vset.pattern.permute.xlu2 %v2880_v43 }
 0x1e1   : > { %v994_v19 = vpop.f32.mrf.mxu3  ;;  %v918_v20 = vpop.f32.mrf.mxu0  ;;  %1944 = vperm.xlu2 %2742, %v3138_v35  }
 0x1e2   : > { %v999_v22 = vadd.f32 %v994_v19, %v934_v7  ;;  %v2885_v7 = vmov 27   ;;  %v2887_v19 = vmov 34   ;;  %v2888_v20 = vmov 6  }
 0x1e3   : > { %v3237_v47 = vpop.permute.xlu2 %1480 }
 0x1e7   : > { %v981_v24 = vpop.f32.mrf.mxu2  ;;  %2749 = vset.pattern.permute.xlu0 %v2873_v32  ;;  %2752 = vset.pattern.permute.xlu1 %v2885_v7 }
 0x1e8   : > { %v998_v25 = vadd.f32 %v981_v24, %v933_v14  ;;  %2077 = vperm.xlu0 %2749, %v3138_v35   ;;  %2260 = vperm.xlu1 %2752, %v3138_v35   ;;  %v3272_v14 = vpop.permute.xlu0 %1239 }
 0x1e9   : > { %v996_v27 = vpop.f32.mrf.mxu3  ;;  %2744 = vset.pattern.permute.xlu2 %v2883_v0 }
 0x1eb   : > { %v3252_v61 = vpop.permute.xlu2 %1530 }
 0x1ef   : > { %v983_v29 = vpop.f32.mrf.mxu2 }
 0x1f0   : > { %2751 = vset.pattern.permute.xlu0 %v2875_v34  ;;  %v3277_v21 = vpop.permute.xlu0 %1297  ;;  %2754 = vset.pattern.permute.xlu1 %v2887_v19 }
 0x1f1   : > { %2102 = vperm.xlu0 %2751, %v3138_v35   ;;  %2285 = vperm.xlu1 %2754, %v3138_v35  }
 0x1f3   : > { %v3255_v63 = vpop.permute.xlu2 %1580 }
 0x1f9   : > { %2753 = vset.pattern.permute.xlu0 %v2877_v38  ;;  %2757 = vset.pattern.permute.xlu1 %v2889_v23 }
 0x1fa   : > { %2127 = vperm.xlu0 %2753, %v3138_v35   ;;  %2310 = vperm.xlu1 %2757, %v3138_v35  }
 0x1fb   : > { %v3259_v2 = vpop.permute.xlu2 %1636 }
 0x202   : > { %2755 = vset.pattern.permute.xlu0 %v2879_v41 }
 0x203   : > { %2152 = vperm.xlu0 %2755, %v3138_v35  }
 0x20b   : > { %2756 = vset.pattern.permute.xlu0 %v4112_v12 }
 0x20c   : > { %1099 = vperm.xlu0 %2756, %v3138_v35  }
 0x20e   : > { %v3262_v8 = vpop.permute.xlu2 %1688 }
 0x217   : > { %v3266_v10 = vpop.permute.xlu2 %1738 }
 0x218   : > { %4152 = vst [vmem:[#allocation8_spill] sm:$0xff] %v3266_v10 }
 0x220   : > { %v3270_v13 = vpop.permute.xlu2 %1788 }
 0x221   : > { %4153 = vst [vmem:[#allocation9_spill] sm:$0xff] %v3270_v13 }
 0x229   : > { %v3274_v15 = vpop.permute.xlu2 %1844 }
 0x22a   : > { %4154 = vst [vmem:[#allocation10_spill] sm:$0xff] %v3274_v15 }
 0x232   : > { %v3279_v18 = vpop.permute.xlu2 %1894 }
 0x233   : > { %v1055_v48 = vpop.f32.mrf.mxu0  ;;  %v1068_v49 = vpop.f32.mrf.mxu1  ;;  %4155 = vst [vmem:[#allocation11_spill] sm:$0xff] %v3279_v18 }
 0x234   : > { %v1072_v50 = vadd.f32 %v1055_v48, %v998_v25  ;;  %v1073_v51 = vadd.f32 %v1068_v49, %v999_v22  ;;  %v3283_v22 = vpop.permute.xlu0 %1347 }
 0x236   : > { %v3239_v52 = vadd.f32 %v1077_v46, %v1072_v50  ;;  %v3241_v53 = vadd.f32 %v1077_v46, %v1073_v51 }
 0x238   : > { %4150 = vst [vmem:[#allocation6_spill] sm:$0xff] %v3239_v52  ;;  %v4108_v54 = vmax.f32 %v3241_v53, 0.0  ;;  %v4111_v55 = vmax.f32 %v3239_v52, 0.0 }
 0x239   : > { %4151 = vst [vmem:[#allocation7_spill] sm:$0xff] %v3241_v53 }
 0x23a   : > { %v1085_v56 = vrot.slane %v4108_v54, 4 }
 0x23b   : > { %v1057_v57 = vpop.f32.mrf.mxu0  ;;  %v1070_v58 = vpop.f32.mrf.mxu1 }
 0x23c   : > { %v1086_v60 = vsel %vm4141_vm3, %v4111_v55, %v1085_v56  ;;  %v3285_v24 = vpop.permute.xlu2 %1944  ;;  %v3288_v25 = vpop.permute.xlu0 %1397 }
 0x23d   : > { %1087 = vrot.lane.b32.xlu2 %v1086_v60, %s2825_s18  ;;  %4156 = vst [vmem:[#allocation12_spill] sm:$0xff] %v3285_v24  ;;  %s2890_s18 = smov 112  }
 0x244   : > { %v3294_v29 = vpop.permute.xlu0 %1453 }
 0x245   : > { %2000 = vperm.xlu2 %2744, %v3138_v35  }
 0x24c   : > { %v3299_v33 = vpop.permute.xlu0 %1505 }
 0x24d   : > { %2745 = vset.pattern.permute.xlu2 %v2886_v17 }
 0x24e   : > { %2027 = vperm.xlu2 %2745, %v3138_v35  }
 0x254   : > { %v3307_v41 = vpop.permute.xlu0 %1555 }
 0x256   : > { %2747 = vset.pattern.permute.xlu2 %v2888_v20 }
 0x257   : > { %2183 = vperm.xlu2 %2747, %v3138_v35  }
 0x25c   : > { %v3310_v49 = vpop.permute.xlu0 %1605 }
 0x264   : > { %v3313_v57 = vpop.permute.xlu0 %1663 }
 0x26c   : > { %v3319_v0 = vpop.permute.xlu0 %1713 }
 0x26d   : > { %4157 = vst [vmem:[#allocation13_spill] sm:$0xff] %v3319_v0 }
 0x297   : > { %v1088_v26 = vpop.permute.xlu2 %1087 }
 0x298   : > { %v1089_v27 = vrot.slane %v1088_v26, 4 }
 0x29a   : > { %v1090_v28 = vsel %vm420_vm8, %v1089_v27, %v1088_v26  ;;  %1094 = vst.msk [vmem:[#allocation2 + $0x8] sm:$0xf] %vm278_vm5, %v1089_v27  ;;  %v3325_v26 = vpop.permute.xlu0 %1763  ;;  %vm1129_vm5 = vcmask 916480   ;;  %vm1154_vm8 = vcmask 785408  }
 0x29b   : > { %1093 = vst.msk [vmem:[#allocation2] sm:$0xff] %vm3048_vm9, %v1090_v28  ;;  %vm1179_vm9 = vcmask 654336  }
 0x29c   : > { %4158 = vst [vmem:[#allocation14_spill] sm:$0xff] %v3325_v26 }
 0x2a1   : > { %v1096_v30 = vld [vmem:[#allocation2 + $0x8] sm:$0xf] }
 0x2a2   : > { %v3296_v32 = vld [vmem:[#allocation2] sm:$0xff]  ;;  %1119 = vst [vmem:[#allocation1 + $0x10] ss:$2 sm:$0xff] %v1096_v30  ;;  %v3317_v62 = vld [vmem:[#allocation2 + $0x8] sm:$0xf] }
 0x2a3   : > { %1103 = vst [vmem:[#allocation1] ss:$2 sm:$0xff] %v3296_v32 }
 0x2a9   : > { %v1122_v35 = vld.sshfl [vmem:[#allocation1 + $0x10] sm:$0xff pattern:$0x75316420] }
 0x2aa   : > { %v3301_v34 = vld.sshfl [vmem:[#allocation1] sm:$0xff pattern:$0x75316420]  ;;  %v3303_v37 = vld.sshfl [vmem:[#allocation1 + $0x8] sm:$0xff pattern:$0x75316420]  ;;  %1127 = vrot.lane.b32.xlu2 %v1122_v35, %s2890_s18  ;;  %v3332_v35 = vpop.permute.xlu0 %1817 }
 0x2ab   : > { %1117 = vst [vmem:[#allocation1] ss:$2 sm:$0xff] %v3296_v32 }
 0x2ac   : > { %1144 = vst [vmem:[#allocation1 + $0x10] ss:$2 sm:$0xff] %v1096_v30 }
 0x2ad   : > { %4159 = vst [vmem:[#allocation15_spill] sm:$0xff] %v3332_v35 }
 0x2b2   : > { %v1120_v16 = vld.sshfl [vmem:[#allocation1] sm:$0xff pattern:$0x75316420]  ;;  %v1121_v38 = vld.sshfl [vmem:[#allocation1 + $0x8] sm:$0xff pattern:$0x75316420] }
 0x2b3   : > { %1142 = vst [vmem:[#allocation1] ss:$2 sm:$0xff] %v3296_v32  ;;  %v1147_v40 = vld.sshfl [vmem:[#allocation1 + $0x10] sm:$0xff pattern:$0x75316420]  ;;  %1123 = vrot.lane.b32.xlu2 %v1120_v16, %s2890_s18 }
 0x2b4   : > { %1169 = vst [vmem:[#allocation1 + $0x10] ss:$2 sm:$0xff] %v1096_v30  ;;  %1152 = vrot.lane.b32.xlu1 %v1147_v40, %s2891_s21  ;;  %v3334_v40 = vpop.permute.xlu1 %1113 }
 0x2ba   : > { %v1145_v43 = vld.sshfl [vmem:[#allocation1] sm:$0xff pattern:$0x75316420]  ;;  %v1146_v46 = vld.sshfl [vmem:[#allocation1 + $0x8] sm:$0xff pattern:$0x75316420] }
 0x2bb   : > { %1167 = vst [vmem:[#allocation1] ss:$2 sm:$0xff] %v3296_v32  ;;  %v1172_v48 = vld.sshfl [vmem:[#allocation1 + $0x10] sm:$0xff pattern:$0x75316420] }
 0x2bc   : > { %1194 = vst [vmem:[#allocation1 + $0x10] ss:$2 sm:$0xff] %v1096_v30  ;;  %1125 = vrot.lane.b32.xlu1 %v1121_v38, %s2890_s18  ;;  %1177 = vrot.lane.b32.xlu2 %v1172_v48, %s2892_s22  ;;  %s2895_s18 = smov 127  }
 0x2c2   : > { %v1170_v50 = vld.sshfl [vmem:[#allocation1] sm:$0xff pattern:$0x75316420]  ;;  %v1171_v51 = vld.sshfl [vmem:[#allocation1 + $0x8] sm:$0xff pattern:$0x75316420] }
 0x2c3   : > { %1192 = vst [vmem:[#allocation1] ss:$2 sm:$0xff] %v3296_v32  ;;  %v1197_v56 = vld.sshfl [vmem:[#allocation1 + $0x10] sm:$0xff pattern:$0x75316420]  ;;  %1173 = vrot.lane.b32.xlu0 %v1170_v50, %s2892_s22 }
 0x2c4   : > { %1219 = vst [vmem:[#allocation1 + $0x10] ss:$2 sm:$0xff] %v1096_v30  ;;  %1148 = vrot.lane.b32.xlu1 %v1145_v43, %s2891_s21  ;;  %1150 = vrot.lane.b32.xlu2 %v1146_v46, %s2891_s21  ;;  %s2896_s21 = smov 32   ;;  %v3340_v46 = vpop.permute.xlu0 %1869 }
 0x2c5   : > { %4160 = vst [vmem:[#allocation16_spill] sm:$0xff] %v3340_v46 }
 0x2ca   : > { %v1195_v58 = vld.sshfl [vmem:[#allocation1] sm:$0xff pattern:$0x75316420]  ;;  %v1196_v59 = vld.sshfl [vmem:[#allocation1 + $0x8] sm:$0xff pattern:$0x75316420] }
 0x2cb   : > { %1217 = vst [vmem:[#allocation1] ss:$2 sm:$0xff] %v3296_v32  ;;  %v1222_v60 = vld.sshfl [vmem:[#allocation1 + $0x10] sm:$0xff pattern:$0x75316420] }
 0x2cc   : > { %1244 = vst [vmem:[#allocation1 + $0x10] ss:$2 sm:$0xff] %v1096_v30  ;;  %1202 = vrot.lane.b32.xlu1 %v1197_v56, %s2893_s9  ;;  %1227 = vrot.lane.b32.xlu2 %v1222_v60, %s2894_s20  ;;  %v3346_v56 = vpop.permute.xlu1 %2052 }
 0x2cd   : > { %4161 = vst [vmem:[#allocation17_spill] sm:$0xff] %v3346_v56 }
 0x2d2   : > { %v1220_v1 = vld.sshfl [vmem:[#allocation1] sm:$0xff pattern:$0x75316420]  ;;  %v1221_v7 = vld.sshfl [vmem:[#allocation1 + $0x8] sm:$0xff pattern:$0x75316420] }
 0x2d3   : > { %1242 = vst [vmem:[#allocation1] ss:$2 sm:$0xff] %v3296_v32  ;;  %v1247_v17 = vld.sshfl [vmem:[#allocation1 + $0x10] sm:$0xff pattern:$0x75316420]  ;;  %1223 = vrot.lane.b32.xlu0 %v1220_v1, %s2894_s20 }
 0x2d4   : > { %1277 = vst [vmem:[#allocation1 + $0x10] ss:$2 sm:$0xff] %v3317_v62  ;;  %1175 = vrot.lane.b32.xlu1 %v1171_v51, %s2892_s22  ;;  %1200 = vrot.lane.b32.xlu2 %v1196_v59, %s2893_s9  ;;  %s2897_s22 = smov 95   ;;  %v3350_v59 = vpop.permute.xlu0 %1919 }
 0x2d5   : > { %4163 = vst [vmem:[#allocation19_spill] sm:$0xff] %v3350_v59 }
 0x2da   : > { %v1245_v19 = vld.sshfl [vmem:[#allocation1] sm:$0xff pattern:$0x75316420]  ;;  %v1246_v20 = vld.sshfl [vmem:[#allocation1 + $0x8] sm:$0xff pattern:$0x75316420] }
 0x2db   : > { %1275 = vst [vmem:[#allocation1] ss:$2 sm:$0xff] %v3296_v32  ;;  %v1280_v23 = vld.sshfl [vmem:[#allocation1 + $0x10] sm:$0xff pattern:$0x75316420] }
 0x2dc   : > { %1302 = vst [vmem:[#allocation1 + $0x10] ss:$2 sm:$0xff] %v3317_v62  ;;  %1198 = vrot.lane.b32.xlu1 %v1195_v58, %s2893_s9  ;;  %1285 = vrot.lane.b32.xlu2 %v1280_v23, %s2895_s18  ;;  %s2898_s9 = smov 111   ;;  %v3348_v58 = vpop.permute.xlu2 %2000 }
 0x2dd   : > { %4162 = vst [vmem:[#allocation18_spill] sm:$0xff] %v3348_v58 }
 0x2e2   : > { %v1278_v27 = vld.sshfl [vmem:[#allocation1] sm:$0xff pattern:$0x75316420]  ;;  %v1279_v28 = vld.sshfl [vmem:[#allocation1 + $0x8] sm:$0xff pattern:$0x75316420] }
 0x2e3   : > { %1300 = vst [vmem:[#allocation1] ss:$2 sm:$0xff] %v3296_v32  ;;  %v1305_v30 = vld.sshfl [vmem:[#allocation1 + $0x10] sm:$0xff pattern:$0x75316420]  ;;  %1281 = vrot.lane.b32.xlu0 %v1278_v27, %s2895_s18 }
 0x2e4   : > { %1327 = vst [vmem:[#allocation1 + $0x10] ss:$2 sm:$0xff] %v3317_v62  ;;  %1252 = vrot.lane.b32.xlu1 %v1247_v17, %s2896_s21  ;;  %1250 = vrot.lane.b32.xlu2 %v1246_v20, %s2896_s21  ;;  %v3356_v17 = vpop.permute.xlu1 %2235  ;;  %v3361_v27 = vpop.permute.xlu2 %2027 }
 0x2e5   : > { %4164 = vst [vmem:[#allocation20_spill] sm:$0xff] %v3356_v17 }
 0x2e6   : > { %4165 = vst [vmem:[#allocation21_spill] sm:$0xff] %v3361_v27  ;;  %v3454_v27 = vld [vmem:[#allocation2 + $0x8] sm:$0xf] }
 0x2ea   : > { %v1303_v16 = vld.sshfl [vmem:[#allocation1] sm:$0xff pattern:$0x75316420]  ;;  %v1304_v38 = vld.sshfl [vmem:[#allocation1 + $0x8] sm:$0xff pattern:$0x75316420] }
 0x2eb   : > { %1325 = vst [vmem:[#allocation1] ss:$2 sm:$0xff] %v3296_v32  ;;  %v1330_v43 = vld.sshfl [vmem:[#allocation1 + $0x10] sm:$0xff pattern:$0x75316420] }
 0x2ec   : > { %1352 = vst [vmem:[#allocation1 + $0x10] ss:$2 sm:$0xff] %v3317_v62  ;;  %1225 = vrot.lane.b32.xlu1 %v1221_v7, %s2894_s20  ;;  %1335 = vrot.lane.b32.xlu2 %v1330_v43, %s2897_s22  ;;  %s2899_s20 = smov 63   ;;  %v3371_v43 = vld [vmem:[#allocation2 + $0x8] sm:$0xf] }
 0x2f2   : > { %v1328_v48 = vld.sshfl [vmem:[#allocation1] sm:$0xff pattern:$0x75316420]  ;;  %v1329_v50 = vld.sshfl [vmem:[#allocation1 + $0x8] sm:$0xff pattern:$0x75316420] }
 0x2f3   : > { %1350 = vst [vmem:[#allocation1] ss:$2 sm:$0xff] %v3296_v32  ;;  %v1355_v51 = vld.sshfl [vmem:[#allocation1 + $0x10] sm:$0xff pattern:$0x75316420]  ;;  %1331 = vrot.lane.b32.xlu0 %v1328_v48, %s2897_s22 }
 0x2f4   : > { %1377 = vst [vmem:[#allocation1 + $0x10] ss:$2 sm:$0xff] %v3317_v62  ;;  %1248 = vrot.lane.b32.xlu1 %v1245_v19, %s2896_s21  ;;  %1308 = vrot.lane.b32.xlu2 %v1304_v38, %s2898_s9  ;;  %v3364_v38 = vpop.permute.xlu0 %1969  ;;  %s2900_s21 = smov 79  }
 0x2f5   : > { %4166 = vst [vmem:[#allocation22_spill] sm:$0xff] %v3364_v38 }
 0x2fa   : > { %v1353_v60 = vld.sshfl [vmem:[#allocation1] sm:$0xff pattern:$0x75316420]  ;;  %v1354_v1 = vld.sshfl [vmem:[#allocation1 + $0x8] sm:$0xff pattern:$0x75316420] }
 0x2fb   : > { %1375 = vst [vmem:[#allocation1] ss:$2 sm:$0xff] %v3296_v32  ;;  %v1380_v7 = vld.sshfl [vmem:[#allocation1 + $0x10] sm:$0xff pattern:$0x75316420] }
 0x2fc   : > { %1402 = vst [vmem:[#allocation1 + $0x10] ss:$2 sm:$0xff] %v3317_v62  ;;  %1310 = vrot.lane.b32.xlu1 %v1305_v30, %s2898_s9  ;;  %1385 = vrot.lane.b32.xlu2 %v1380_v7, %s2899_s20  ;;  %v3369_v30 = vpop.permute.xlu1 %2260 }
 0x2fd   : > { %4167 = vst [vmem:[#allocation23_spill] sm:$0xff] %v3369_v30 }
 0x302   : > { %v1378_v19 = vld.sshfl [vmem:[#allocation1] sm:$0xff pattern:$0x75316420]  ;;  %v3358_v20 = vld.sshfl [vmem:[#allocation1 + $0x8] sm:$0xff pattern:$0x75316420] }
 0x303   : > { %1400 = vst [vmem:[#allocation1] ss:$2 sm:$0xff] %v3296_v32  ;;  %v1405_v23 = vld.sshfl [vmem:[#allocation1 + $0x10] sm:$0xff pattern:$0x75316420]  ;;  %1381 = vrot.lane.b32.xlu0 %v1378_v19, %s2899_s20 }
 0x304   : > { %1427 = vst [vmem:[#allocation1 + $0x10] ss:$2 sm:$0xff] %v3317_v62  ;;  %1283 = vrot.lane.b32.xlu1 %v1279_v28, %s2895_s18  ;;  %1358 = vrot.lane.b32.xlu2 %v1354_v1, %s2900_s21  ;;  %v3379_v62 = vpop.permute.xlu2 %2183  ;;  %v3381_v28 = vpop.permute.xlu0 %2210  ;;  %s2902_s18 = smov 47  }
 0x305   : > { %4168 = vst [vmem:[#allocation24_spill] sm:$0xff] %v3379_v62  ;;  %v3385_v55 = vpop.permute.xlu1 %2285 }
 0x306   : > { %4169 = vst [vmem:[#allocation25_spill] sm:$0xff] %v3381_v28 }
 0x307   : > { %4170 = vst [vmem:[#allocation26_spill] sm:$0xff] %v3385_v55 }
 0x30a   : > { %v3373_v48 = vld.sshfl [vmem:[#allocation1] sm:$0xff pattern:$0x75316420]  ;;  %v1404_v7 = vld.sshfl [vmem:[#allocation1 + $0x8] sm:$0xff pattern:$0x75316420] }
 0x30b   : > { %1425 = vst [vmem:[#allocation1] ss:$2 sm:$0xff] %v3296_v32  ;;  %v1430_v54 = vld.sshfl [vmem:[#allocation1 + $0x10] sm:$0xff pattern:$0x75316420] }
 0x30c   : > { %1460 = vst [vmem:[#allocation1 + $0x10] ss:$2 sm:$0xff] %v3371_v43  ;;  %1306 = vrot.lane.b32.xlu1 %v1303_v16, %s2898_s9  ;;  %1435 = vrot.lane.b32.xlu2 %v1430_v54, %s2901_s23  ;;  %v3394_v54 = vpop.permute.xlu2 %1127  ;;  %v3396_v16 = vpop.permute.xlu0 %2077  ;;  %s2903_s9 = smov 110  }
 0x30d   : > { %4171 = vst [vmem:[#allocation27_spill] sm:$0xff] %v3396_v16 }
 0x312   : > { %v1428_v1 = vld.sshfl [vmem:[#allocation1] sm:$0xff pattern:$0x75316420]  ;;  %v3383_v19 = vld.sshfl [vmem:[#allocation1 + $0x8] sm:$0xff pattern:$0x75316420] }
 0x313   : > { %1458 = vst [vmem:[#allocation1] ss:$2 sm:$0xff] %v3296_v32  ;;  %v3388_v12 = vld.sshfl [vmem:[#allocation1 + $0x10] sm:$0xff pattern:$0x75316420]  ;;  %1431 = vrot.lane.b32.xlu0 %v1428_v1, %s2901_s23 }
 0x314   : > { %1485 = vst [vmem:[#allocation1 + $0x10] ss:$2 sm:$0xff] %v3371_v43  ;;  %1360 = vrot.lane.b32.xlu1 %v1355_v51, %s2900_s21  ;;  %1408 = vrot.lane.b32.xlu2 %v1404_v7, %s2902_s18  ;;  %v3404_v51 = vpop.permute.xlu1 %2310  ;;  %v1124_v7 = vpop.permute.xlu2 %1123 }
 0x315   : > { %4172 = vst [vmem:[#allocation28_spill] sm:$0xff] %v3404_v51  ;;  %v3406_v1 = vpop.permute.xlu0 %2102 }
 0x316   : > { %4173 = vst [vmem:[#allocation29_spill] sm:$0xff] %v3406_v1 }
 0x31a   : > { %v3398_v6 = vld.sshfl [vmem:[#allocation1] sm:$0xff pattern:$0x75316420]  ;;  %v1462_v53 = vld.sshfl [vmem:[#allocation1 + $0x8] sm:$0xff pattern:$0x75316420] }
 0x31b   : > { %1483 = vst [vmem:[#allocation1] ss:$2 sm:$0xff] %v3296_v32  ;;  %v1488_v52 = vld.sshfl [vmem:[#allocation1 + $0x10] sm:$0xff pattern:$0x75316420] }
 0x31c   : > { %1510 = vst [vmem:[#allocation1 + $0x10] ss:$2 sm:$0xff] %v3371_v43  ;;  %1333 = vrot.lane.b32.xlu1 %v1329_v50, %s2897_s22  ;;  %1493 = vrot.lane.b32.xlu2 %v1488_v52, %s2903_s9  ;;  %s2904_s22 = smov 126   ;;  %v3422_v62 = vpop.permute.xlu2 %1177 }
 0x31d   : > { %v3424_v1 = vpop.permute.xlu0 %2127 }
 0x31e   : > { %4174 = vst [vmem:[#allocation30_spill] sm:$0xff] %v3424_v1 }
 0x322   : > { %v1486_v55 = vld.sshfl [vmem:[#allocation1] sm:$0xff pattern:$0x75316420]  ;;  %v3408_v30 = vld.sshfl [vmem:[#allocation1 + $0x8] sm:$0xff pattern:$0x75316420] }
 0x323   : > { %1508 = vst [vmem:[#allocation1] ss:$2 sm:$0xff] %v3296_v32  ;;  %v3411_v17 = vld.sshfl [vmem:[#allocation1 + $0x10] sm:$0xff pattern:$0x75316420]  ;;  %1489 = vrot.lane.b32.xlu0 %v1486_v55, %s2903_s9 }
 0x324   : > { %1535 = vst [vmem:[#allocation1 + $0x10] ss:$2 sm:$0xff] %v3371_v43  ;;  %1356 = vrot.lane.b32.xlu1 %v1353_v60, %s2900_s21  ;;  %1466 = vrot.lane.b32.xlu2 %v1462_v53, %s2904_s22  ;;  %s2905_s21 = smov 46  }
 0x326   : > { %v3417_v52 = vpop.permute.xlu1 %1152 }
 0x32a   : > { %v3419_v50 = vld.sshfl [vmem:[#allocation1] sm:$0xff pattern:$0x75316420]  ;;  %v1512_v51 = vld.sshfl [vmem:[#allocation1 + $0x8] sm:$0xff pattern:$0x75316420] }
 0x32b   : > { %1533 = vst [vmem:[#allocation1] ss:$2 sm:$0xff] %v3296_v32  ;;  %v1538_v28 = vld.sshfl [vmem:[#allocation1 + $0x10] sm:$0xff pattern:$0x75316420] }
 0x32c   : > { %1410 = vrot.lane.b32.xlu1 %v1405_v23, %s2902_s18  ;;  %1543 = vrot.lane.b32.xlu2 %v1538_v28, %s2836_s14  ;;  %1560 = vst [vmem:[#allocation1 + $0x10] ss:$2 sm:$0xff] %v3371_v43  ;;  %v3439_v23 = vpop.permute.xlu2 %1150  ;;  %v3441_v28 = vpop.permute.xlu0 %2152 }
 0x32d   : > { %4175 = vst [vmem:[#allocation31_spill] sm:$0xff] %v3441_v28 }
 0x32e   : > { %v1126_v55 = vpop.permute.xlu1 %1125 }
 0x332   : > { %v1536_v53 = vld.sshfl [vmem:[#allocation1] sm:$0xff pattern:$0x75316420]  ;;  %v3429_v60 = vld.sshfl [vmem:[#allocation1 + $0x8] sm:$0xff pattern:$0x75316420] }
 0x333   : > { %1558 = vst [vmem:[#allocation1] ss:$2 sm:$0xff] %v3296_v32  ;;  %1539 = vrot.lane.b32.xlu0 %v1536_v53, %s2836_s14  ;;  %v3433_v16 = vld.sshfl [vmem:[#allocation1 + $0x10] sm:$0xff pattern:$0x75316420] }
 0x334   : > { %1383 = vrot.lane.b32.xlu1 %v3358_v20, %s2899_s20  ;;  %1516 = vrot.lane.b32.xlu2 %v1512_v51, %s2833_s8  ;;  %1585 = vst [vmem:[#allocation1 + $0x10] ss:$2 sm:$0xff] %v3371_v43  ;;  %v3452_v51 = vpop.permute.xlu2 %1227  ;;  %v1100_v28 = vpop.permute.xlu0 %1099  ;;  %s2906_s20 = smov 125  }
 0x336   : > { %v1149_v1 = vpop.permute.xlu1 %1148 }
 0x337   : > { %v1155_v59 = vsel %vm1154_vm8, %v1149_v1, %v3439_v23 }
 0x338   : > { %v1159_v13 = vmul.f32 %v1155_v59, %v3264_v9 }
 0x33a   : > { %v3443_v56 = vld.sshfl [vmem:[#allocation1] sm:$0xff pattern:$0x75316420]  ;;  %v1562_v58 = vld.sshfl [vmem:[#allocation1 + $0x8] sm:$0xff pattern:$0x75316420] }
 0x33b   : > { %1583 = vst [vmem:[#allocation1] ss:$2 sm:$0xff] %v3296_v32  ;;  %v1588_v53 = vld.sshfl [vmem:[#allocation1 + $0x10] sm:$0xff pattern:$0x75316420] }
 0x33c   : > { %1406 = vrot.lane.b32.xlu1 %v3373_v48, %s2902_s18  ;;  %1593 = vrot.lane.b32.xlu2 %v1588_v53, %s2905_s21  ;;  %1610 = vst [vmem:[#allocation1 + $0x10] ss:$2 sm:$0xff] %v3371_v43  ;;  %v1130_v43 = vsel %vm1129_vm5, %v1124_v7, %v1126_v55  ;;  %v1201_v46 = vpop.permute.xlu2 %1200  ;;  %s2908_s18 = smov 109  }
 0x33d   : > { %v1134_v18 = vmul.f32 %v1130_v43, %v3334_v40 }
 0x33e   : > { %v3450_v20 = vpop.permute.xlu1 %1202 }
 0x342   : > { %v1586_v38 = vld.sshfl [vmem:[#allocation1] sm:$0xff pattern:$0x75316420]  ;;  %v3456_v24 = vld.sshfl [vmem:[#allocation1 + $0x8] sm:$0xff pattern:$0x75316420] }
 0x343   : > { %1608 = vst [vmem:[#allocation1] ss:$2 sm:$0xff] %v3296_v32  ;;  %1589 = vrot.lane.b32.xlu0 %v1586_v38, %s2905_s21  ;;  %v3460_v48 = vld.sshfl [vmem:[#allocation1 + $0x10] sm:$0xff pattern:$0x75316420]  ;;  %v1174_v38 = vpop.permute.xlu0 %1173 }
 0x344   : > { %1468 = vrot.lane.b32.xlu1 %v3388_v12, %s2904_s22  ;;  %1566 = vrot.lane.b32.xlu2 %v1562_v58, %s2839_s17  ;;  %1643 = vst [vmem:[#allocation1 + $0x10] ss:$2 sm:$0xff] %v3454_v27  ;;  %v1108_v58 = vmul.f32 %v3301_v34, %v1100_v28  ;;  %v1131_v34 = vsel %vm1129_vm5, %v1126_v55, %v3394_v54  ;;  %vm1254_vm5 = vcmask 261120  }
 0x346   : > { %v1176_v53 = vpop.permute.xlu1 %1175  ;;  %v1136_v26 = vadd.f32 %v1134_v18, %v1108_v58 }
 0x347   : > { %v1180_v15 = vsel %vm1179_vm9, %v1174_v38, %v1176_v53 }
 0x348   : > { %v1184_v10 = vmul.f32 %v1180_v15, %v3215_v31  ;;  %v1161_v1 = vadd.f32 %v1159_v13, %v1136_v26  ;;  %v1109_v26 = vmul.f32 %v3303_v37, %v1100_v28 }
 0x34a   : > { %v3471_v35 = vld.sshfl [vmem:[#allocation1] sm:$0xff pattern:$0x75316420]  ;;  %v1612_v12 = vld.sshfl [vmem:[#allocation1 + $0x8] sm:$0xff pattern:$0x75316420]  ;;  %v1186_v38 = vadd.f32 %v1184_v10, %v1161_v1  ;;  %v1156_v10 = vsel %vm1154_vm8, %v3439_v23, %v3417_v52 }
 0x34b   : > { %1641 = vst [vmem:[#allocation1] ss:$2 sm:$0xff] %v3296_v32  ;;  %v1646_v7 = vld.sshfl [vmem:[#allocation1 + $0x10] sm:$0xff pattern:$0x75316420]  ;;  %v1160_v1 = vmul.f32 %v1156_v10, %v3264_v9  ;;  %vm1229_vm8 = vcmask 392192  }
 0x34c   : > { %1433 = vrot.lane.b32.xlu1 %v3383_v19, %s2901_s23  ;;  %1668 = vst [vmem:[#allocation1 + $0x10] ss:$2 sm:$0xff] %v3454_v27  ;;  %1651 = vrot.lane.b32.xlu2 %v1646_v7, %s2906_s20  ;;  %v1135_v19 = vmul.f32 %v1131_v34, %v3334_v40  ;;  %v3489_v7 = vpop.permute.xlu2 %1285  ;;  %s2907_s23 = smov 30   ;;  %v1181_v40 = vsel %vm1179_vm9, %v1176_v53, %v3422_v62  ;;  %v1224_v62 = vpop.permute.xlu0 %1223  ;;  %vm1312_vm9 = vcmask 908288  }
 0x34d   : > { %v1185_v37 = vmul.f32 %v1181_v40, %v3215_v31 }
 0x34e   : > { %v1199_v43 = vpop.permute.xlu1 %1198  ;;  %v1137_v54 = vadd.f32 %v1135_v19, %v1109_v26 }
 0x34f   : > { %v1205_v59 = vsel %vm1204_vm6, %v1199_v43, %v1201_v46 }
 0x350   : > { %v1209_v18 = vmul.f32 %v1205_v59, %v3268_v11  ;;  %v1162_v43 = vadd.f32 %v1160_v1, %v1137_v54 }
 0x352   : > { %v1644_v15 = vld.sshfl [vmem:[#allocation1] sm:$0xff pattern:$0x75316420]  ;;  %v3485_v58 = vld.sshfl [vmem:[#allocation1 + $0x8] sm:$0xff pattern:$0x75316420]  ;;  %v1211_v0 = vadd.f32 %v1209_v18, %v1186_v38  ;;  %v1187_v52 = vadd.f32 %v1185_v37, %v1162_v43 }
 0x353   : > { %1666 = vst [vmem:[#allocation1] ss:$2 sm:$0xff] %v3296_v32  ;;  %1647 = vrot.lane.b32.xlu0 %v1644_v15, %s2906_s20  ;;  %v3492_v13 = vld.sshfl [vmem:[#allocation1 + $0x10] sm:$0xff pattern:$0x75316420] }
 0x354   : > { %1464 = vrot.lane.b32.xlu1 %v3398_v6, %s2904_s22  ;;  %1616 = vrot.lane.b32.xlu2 %v1612_v12, %s2907_s23  ;;  %1693 = vst [vmem:[#allocation1 + $0x10] ss:$2 sm:$0xff] %v3454_v27  ;;  %v1206_v12 = vsel %vm1204_vm6, %v1201_v46, %v3450_v20  ;;  %v1251_v31 = vpop.permute.xlu2 %1250  ;;  %vm1287_vm6 = vcmask 1039360   ;;  %s2913_s22 = smov 44  }
 0x355   : > { %v1210_v9 = vmul.f32 %v1206_v12, %v3268_v11 }
 0x356   : > { %v1253_v55 = vpop.permute.xlu1 %1252 }
 0x357   : > { %v1256_v53 = vsel %vm1254_vm5, %v1251_v31, %v1253_v55  ;;  %v1212_v20 = vadd.f32 %v1210_v9, %v1187_v52 }
 0x358   : > { %v1260_v19 = vmul.f32 %v1256_v53, %v3272_v14 }
 0x35a   : > { %v3506_v28 = vld.sshfl [vmem:[#allocation1] sm:$0xff pattern:$0x75316420]  ;;  %v1670_v6 = vld.sshfl [vmem:[#allocation1 + $0x8] sm:$0xff pattern:$0x75316420] }
 0x35b   : > { %1691 = vst [vmem:[#allocation1] ss:$2 sm:$0xff] %v3296_v32  ;;  %v1696_v34 = vld.sshfl [vmem:[#allocation1 + $0x10] sm:$0xff pattern:$0x75316420] }
 0x35c   : > { %1518 = vrot.lane.b32.xlu1 %v3411_v17, %s2833_s8  ;;  %1718 = vst [vmem:[#allocation1 + $0x10] ss:$2 sm:$0xff] %v3454_v27  ;;  %1701 = vrot.lane.b32.xlu2 %v1696_v34, %s2832_s29  ;;  %v3537_v1 = vpop.permute.xlu2 %1335 }
 0x35e   : > { %v1226_v23 = vpop.permute.xlu1 %1225 }
 0x35f   : > { %v1230_v59 = vsel %vm1229_vm8, %v1224_v62, %v1226_v23  ;;  %v1231_v46 = vsel %vm1229_vm8, %v1226_v23, %v3452_v51  ;;  %v3561_v23 = vld [vmem:[#allocation2 + $0x8] sm:$0xf]  ;;  %vm1337_vm8 = vcmask 777216  }
 0x360   : > { %v1234_v38 = vmul.f32 %v1230_v59, %v3219_v36  ;;  %v1235_v17 = vmul.f32 %v1231_v46, %v3219_v36 }
 0x362   : > { %v1694_v18 = vld.sshfl [vmem:[#allocation1] sm:$0xff pattern:$0x75316420]  ;;  %v3520_v15 = vld.sshfl [vmem:[#allocation1 + $0x8] sm:$0xff pattern:$0x75316420]  ;;  %v1236_v26 = vadd.f32 %v1234_v38, %v1211_v0  ;;  %v1237_v10 = vadd.f32 %v1235_v17, %v1212_v20 }
 0x363   : > { %1716 = vst [vmem:[#allocation1] ss:$2 sm:$0xff] %v3296_v32  ;;  %1697 = vrot.lane.b32.xlu0 %v1694_v18, %s2832_s29  ;;  %v3525_v11 = vld.sshfl [vmem:[#allocation1 + $0x10] sm:$0xff pattern:$0x75316420] }
 0x364   : > { %v3527_v40 = vadd.f32 %v1260_v19, %v1237_v10  ;;  %1491 = vrot.lane.b32.xlu1 %v3408_v30, %s2903_s9  ;;  %1674 = vrot.lane.b32.xlu2 %v1670_v6, %s2908_s18  ;;  %1743 = vst [vmem:[#allocation1 + $0x10] ss:$2 sm:$0xff] %v3454_v27  ;;  %v1309_v34 = vpop.permute.xlu2 %1308  ;;  %s2911_s9 = smov 108  }
 0x366   : > { %v1249_v36 = vpop.permute.xlu1 %1248 }
 0x367   : > { %v1255_v0 = vsel %vm1254_vm5, %v1249_v36, %v1251_v31  ;;  %vm1362_vm5 = vcmask 646144  }
 0x368   : > { %v1259_v51 = vmul.f32 %v1255_v0, %v3272_v14 }
 0x36a   : > { %v3535_v54 = vld.sshfl [vmem:[#allocation1] sm:$0xff pattern:$0x75316420]  ;;  %v1720_v55 = vld.sshfl [vmem:[#allocation1 + $0x8] sm:$0xff pattern:$0x75316420]  ;;  %v3539_v37 = vadd.f32 %v1259_v51, %v1236_v26 }
 0x36b   : > { %1741 = vst [vmem:[#allocation1] ss:$2 sm:$0xff] %v3296_v32  ;;  %v1746_v30 = vld.sshfl [vmem:[#allocation1 + $0x10] sm:$0xff pattern:$0x75316420] }
 0x36c   : > { %1514 = vrot.lane.b32.xlu1 %v3419_v50, %s2833_s8  ;;  %1768 = vst [vmem:[#allocation1 + $0x10] ss:$2 sm:$0xff] %v3454_v27  ;;  %1751 = vrot.lane.b32.xlu2 %v1746_v30, %s2840_s19  ;;  %s2909_s8 = smov 29  }
 0x36e   : > { %v1311_v6 = vpop.permute.xlu1 %1310 }
 0x36f   : > { %v1314_v50 = vsel %vm1312_vm9, %v1309_v34, %v1311_v6 }
 0x370   : > { %v1318_v9 = vmul.f32 %v1314_v50, %v3277_v21 }
 0x372   : > { %v1744_v14 = vld.sshfl [vmem:[#allocation1] sm:$0xff pattern:$0x75316420]  ;;  %v3546_v43 = vld.sshfl [vmem:[#allocation1 + $0x8] sm:$0xff pattern:$0x75316420] }
 0x373   : > { %1766 = vst [vmem:[#allocation1] ss:$2 sm:$0xff] %v3296_v32  ;;  %1747 = vrot.lane.b32.xlu0 %v1744_v14, %s2840_s19  ;;  %v3550_v12 = vld.sshfl [vmem:[#allocation1 + $0x10] sm:$0xff pattern:$0x75316420] }
 0x374   : > { %1568 = vrot.lane.b32.xlu1 %v3433_v16, %s2839_s17  ;;  %1724 = vrot.lane.b32.xlu2 %v1720_v55, %s2837_s15  ;;  %1793 = vst [vmem:[#allocation1 + $0x10] ss:$2 sm:$0xff] %v3454_v27  ;;  %v1282_v27 = vpop.permute.xlu0 %1281 }
 0x376   : > { %v1284_v52 = vpop.permute.xlu1 %1283 }
 0x377   : > { %v1289_v31 = vsel %vm1287_vm6, %v1284_v52, %v3489_v7  ;;  %v1288_v7 = vsel %vm1287_vm6, %v1282_v27, %v1284_v52  ;;  %vm1387_vm6 = vcmask 515072  }
 0x378   : > { %v1293_v62 = vmul.f32 %v1289_v31, %v3224_v39  ;;  %v1292_v17 = vmul.f32 %v1288_v7, %v3224_v39 }
 0x37a   : > { %v3563_v53 = vld.sshfl [vmem:[#allocation1] sm:$0xff pattern:$0x75316420]  ;;  %v1770_v16 = vld.sshfl [vmem:[#allocation1 + $0x8] sm:$0xff pattern:$0x75316420]  ;;  %v1320_v59 = vadd.f32 %v1318_v9, %v1293_v62 }
 0x37b   : > { %1791 = vst [vmem:[#allocation1] ss:$2 sm:$0xff] %v3296_v32  ;;  %v1796_v46 = vld.sshfl [vmem:[#allocation1 + $0x10] sm:$0xff pattern:$0x75316420] }
 0x37c   : > { %1541 = vrot.lane.b32.xlu1 %v3429_v60, %s2836_s14  ;;  %1824 = vst [vmem:[#allocation1 + $0x10] ss:$2 sm:$0xff] %v3561_v23  ;;  %1801 = vrot.lane.b32.xlu2 %v1796_v46, %s2909_s8  ;;  %v3577_v60 = vpop.permute.xlu2 %1385  ;;  %s2910_s14 = smov 45   ;;  %v1332_v55 = vpop.permute.xlu0 %1331 }
 0x37e   : > { %v1307_v20 = vpop.permute.xlu1 %1306 }
 0x37f   : > { %v1313_v38 = vsel %vm1312_vm9, %v1307_v20, %v1309_v34  ;;  %vm1412_vm9 = vcmask 384000  }
 0x380   : > { %v1317_v18 = vmul.f32 %v1313_v38, %v3277_v21 }
 0x382   : > { %v1794_v19 = vld.sshfl [vmem:[#allocation1] sm:$0xff pattern:$0x75316420]  ;;  %v3574_v26 = vld.sshfl [vmem:[#allocation1 + $0x8] sm:$0xff pattern:$0x75316420]  ;;  %v1319_v10 = vadd.f32 %v1317_v18, %v1292_v17 }
 0x383   : > { %1822 = vst [vmem:[#allocation1] ss:$2 sm:$0xff] %v3296_v32  ;;  %1797 = vrot.lane.b32.xlu0 %v1794_v19, %s2909_s8  ;;  %v3580_v36 = vld.sshfl [vmem:[#allocation1 + $0x10] sm:$0xff pattern:$0x75316420] }
 0x384   : > { %1564 = vrot.lane.b32.xlu1 %v3443_v56, %s2839_s17  ;;  %1774 = vrot.lane.b32.xlu2 %v1770_v16, %s2910_s14  ;;  %1849 = vst [vmem:[#allocation1 + $0x10] ss:$2 sm:$0xff] %v3561_v23  ;;  %v1359_v56 = vpop.permute.xlu2 %1358  ;;  %s2912_s17 = smov 124  }
 0x386   : > { %v1361_v39 = vpop.permute.xlu1 %1360 }
 0x387   : > { %v1364_v6 = vsel %vm1362_vm5, %v1359_v56, %v1361_v39  ;;  %v1382_v39 = vpop.permute.xlu0 %1381 }
 0x388   : > { %v1368_v9 = vmul.f32 %v1364_v6, %v3283_v22 }
 0x38a   : > { %v3586_v21 = vld.sshfl [vmem:[#allocation1] sm:$0xff pattern:$0x75316420]  ;;  %v1826_v0 = vld.sshfl [vmem:[#allocation1 + $0x8] sm:$0xff pattern:$0x75316420] }
 0x38b   : > { %1847 = vst [vmem:[#allocation1] ss:$2 sm:$0xff] %v3296_v32  ;;  %v1852_v51 = vld.sshfl [vmem:[#allocation1 + $0x10] sm:$0xff pattern:$0x75316420] }
 0x38c   : > { %1618 = vrot.lane.b32.xlu1 %v3460_v48, %s2907_s23  ;;  %1874 = vst [vmem:[#allocation1 + $0x10] ss:$2 sm:$0xff] %v3561_v23  ;;  %1857 = vrot.lane.b32.xlu2 %v1852_v51, %s2911_s9  ;;  %v3613_v17 = vpop.permute.xlu2 %1435 }
 0x38e   : > { %v1334_v30 = vpop.permute.xlu1 %1333 }
 0x38f   : > { %v1338_v14 = vsel %vm1337_vm8, %v1332_v55, %v1334_v30  ;;  %v1339_v34 = vsel %vm1337_vm8, %v1334_v30, %v3537_v1 }
 0x390   : > { %v1342_v50 = vmul.f32 %v1338_v14, %v3228_v42  ;;  %v1343_v52 = vmul.f32 %v1339_v34, %v3228_v42 }
 0x392   : > { %v1850_v31 = vld.sshfl [vmem:[#allocation1] sm:$0xff pattern:$0x75316420]  ;;  %v3597_v48 = vld.sshfl [vmem:[#allocation1 + $0x8] sm:$0xff pattern:$0x75316420]  ;;  %v1344_v62 = vadd.f32 %v1342_v50, %v1319_v10  ;;  %v1345_v16 = vadd.f32 %v1343_v52, %v1320_v59 }
 0x393   : > { %1872 = vst [vmem:[#allocation1] ss:$2 sm:$0xff] %v3296_v32  ;;  %v3601_v46 = vld.sshfl [vmem:[#allocation1 + $0x10] sm:$0xff pattern:$0x75316420]  ;;  %1853 = vrot.lane.b32.xlu0 %v1850_v31, %s2911_s9 }
 0x394   : > { %1899 = vst [vmem:[#allocation1 + $0x10] ss:$2 sm:$0xff] %v3561_v23  ;;  %1591 = vrot.lane.b32.xlu1 %v3456_v24, %s2905_s21  ;;  %1830 = vrot.lane.b32.xlu2 %v1826_v0, %s2912_s17  ;;  %v1370_v42 = vadd.f32 %v1368_v9, %v1345_v16  ;;  %v3643_v16 = vld [vmem:[#allocation2 + $0x8] sm:$0xf]  ;;  %s4176_s21 = smov 60  }
 0x396   : > { %v1357_v1 = vpop.permute.xlu1 %1356 }
 0x397   : > { %v1363_v27 = vsel %vm1362_vm5, %v1357_v1, %v1359_v56  ;;  %vm1437_vm5 = vcmask 252928  }
 0x398   : > { %v1367_v59 = vmul.f32 %v1363_v27, %v3283_v22 }
 0x39a   : > { %v3610_v7 = vld.sshfl [vmem:[#allocation1] sm:$0xff pattern:$0x75316420]  ;;  %v1876_v20 = vld.sshfl [vmem:[#allocation1 + $0x8] sm:$0xff pattern:$0x75316420]  ;;  %v1369_v38 = vadd.f32 %v1367_v59, %v1344_v62 }
 0x39b   : > { %1897 = vst [vmem:[#allocation1] ss:$2 sm:$0xff] %v3296_v32  ;;  %v1902_v18 = vld.sshfl [vmem:[#allocation1 + $0x10] sm:$0xff pattern:$0x75316420] }
 0x39c   : > { %1614 = vrot.lane.b32.xlu1 %v3471_v35, %s2907_s23  ;;  %1924 = vst [vmem:[#allocation1 + $0x10] ss:$2 sm:$0xff] %v3561_v23  ;;  %1907 = vrot.lane.b32.xlu2 %v1902_v18, %s2838_s16  ;;  %v1409_v35 = vpop.permute.xlu2 %1408  ;;  %v334_v18 = vadd.s32 4294967294, %v3027_v5  ;;  %s2915_s23 = smov 28  }
 0x39e   : > { %v1411_v24 = vpop.permute.xlu1 %1410  ;;  %vm336_vm3 = vcmp.ge.s32.totalorder %v334_v18, 0 }
 0x39f   : > { %v1414_v51 = vsel %vm1412_vm9, %v1409_v35, %v1411_v24 }
 0x3a2   : > { %v1900_v19 = vld.sshfl [vmem:[#allocation1] sm:$0xff pattern:$0x75316420]  ;;  %v3619_v10 = vld.sshfl [vmem:[#allocation1 + $0x8] sm:$0xff pattern:$0x75316420] }
 0x3a3   : > { %1922 = vst [vmem:[#allocation1] ss:$2 sm:$0xff] %v3296_v32  ;;  %v3622_v22 = vld.sshfl [vmem:[#allocation1 + $0x10] sm:$0xff pattern:$0x75316420]  ;;  %1903 = vrot.lane.b32.xlu0 %v1900_v19, %s2838_s16 }
 0x3a4   : > { %1949 = vst [vmem:[#allocation1 + $0x10] ss:$2 sm:$0xff] %v3561_v23  ;;  %1676 = vrot.lane.b32.xlu1 %v3492_v13, %s2908_s18  ;;  %1880 = vrot.lane.b32.xlu2 %v1876_v20, %s2835_s13  ;;  %v1418_v13 = vmul.f32 %v1414_v51, %v3288_v25  ;;  %v321_v20 = vadd.s32 4294967293, %v3020_v3 }
 0x3a6   : > { %v1384_v0 = vpop.permute.xlu1 %1383 }
 0x3a7   : > { %v1388_v56 = vsel %vm1387_vm6, %v1382_v39, %v1384_v0  ;;  %v1389_v55 = vsel %vm1387_vm6, %v1384_v0, %v3577_v60  ;;  %v1432_v39 = vpop.permute.xlu0 %1431 }
 0x3a8   : > { %v1392_v30 = vmul.f32 %v1388_v56, %v3233_v44  ;;  %v1393_v6 = vmul.f32 %v1389_v55, %v3233_v44  ;;  %v4177_v55 = vmov 0.0  }
 0x3aa   : > { %v3633_v14 = vld.sshfl [vmem:[#allocation1] sm:$0xff pattern:$0x75316420]  ;;  %v1926_v34 = vld.sshfl [vmem:[#allocation1 + $0x8] sm:$0xff pattern:$0x75316420]  ;;  %v1394_v50 = vadd.f32 %v1392_v30, %v1369_v38  ;;  %v1395_v52 = vadd.f32 %v1393_v6, %v1370_v42  ;;  %v3645_v42 = vpop.permute.xlu2 %1493 }
 0x3ab   : > { %1947 = vst [vmem:[#allocation1] ss:$2 sm:$0xff] %v3296_v32  ;;  %v1952_v31 = vld.sshfl [vmem:[#allocation1 + $0x10] sm:$0xff pattern:$0x75316420]  ;;  %v333_v38 = vadd.s32 4294967294, %v3020_v3 }
 0x3ac   : > { %1649 = vrot.lane.b32.xlu1 %v3485_v58, %s2906_s20  ;;  %1974 = vst [vmem:[#allocation1 + $0x10] ss:$2 sm:$0xff] %v3561_v23  ;;  %1957 = vrot.lane.b32.xlu2 %v1952_v31, %s2913_s22  ;;  %v1420_v60 = vadd.f32 %v1418_v13, %v1395_v52  ;;  %v322_v23 = vadd.s32 4294967293, %v3027_v5  ;;  %s2914_s20 = smov 123  }
 0x3ad   : > { %vm335_vm6 = vcmp.ge.s32.totalorder %v333_v38, 0 }
 0x3ae   : > { %v1407_v44 = vpop.permute.xlu1 %1406  ;;  %vm324_vm8 = vcmp.ge.s32.totalorder %v322_v23, 0  ;;  %v2520_v13 = vsel %vm335_vm6, 1.0, %v4177_v55  ;;  %vm1653_vm6 = vcmask 1022976  }
 0x3af   : > { %v1413_v9 = vsel %vm1412_vm9, %v1407_v44, %v1409_v35  ;;  %vm323_vm9 = vcmp.ge.s32.totalorder %v321_v20, 0  ;;  %v2519_v30 = vsel %vm324_vm8, 1.0, %v4177_v55 }
 0x3b0   : > { %v1417_v62 = vmul.f32 %v1413_v9, %v3288_v25 }
 0x3b2   : > { %v1950_v1 = vld.sshfl [vmem:[#allocation1] sm:$0xff pattern:$0x75316420]  ;;  %v3647_v27 = vld.sshfl [vmem:[#allocation1 + $0x8] sm:$0xff pattern:$0x75316420]  ;;  %v1419_v59 = vadd.f32 %v1417_v62, %v1394_v50  ;;  %v3666_v35 = vpop.permute.xlu2 %1466 }
 0x3b3   : > { %1972 = vst [vmem:[#allocation1] ss:$2 sm:$0xff] %v3296_v32  ;;  %v3650_v58 = vld.sshfl [vmem:[#allocation1 + $0x10] sm:$0xff pattern:$0x75316420]  ;;  %1953 = vrot.lane.b32.xlu0 %v1950_v1, %s2913_s22  ;;  %v2521_v50 = vsel %vm336_vm3, 1.0, %v4177_v55 }
 0x3b4   : > { %2007 = vst [vmem:[#allocation1 + $0x10] ss:$2 sm:$0xff] %v3643_v16  ;;  %1672 = vrot.lane.b32.xlu1 %v3506_v28, %s2908_s18  ;;  %1930 = vrot.lane.b32.xlu2 %v1926_v34, %s4176_s21  ;;  %v2518_v34 = vsel %vm323_vm9, 1.0, %v4177_v55  ;;  %s2916_s18 = smov 107   ;;  %vm1470_vm3 = vcmask 1031168   ;;  %vm1678_vm9 = vcmask 891904  }
 0x3b6   : > { %v3657_v25 = vpop.permute.xlu1 %1468 }
 0x3ba   : > { %v3663_v24 = vld.sshfl [vmem:[#allocation1] sm:$0xff pattern:$0x75316420]  ;;  %v1976_v19 = vld.sshfl [vmem:[#allocation1 + $0x8] sm:$0xff pattern:$0x75316420] }
 0x3bb   : > { %2005 = vst [vmem:[#allocation1] ss:$2 sm:$0xff] %v3296_v32  ;;  %v2010_v28 = vld.sshfl [vmem:[#allocation1 + $0x10] sm:$0xff pattern:$0x75316420] }
 0x3bc   : > { %1726 = vrot.lane.b32.xlu1 %v3525_v11, %s2837_s15  ;;  %2032 = vst [vmem:[#allocation1 + $0x10] ss:$2 sm:$0xff] %v3643_v16  ;;  %2015 = vrot.lane.b32.xlu2 %v2010_v28, %s2914_s20 }
 0x3be   : > { %v1434_v0 = vpop.permute.xlu1 %1433 }
 0x3bf   : > { %v1438_v51 = vsel %vm1437_vm5, %v1432_v39, %v1434_v0  ;;  %v1439_v56 = vsel %vm1437_vm5, %v1434_v0, %v3613_v17  ;;  %v1264_v17 = vmul.f32 %v2519_v30, %v3527_v40  ;;  %vm1495_vm5 = vcmask 900096  }
 0x3c0   : > { %v1442_v6 = vmul.f32 %v1438_v51, %v3235_v45  ;;  %v1443_v11 = vmul.f32 %v1439_v56, %v3235_v45  ;;  %v1263_v45 = vmul.f32 %v2518_v34, %v3539_v37  ;;  %v1490_v56 = vpop.permute.xlu0 %1489 }
 0x3c2   : > { %v2008_v52 = vld.sshfl [vmem:[#allocation1] sm:$0xff pattern:$0x75316420]  ;;  %v3679_v31 = vld.sshfl [vmem:[#allocation1 + $0x8] sm:$0xff pattern:$0x75316420]  ;;  %v1444_v44 = vadd.f32 %v1442_v6, %v1419_v59  ;;  %v1445_v9 = vadd.f32 %v1443_v11, %v1420_v60  ;;  %v3691_v60 = vpop.permute.xlu2 %1543 }
 0x3c3   : > { %2030 = vst [vmem:[#allocation1] ss:$2 sm:$0xff] %v3296_v32  ;;  %v3683_v62 = vld.sshfl [vmem:[#allocation1 + $0x10] sm:$0xff pattern:$0x75316420]  ;;  %2011 = vrot.lane.b32.xlu0 %v2008_v52, %s2914_s20 }
 0x3c4   : > { %2057 = vst [vmem:[#allocation1 + $0x10] ss:$2 sm:$0xff] %v3643_v16  ;;  %v1446_v1 = vmul.f32 %v2520_v13, %v1444_v44  ;;  %v1447_v23 = vmul.f32 %v2521_v50, %v1445_v9  ;;  %1699 = vrot.lane.b32.xlu1 %v3520_v15, %s2832_s29  ;;  %1980 = vrot.lane.b32.xlu2 %v1976_v19, %s2915_s23  ;;  %s2917_s29 = smov 91  }
 0x3c6   : > { %v3693_v59 = vadd.f32 %v1446_v1, %v1263_v45  ;;  %v3695_v40 = vadd.f32 %v1447_v23, %v1264_v17  ;;  %v1465_v20 = vpop.permute.xlu1 %1464 }
 0x3c7   : > { %v1471_v51 = vsel %vm1470_vm3, %v1465_v20, %v3666_v35 }
 0x3c8   : > { %v1475_v50 = vmul.f32 %v1471_v51, %v3294_v29 }
 0x3ca   : > { %v2033_v38 = vld.sshfl [vmem:[#allocation1] sm:$0xff pattern:$0x75316420]  ;;  %v2034_v18 = vld.sshfl [vmem:[#allocation1 + $0x8] sm:$0xff pattern:$0x75316420]  ;;  %v1517_v19 = vpop.permute.xlu2 %1516 }
 0x3cb   : > { %2055 = vst [vmem:[#allocation1] ss:$2 sm:$0xff] %v3296_v32  ;;  %v2060_v37 = vld.sshfl [vmem:[#allocation1 + $0x10] sm:$0xff pattern:$0x75316420]  ;;  %2038 = vrot.lane.b32.xlu0 %v2034_v18, %s2916_s18 }
 0x3cc   : > { %1722 = vrot.lane.b32.xlu1 %v3535_v54, %s2837_s15  ;;  %2082 = vst [vmem:[#allocation1 + $0x10] ss:$2 sm:$0xff] %v3643_v16  ;;  %2065 = vrot.lane.b32.xlu2 %v2060_v37, %s2917_s29  ;;  %v1472_v54 = vsel %vm1470_vm3, %v3666_v35, %v3657_v25  ;;  %s4142_s15 = smov 59   ;;  %vm1859_vm3 = vcmask 883712  }
 0x3cd   : > { %v1476_v13 = vmul.f32 %v1472_v54, %v3294_v29 }
 0x3ce   : > { %v1519_v15 = vpop.permute.xlu1 %1518 }
 0x3cf   : > { %v1522_v6 = vsel %vm532_vm2, %v1517_v19, %v1519_v15 }
 0x3d0   : > { %v1526_v35 = vmul.f32 %v1522_v6, %v3299_v33 }
 0x3d2   : > { %v3703_v28 = vld.sshfl [vmem:[#allocation1] sm:$0xff pattern:$0x75316420]  ;;  %v3705_v39 = vld.sshfl [vmem:[#allocation1 + $0x8] sm:$0xff pattern:$0x75316420]  ;;  %v3723_v44 = vpop.permute.xlu2 %1593 }
 0x3d3   : > { %2080 = vst [vmem:[#allocation1] ss:$2 sm:$0xff] %v3296_v32  ;;  %v3708_v0 = vld.sshfl [vmem:[#allocation1 + $0x10] sm:$0xff pattern:$0x75316420]  ;;  %2036 = vrot.lane.b32.xlu0 %v2033_v38, %s2916_s18 }
 0x3d4   : > { %2107 = vst [vmem:[#allocation1 + $0x10] ss:$2 sm:$0xff] %v3643_v16  ;;  %1776 = vrot.lane.b32.xlu1 %v3550_v12, %s2910_s14 }
 0x3d6   : > { %v1492_v30 = vpop.permute.xlu1 %1491 }
 0x3d7   : > { %v1496_v11 = vsel %vm1495_vm5, %v1490_v56, %v1492_v30  ;;  %v1497_v34 = vsel %vm1495_vm5, %v1492_v30, %v3645_v42 }
 0x3d8   : > { %v1500_v52 = vmul.f32 %v1496_v11, %v3237_v47  ;;  %v1501_v12 = vmul.f32 %v1497_v34, %v3237_v47 }
 0x3da   : > { %v2083_v25 = vld.sshfl [vmem:[#allocation1] sm:$0xff pattern:$0x75316420]  ;;  %v2084_v9 = vld.sshfl [vmem:[#allocation1 + $0x8] sm:$0xff pattern:$0x75316420]  ;;  %v1502_v17 = vadd.f32 %v1500_v52, %v1475_v50  ;;  %v1503_v45 = vadd.f32 %v1501_v12, %v1476_v13  ;;  %v1567_v37 = vpop.permute.xlu2 %1566 }
 0x3db   : > { %2105 = vst [vmem:[#allocation1] ss:$2 sm:$0xff] %v3296_v32  ;;  %v2110_v1 = vld.sshfl [vmem:[#allocation1 + $0x10] sm:$0xff pattern:$0x75316420] }
 0x3dc   : > { %1749 = vrot.lane.b32.xlu1 %v3546_v43, %s2840_s19  ;;  %2115 = vrot.lane.b32.xlu2 %v2110_v1, %s4142_s15  ;;  %2132 = vst [vmem:[#allocation1 + $0x10] ss:$2 sm:$0xff] %v3643_v16  ;;  %v1528_v47 = vadd.f32 %v1526_v35, %v1503_v45  ;;  %s2919_s19 = smov 75  }
 0x3de   : > { %v1515_v29 = vpop.permute.xlu1 %1514 }
 0x3df   : > { %v1521_v42 = vsel %vm532_vm2, %v1515_v29, %v1517_v19  ;;  %v3740_v19 = vld [vmem:[#allocation2 + $0x8] sm:$0xf]  ;;  %vm1620_vm2 = vcmask 244736  }
 0x3e0   : > { %v1525_v23 = vmul.f32 %v1521_v42, %v3299_v33 }
 0x3e2   : > { %v2108_v20 = vld.sshfl [vmem:[#allocation1] sm:$0xff pattern:$0x75316420]  ;;  %v3733_v38 = vld.sshfl [vmem:[#allocation1 + $0x8] sm:$0xff pattern:$0x75316420]  ;;  %v1527_v18 = vadd.f32 %v1525_v23, %v1502_v17 }
 0x3e3   : > { %2130 = vst [vmem:[#allocation1] ss:$2 sm:$0xff] %v3296_v32  ;;  %v2135_v15 = vld.sshfl [vmem:[#allocation1 + $0x10] sm:$0xff pattern:$0x75316420] }
 0x3e4   : > { %1772 = vrot.lane.b32.xlu1 %v3563_v53, %s2910_s14  ;;  %2088 = vrot.lane.b32.xlu2 %v2084_v9, %s2919_s19  ;;  %2157 = vst [vmem:[#allocation1 + $0x10] ss:$2 sm:$0xff] %v3643_v16  ;;  %v3751_v53 = vpop.permute.xlu2 %1651  ;;  %v1540_v16 = vpop.permute.xlu0 %1539  ;;  %s2920_s14 = smov 43  }
 0x3e6   : > { %v1569_v43 = vpop.permute.xlu1 %1568 }
 0x3e7   : > { %v1572_v30 = vsel %vm895_vm12, %v1567_v37, %v1569_v43 }
 0x3e8   : > { %v1576_v52 = vmul.f32 %v1572_v30, %v3307_v41 }
 0x3ea   : > { %v3742_v33 = vld.sshfl [vmem:[#allocation1] sm:$0xff pattern:$0x75316420]  ;;  %v3744_v54 = vld.sshfl [vmem:[#allocation1 + $0x8] sm:$0xff pattern:$0x75316420] }
 0x3eb   : > { %2155 = vst [vmem:[#allocation1] ss:$2 sm:$0xff] %v3296_v32  ;;  %v2160_v51 = vld.sshfl [vmem:[#allocation1 + $0x10] sm:$0xff pattern:$0x75316420] }
 0x3ec   : > { %1832 = vrot.lane.b32.xlu1 %v3580_v36, %s2912_s17  ;;  %2086 = vrot.lane.b32.xlu2 %v2083_v25, %s2919_s19  ;;  %2190 = vst [vmem:[#allocation1 + $0x10] ss:$2 sm:$0xff] %v3740_v19  ;;  %v1617_v35 = vpop.permute.xlu2 %1616 }
 0x3ee   : > { %v1542_v56 = vpop.permute.xlu1 %1541 }
 0x3ef   : > { %v1546_v6 = vsel %vm682_vm7, %v1540_v16, %v1542_v56  ;;  %v1547_v11 = vsel %vm682_vm7, %v1542_v56, %v3691_v60  ;;  %vm1595_vm7 = vcmask 375808  }
 0x3f0   : > { %v1550_v34 = vmul.f32 %v1546_v6, %v3252_v61  ;;  %v1551_v13 = vmul.f32 %v1547_v11, %v3252_v61  ;;  %v345_v6 = vadd.s32 4294967295, %v3020_v3 }
 0x3f2   : > { %v3759_v36 = vld.sshfl [vmem:[#allocation1] sm:$0xff pattern:$0x75316420]  ;;  %v3761_v50 = vld.sshfl [vmem:[#allocation1 + $0x8] sm:$0xff pattern:$0x75316420]  ;;  %v1552_v12 = vadd.f32 %v1550_v34, %v1527_v18  ;;  %v1553_v25 = vadd.f32 %v1551_v13, %v1528_v47 }
 0x3f3   : > { %2188 = vst [vmem:[#allocation1] ss:$2 sm:$0xff] %v3296_v32  ;;  %v3765_v9 = vld.sshfl [vmem:[#allocation1 + $0x10] sm:$0xff pattern:$0x75316420]  ;;  %vm347_vm8 = vcmp.ge.s32.totalorder %v345_v6, 0 }
 0x3f4   : > { %1799 = vrot.lane.b32.xlu1 %v3574_v26, %s2909_s8  ;;  %2140 = vrot.lane.b32.xlu2 %v2135_v15, %s2920_s14  ;;  %2215 = vst [vmem:[#allocation1 + $0x10] ss:$2 sm:$0xff] %v3740_v19  ;;  %v1578_v61 = vadd.f32 %v1576_v52, %v1553_v25  ;;  %s2921_s8 = smov 106   ;;  %v3781_v23 = vpop.permute.xlu2 %1701 }
 0x3f6   : > { %v1565_v60 = vpop.permute.xlu1 %1564 }
 0x3f7   : > { %v1571_v17 = vsel %vm895_vm12, %v1565_v60, %v1567_v37 }
 0x3f8   : > { %v1575_v45 = vmul.f32 %v1571_v17, %v3307_v41 }
 0x3fa   : > { %v3773_v1 = vld.sshfl [vmem:[#allocation1] sm:$0xff pattern:$0x75316420]  ;;  %v2192_v47 = vld.sshfl [vmem:[#allocation1 + $0x8] sm:$0xff pattern:$0x75316420]  ;;  %v1577_v29 = vadd.f32 %v1575_v45, %v1552_v12 }
 0x3fb   : > { %2213 = vst [vmem:[#allocation1] ss:$2 sm:$0xff] %v3296_v32  ;;  %v2218_v42 = vld.sshfl [vmem:[#allocation1 + $0x10] sm:$0xff pattern:$0x75316420] }
 0x3fc   : > { %1828 = vrot.lane.b32.xlu1 %v3586_v21, %s2912_s17  ;;  %2223 = vrot.lane.b32.xlu0 %v2218_v42, %s2921_s8  ;;  %2240 = vst [vmem:[#allocation1 + $0x10] ss:$2 sm:$0xff] %v3740_v19  ;;  %s4145_s17 = smov 122   ;;  %v346_v21 = vadd.s32 4294967295, %v3027_v5  ;;  %v1675_v12 = vpop.permute.xlu2 %1674 }
 0x3fd   : > { %2111 = vrot.lane.b32.xlu2 %v2108_v20, %s4142_s15  ;;  %s4143_s15 = smov 27   ;;  %v1590_v20 = vpop.permute.xlu0 %1589 }
 0x3fe   : > { %v1619_v26 = vpop.permute.xlu1 %1618  ;;  %vm348_vm12 = vcmp.ge.s32.totalorder %v346_v21, 0 }
 0x3ff   : > { %v1622_v43 = vsel %vm1620_vm2, %v1617_v35, %v1619_v26  ;;  %v2523_v25 = vsel %vm348_vm12, 1.0, %v4177_v55  ;;  %vm2067_vm12 = vcmask 744448  }
 0x400   : > { %v1626_v13 = vmul.f32 %v1622_v43, %v3310_v49 }
 0x402   : > { %v2216_v41 = vld.sshfl [vmem:[#allocation1] sm:$0xff pattern:$0x75316420]  ;;  %v3783_v18 = vld.sshfl [vmem:[#allocation1 + $0x8] sm:$0xff pattern:$0x75316420] }
 0x403   : > { %2238 = vst [vmem:[#allocation1] ss:$2 sm:$0xff] %v3296_v32  ;;  %v3786_v37 = vld.sshfl [vmem:[#allocation1 + $0x10] sm:$0xff pattern:$0x75316420] }
 0x404   : > { %1882 = vrot.lane.b32.xlu1 %v3601_v46, %s2835_s13  ;;  %2196 = vrot.lane.b32.xlu0 %v2192_v47, %s4145_s17  ;;  %2265 = vst [vmem:[#allocation1 + $0x10] ss:$2 sm:$0xff] %v3740_v19 }
 0x405   : > { %2165 = vrot.lane.b32.xlu2 %v2160_v51, %s4143_s15 }
 0x406   : > { %v1592_v15 = vpop.permute.xlu1 %1591 }
 0x407   : > { %v1596_v16 = vsel %vm1595_vm7, %v1590_v20, %v1592_v15  ;;  %v1597_v56 = vsel %vm1595_vm7, %v1592_v15, %v3723_v44  ;;  %vm2017_vm7 = vcmask 1006592  }
 0x408   : > { %v1600_v46 = vmul.f32 %v1596_v16, %v3255_v63  ;;  %v1601_v30 = vmul.f32 %v1597_v56, %v3255_v63 }
 0x40a   : > { %v2241_v11 = vld.sshfl [vmem:[#allocation1] sm:$0xff pattern:$0x75316420]  ;;  %v3799_v34 = vld.sshfl [vmem:[#allocation1 + $0x8] sm:$0xff pattern:$0x75316420]  ;;  %v1602_v51 = vadd.f32 %v1600_v46, %v1577_v29  ;;  %v1603_v52 = vadd.f32 %v1601_v30, %v1578_v61 }
 0x40b   : > { %2263 = vst [vmem:[#allocation1] ss:$2 sm:$0xff] %v3296_v32  ;;  %v3804_v44 = vld.sshfl [vmem:[#allocation1 + $0x10] sm:$0xff pattern:$0x75316420]  ;;  %v2522_v29 = vsel %vm347_vm8, 1.0, %v4177_v55 }
 0x40c   : > { %v1628_v60 = vadd.f32 %v1626_v13, %v1603_v52  ;;  %1855 = vrot.lane.b32.xlu1 %v3597_v48, %s2911_s9  ;;  %2219 = vrot.lane.b32.xlu0 %v2216_v41, %s2921_s8  ;;  %2290 = vst [vmem:[#allocation1 + $0x10] ss:$2 sm:$0xff] %v3740_v19  ;;  %s4144_s9 = smov 90   ;;  %vm2092_vm8 = vcmask 613376  }
 0x40d   : > { %2136 = vrot.lane.b32.xlu2 %v3742_v33, %s2920_s14 }
 0x40e   : > { %v1630_v63 = vmul.f32 %v2523_v25, %v1628_v60  ;;  %v1615_v61 = vpop.permute.xlu1 %1614 }
 0x40f   : > { %v1621_v17 = vsel %vm1620_vm2, %v1615_v61, %v1617_v35  ;;  %vm2042_vm2 = vcmask 875520  }
 0x410   : > { %v1625_v45 = vmul.f32 %v1621_v17, %v3310_v49  ;;  %v3815_v47 = vadd.f32 %v1630_v63, %v3695_v40  ;;  %v3827_v49 = vpop.permute.xlu2 %1751  ;;  %v4178_v17 = vld [vmem:[#allocation13_spill] sm:$0xff] }
 0x412   : > { %v2266_v48 = vld.sshfl [vmem:[#allocation1] sm:$0xff pattern:$0x75316420]  ;;  %v3818_v42 = vld.sshfl [vmem:[#allocation1 + $0x8] sm:$0xff pattern:$0x75316420]  ;;  %v1627_v26 = vadd.f32 %v1625_v45, %v1602_v51 }
 0x413   : > { %2288 = vst [vmem:[#allocation1] ss:$2 sm:$0xff] %v3296_v32  ;;  %v3821_v41 = vld.sshfl [vmem:[#allocation1 + $0x10] sm:$0xff pattern:$0x75316420] }
 0x414   : > { %v1629_v33 = vmul.f32 %v2522_v29, %v1627_v26  ;;  %1878 = vrot.lane.b32.xlu1 %v3610_v7, %s2835_s13  ;;  %2244 = vrot.lane.b32.xlu0 %v2241_v11, %s4144_s9  ;;  %2315 = vst [vmem:[#allocation1 + $0x10] ss:$2 sm:$0xff] %v3740_v19  ;;  %s2925_s13 = smov 74  }
 0x415   : > { %2161 = vrot.lane.b32.xlu2 %v3759_v36, %s4143_s15  ;;  %s2926_s15 = smov 58  }
 0x416   : > { %v1677_v40 = vpop.permute.xlu1 %1676  ;;  %v3832_v35 = vadd.f32 %v1629_v33, %v3693_v59 }
 0x417   : > { %v1680_v36 = vsel %vm1678_vm9, %v1675_v12, %v1677_v40 }
 0x418   : > { %v1725_v15 = vpop.permute.xlu2 %1724  ;;  %v1684_v16 = vmul.f32 %v1680_v36, %v3313_v57 }
 0x41a   : > { %v2291_v21 = vld.sshfl [vmem:[#allocation1] sm:$0xff pattern:$0x75316420]  ;;  %v3834_v20 = vld.sshfl [vmem:[#allocation1 + $0x8] sm:$0xff pattern:$0x75316420] }
 0x41b   : > { %2313 = vst [vmem:[#allocation1] ss:$2 sm:$0xff] %v3296_v32  ;;  %v2318_v7 = vld.sshfl [vmem:[#allocation1 + $0x10] sm:$0xff pattern:$0x75316420] }
 0x41c   : > { %1932 = vrot.lane.b32.xlu1 %v3622_v22, %s4176_s21  ;;  %2269 = vrot.lane.b32.xlu0 %v2266_v48, %s2925_s13  ;;  %2340 = vst [vmem:[#allocation1 + $0x10] ss:$2 sm:$0xff] %v3740_v19  ;;  %v1648_v19 = vpop.permute.xlu0 %1647 }
 0x41d   : > { %2194 = vrot.lane.b32.xlu2 %v3773_v1, %s4145_s17  ;;  %s2781_s17 = scalar_lea.hbm %s4107_s7, 16 }
 0x41e   : > { %v1650_v59 = vpop.permute.xlu1 %1649 }
 0x41f   : > { %v1655_v43 = vsel %vm1653_vm6, %v1650_v59, %v3751_v53  ;;  %v1654_v53 = vsel %vm1653_vm6, %v1648_v19, %v1650_v59  ;;  %vm2142_vm6 = vcmask 351232  }
 0x420   : > { %v1659_v22 = vmul.f32 %v1655_v43, %v3259_v2  ;;  %v1658_v11 = vmul.f32 %v1654_v53, %v3259_v2 }
 0x422   : > { %v3848_v56 = vld.sshfl [vmem:[#allocation1] sm:$0xff pattern:$0x75316420]  ;;  %v3850_v46 = vld.sshfl [vmem:[#allocation1 + $0x8] sm:$0xff pattern:$0x75316420]  ;;  %v1686_v30 = vadd.f32 %v1684_v16, %v1659_v22 }
 0x423   : > { %2338 = vst [vmem:[#allocation1] ss:$2 sm:$0xff] %v3296_v32  ;;  %v3862_v32 = vpop.permute.xlu2 %1801  ;;  %v2343_v25 = vld.sshfl [vmem:[#allocation1 + $0x10] sm:$0xff pattern:$0x75316420]  ;;  %v4180_v22 = vld [vmem:[#allocation14_spill] sm:$0xff] }
 0x424   : > { %1905 = vrot.lane.b32.xlu1 %v3619_v10, %s2838_s16  ;;  %2294 = vrot.lane.b32.xlu0 %v2291_v21, %s2926_s15  ;;  %s2927_s16 = smov 26  }
 0x425   : > { %2248 = vrot.lane.b32.xlu2 %v3786_v37, %s4144_s9  ;;  %s269_s9 = sand.u32 1, %s2815_s25  }
 0x426   : > { %v1673_v1 = vpop.permute.xlu1 %1672 }
 0x427   : > { %v1679_v6 = vsel %vm1678_vm9, %v1673_v1, %v1675_v12  ;;  %vm2117_vm9 = vcmask 482304  }
 0x428   : > { %v1683_v13 = vmul.f32 %v1679_v6, %v3313_v57  ;;  %v412_v57 = vld [vmem:[%s4104_s4] sm:$0xf] }
 0x42a   : > { %v1685_v51 = vadd.f32 %v1683_v13, %v1658_v11  ;;  %v2342_v52 = vld.sshfl [vmem:[#allocation1 + $0x8] sm:$0xff pattern:$0x75316420]  ;;  %v2341_v10 = vld.sshfl [vmem:[#allocation1] sm:$0xff pattern:$0x75316420] }
 0x42b   : > { %2418 = vst [vmem:[#allocation1] ss:$2 sm:$0xff] %v3025_v4  ;;  %v1775_v37 = vpop.permute.xlu2 %1774  ;;  %v1698_v4 = vpop.permute.xlu0 %1697 }
 0x42c   : > { %1928 = vrot.lane.b32.xlu1 %v3633_v14, %s4176_s21  ;;  %2348 = vrot.lane.b32.xlu0 %v2343_v25, %s2927_s16  ;;  %s2928_s21 = smov 42  }
 0x42d   : > { %2221 = vrot.lane.b32.xlu2 %v3783_v18, %s2921_s8 }
 0x42e   : > { %v1727_v2 = vpop.permute.xlu1 %1726 }
 0x42f   : > { %v1730_v12 = vsel %vm747_vm10, %v1725_v15, %v1727_v2 }
 0x430   : > { %v1734_v45 = vmul.f32 %v1730_v12, %v4178_v17 }
 0x433   : > { %v3886_v48 = vpop.permute.xlu2 %1857 }
 0x434   : > { %1982 = vrot.lane.b32.xlu1 %v3650_v58, %s2915_s23  ;;  %2365 = vperm.xlu0 %2756, %v412_v57   ;;  %v4181_v57 = vld [vmem:[#allocation9_spill] sm:$0xff] }
 0x435   : > { %2273 = vrot.lane.b32.xlu2 %v3804_v44, %s2925_s13 }
 0x436   : > { %v1700_v14 = vpop.permute.xlu1 %1699 }
 0x437   : > { %v1704_v60 = vsel %vm483_vm15, %v1698_v4, %v1700_v14  ;;  %v1705_v18 = vsel %vm483_vm15, %v1700_v14, %v3781_v23  ;;  %vm1778_vm15 = vcmask 367616  }
 0x438   : > { %v1708_v63 = vmul.f32 %v1704_v60, %v3262_v8  ;;  %v1709_v61 = vmul.f32 %v1705_v18, %v3262_v8 }
 0x43a   : > { %v1710_v58 = vadd.f32 %v1708_v63, %v1685_v51  ;;  %v1711_v29 = vadd.f32 %v1709_v61, %v1686_v30 }
 0x43c   : > { %1955 = vrot.lane.b32.xlu1 %v3647_v27, %s2913_s22  ;;  %v1736_v44 = vadd.f32 %v1734_v45, %v1711_v29  ;;  %v1831_v27 = vpop.permute.xlu2 %1830  ;;  %s4182_s22 = smov 59   ;;  %v4183_v29 = vld [vmem:[#allocation15_spill] sm:$0xff] }
 0x43d   : > { %2298 = vrot.lane.b32.xlu2 %v3821_v41, %s2926_s15  ;;  %v1748_v41 = vpop.permute.xlu0 %1747 }
 0x43e   : > { %v1723_v26 = vpop.permute.xlu1 %1722 }
 0x43f   : > { %v1729_v23 = vsel %vm747_vm10, %v1723_v26, %v1725_v15  ;;  %v4179_v15 = vld [vmem:[#allocation8_spill] sm:$0xff]  ;;  %vm1803_vm10 = vcmask 236544   ;;  %v4184_v26 = vld [vmem:[#allocation10_spill] sm:$0xff] }
 0x440   : > { %v1733_v33 = vmul.f32 %v1729_v23, %v4178_v17 }
 0x442   : > { %v1735_v40 = vadd.f32 %v1733_v33, %v1710_v58 }
 0x444   : > { %1978 = vrot.lane.b32.xlu1 %v3663_v24, %s2915_s23  ;;  %v3904_v16 = vpop.permute.xlu2 %1907  ;;  %s4187_s23 = smov 27  }
 0x445   : > { %2323 = vrot.lane.b32.xlu2 %v2318_v7, %s2928_s21 }
 0x446   : > { %v1777_v8 = vpop.permute.xlu1 %1776 }
 0x447   : > { %v1780_v36 = vsel %vm1778_vm15, %v1775_v37, %v1777_v8 }
 0x448   : > { %v1784_v30 = vmul.f32 %v1780_v36, %v4180_v22 }
 0x44c   : > { %2040 = vrot.lane.b32.xlu1 %v3683_v62, %s2916_s18  ;;  %v1881_v13 = vpop.permute.xlu2 %1880  ;;  %s4188_s18 = smov 90  }
 0x44d   : > { %2346 = vrot.lane.b32.xlu2 %v2342_v52, %s2927_s16 }
 0x44e   : > { %v1750_v21 = vpop.permute.xlu1 %1749 }
 0x44f   : > { %v1754_v59 = vsel %vm960_vm13, %v1748_v41, %v1750_v21  ;;  %v1755_v24 = vsel %vm960_vm13, %v1750_v21, %v3827_v49  ;;  %vm1834_vm13 = vcmask 1014784  }
 0x450   : > { %v1758_v43 = vmul.f32 %v1754_v59, %v4179_v15  ;;  %v1759_v7 = vmul.f32 %v1755_v24, %v4179_v15 }
 0x452   : > { %v1760_v62 = vadd.f32 %v1758_v43, %v1735_v40  ;;  %v1761_v19 = vadd.f32 %v1759_v7, %v1736_v44  ;;  %v4185_v40 = vld [vmem:[#allocation16_spill] sm:$0xff] }
 0x454   : > { %2013 = vrot.lane.b32.xlu1 %v3679_v31, %s2914_s20  ;;  %v1786_v53 = vadd.f32 %v1784_v30, %v1761_v19  ;;  %v3916_v52 = vpop.permute.xlu2 %1957  ;;  %v1798_v31 = vpop.permute.xlu0 %1797  ;;  %s4186_s20 = smov 122  }
 0x455   : > { %2344 = vrot.lane.b32.xlu2 %v2341_v10, %s2927_s16  ;;  %s2564_s16 = sshll.u32 %s2991_s28, 3  ;;  %s2432_s28 = scalar_lea.sflag [#allocation4], %s269_s9 }
 0x456   : > { %v1773_v1 = vpop.permute.xlu1 %1772 }
 0x457   : > { %v1779_v6 = vsel %vm1778_vm15, %v1773_v1, %v1775_v37  ;;  %vm2167_vm15 = vcmask 220160  }
 0x458   : > { %v1783_v49 = vmul.f32 %v1779_v6, %v4180_v22  ;;  %v4190_v6 = vld [vmem:[#allocation19_spill] sm:$0xff] }
 0x45a   : > { %v1785_v11 = vadd.f32 %v1783_v49, %v1760_v62 }
 0x45c   : > { %2090 = vrot.lane.b32.xlu1 %v3708_v0, %s2919_s19  ;;  %v1931_v18 = vpop.permute.xlu2 %1930 }
 0x45e   : > { %v1833_v51 = vpop.permute.xlu1 %1832 }
 0x464   : > { %2063 = vrot.lane.b32.xlu1 %v3705_v39, %s2917_s29  ;;  %v3931_v63 = vpop.permute.xlu2 %2015 }
 0x466   : > { %v1800_v25 = vpop.permute.xlu1 %1799 }
 0x467   : > { %v1804_v10 = vsel %vm1803_vm10, %v1798_v31, %v1800_v25  ;;  %v1805_v2 = vsel %vm1803_vm10, %v1800_v25, %v3862_v32 }
 0x468   : > { %v1808_v37 = vmul.f32 %v1804_v10, %v4181_v57  ;;  %v1809_v4 = vmul.f32 %v1805_v2, %v4181_v57 }
 0x46a   : > { %v1810_v14 = vadd.f32 %v1808_v37, %v1785_v11  ;;  %v1811_v12 = vadd.f32 %v1809_v4, %v1786_v53  ;;  %v4189_v53 = vld [vmem:[#allocation11_spill] sm:$0xff] }
 0x46c   : > { %v3922_v0 = vadd.f32 %v1810_v14, %v3832_v35  ;;  %v3925_v60 = vadd.f32 %v1811_v12, %v3815_v47  ;;  %2061 = vrot.lane.b32.xlu1 %v3703_v28, %s2917_s29  ;;  %v1836_v35 = vsel %vm1834_vm13, %v1831_v27, %v1833_v51  ;;  %v1854_v47 = vpop.permute.xlu0 %1853  ;;  %v2929_v51 = vmov 48  }
 0x46d   : > { %v1840_v44 = vmul.f32 %v1836_v35, %v4183_v29  ;;  %2758 = vset.pattern.permute.xlu1 %v2929_v51 }
 0x46e   : > { %v1829_v39 = vpop.permute.xlu1 %1828 }
 0x46f   : > { %v1835_v61 = vsel %vm1834_vm13, %v1829_v39, %v1831_v27  ;;  %v1981_v27 = vpop.permute.xlu2 %1980 }
 0x474   : > { %2113 = vrot.lane.b32.xlu1 %v3733_v38, %s4182_s22  ;;  %v1839_v38 = vmul.f32 %v1835_v61, %v4183_v29  ;;  %v1904_v22 = vpop.permute.xlu0 %1903  ;;  %v4192_v61 = vld [vmem:[#allocation22_spill] sm:$0xff] }
 0x476   : > { %v1883_v32 = vpop.permute.xlu1 %1882 }
 0x477   : > { %v1886_v45 = vsel %vm608_vm4, %v1881_v13, %v1883_v32  ;;  %v3948_v15 = vpop.permute.xlu2 %2065  ;;  %v4191_v32 = vld [vmem:[#allocation12_spill] sm:$0xff] }
 0x47c   : > { %2138 = vrot.lane.b32.xlu1 %v3744_v54, %s2920_s14  ;;  %v1890_v54 = vmul.f32 %v1886_v45, %v4185_v40  ;;  %v1954_v4 = vpop.permute.xlu0 %1953 }
 0x47e   : > { %v1856_v17 = vpop.permute.xlu1 %1855 }
 0x47f   : > { %v1860_v28 = vsel %vm1859_vm3, %v1854_v47, %v1856_v17  ;;  %v1861_v58 = vsel %vm1859_vm3, %v1856_v17, %v3886_v48  ;;  %v3952_v7 = vpop.permute.xlu2 %2115  ;;  %vm2225_vm3 = vcmask 867328  }
 0x480   : > { %v1864_v23 = vmul.f32 %v1860_v28, %v4184_v26  ;;  %v1865_v33 = vmul.f32 %v1861_v58, %v4184_v26 }
 0x482   : > { %v1866_v8 = vadd.f32 %v1864_v23, %v1839_v38  ;;  %v1867_v41 = vadd.f32 %v1865_v33, %v1840_v44 }
 0x484   : > { %2198 = vrot.lane.b32.xlu1 %v3765_v9, %s4186_s20  ;;  %v1892_v21 = vadd.f32 %v1890_v54, %v1867_v41  ;;  %v2760_v41 = vld [vmem:[%s4103_s3] sm:$0xf]  ;;  %s2443_s20 = scalar_lea.hbm %s4107_s7, %s2564_s16 }
 0x485   : > { %s2447_s29 = sshll.u32 %s2443_s20, 4  ;;  %s2448_s29 = int_to_ptr.hbm [resolvable:$true] %s2447_s29 }
 0x486   : > { %v1879_v36 = vpop.permute.xlu1 %1878 }
 0x487   : > { %v1885_v48 = vsel %vm608_vm4, %v1879_v36, %v1881_v13  ;;  %v3963_v25 = vpop.permute.xlu2 %2088  ;;  %vm1984_vm4 = vcmask 228352  }
 0x488   : > { %v1889_v59 = vmul.f32 %v1885_v48, %v4185_v40  ;;  %v2012_v40 = vpop.permute.xlu0 %2011 }
 0x48a   : > { %v1891_v24 = vadd.f32 %v1889_v59, %v1866_v8 }
 0x48c   : > { %2163 = vrot.lane.b32.xlu1 %v3761_v50, %s4187_s23 }
 0x48e   : > { %v1933_v43 = vpop.permute.xlu1 %1932 }
 0x48f   : > { %v1936_v30 = vsel %vm1034_vm14, %v1931_v18, %v1933_v43  ;;  %v3969_v37 = vpop.permute.xlu2 %2086 }
 0x490   : > { %v1940_v49 = vmul.f32 %v1936_v30, %v4190_v6  ;;  %v2039_v36 = vpop.permute.xlu0 %2038  ;;  %v4195_v30 = vld [vmem:[#allocation18_spill] sm:$0xff] }
 0x494   : > { %2246 = vrot.lane.b32.xlu1 %v3799_v34, %s4188_s18 }
 0x496   : > { %v1906_v9 = vpop.permute.xlu1 %1905 }
 0x497   : > { %v1910_v62 = vsel %vm821_vm11, %v1904_v22, %v1906_v9  ;;  %v1911_v19 = vsel %vm821_vm11, %v1906_v9, %v3904_v16  ;;  %vm1959_vm11 = vcmask 359424   ;;  %v3980_v28 = vpop.permute.xlu2 %2140  ;;  %v4194_v22 = vld [vmem:[#allocation21_spill] sm:$0xff] }
 0x498   : > { %v1914_v1 = vmul.f32 %v1910_v62, %v4189_v53  ;;  %v1915_v50 = vmul.f32 %v1911_v19, %v4189_v53 }
 0x49a   : > { %v1916_v11 = vadd.f32 %v1914_v1, %v1891_v24  ;;  %v1917_v13 = vadd.f32 %v1915_v50, %v1892_v21 }
 0x49c   : > { %2271 = vrot.lane.b32.xlu1 %v3818_v42, %s2925_s13  ;;  %v1942_v34 = vadd.f32 %v1940_v49, %v1917_v13  ;;  %v358_v42 = vadd.s32 1, %v3027_v5  ;;  %v2037_v49 = vpop.permute.xlu0 %2036  ;;  %s2511_s13 = sshll.u32 %s269_s9, 3 }
 0x49d   : > { %s271_s23 = scalar_lea.vmem [#allocation3], %s2511_s13 }
 0x49e   : > { %v1929_v31 = vpop.permute.xlu1 %1928  ;;  %s2445_s18 = sshll.u32 %s271_s23, 4  ;;  %s2446_s18 = int_to_ptr.vmem [resolvable:$true] %s2445_s18 }
 0x49f   : > { %v1935_v10 = vsel %vm1034_vm14, %v1929_v31, %v1931_v18  ;;  %vm362_vm14 = vcmp.le.s32.totalorder %v358_v42, 15 }
 0x4a0   : > { %v1939_v16 = vmul.f32 %v1935_v10, %v4190_v6  ;;  %v2525_v58 = vsel %vm362_vm14, 1.0, %v4177_v55  ;;  %v2043_v10 = vsel %vm2042_vm2, %v2037_v49, %v2039_v36  ;;  %vm2275_vm14 = vcmask 605184  }
 0x4a1   : > { %v2047_v42 = vmul.f32 %v2043_v10, %v4194_v22 }
 0x4a2   : > { %v1941_v2 = vadd.f32 %v1939_v16, %v1916_v11  ;;  %v4196_v11 = vld [vmem:[#allocation17_spill] sm:$0xff] }
 0x4a4   : > { %2296 = vrot.lane.b32.xlu1 %v3834_v20, %s2926_s15  ;;  %s2775_s15 = sshra.s32 %s2448_s29, 4  ;;  %s2776_s15 = int_to_ptr.hbm [resolvable:$true] %s2775_s15 }
 0x4a5   : > { %s2777_s19 = scalar_lea.hbm %s2776_s15, 8  ;;  %p2782_p0 = scmp.lt.s32.totalorder %s2776_s15, %s4107_s7 }
 0x4a6   : > { %v1983_v57 = vpop.permute.xlu1 %1982  ;;  %p2778_p11 = scmp.ne.s32.totalorder %s2776_s15, %s2777_s19  ;;  %p2783_p1 = scmp.lt.s32.totalorder %s2781_s17, %s2777_s19 }
 0x4a7   : > { %v1986_v12 = vsel %vm1984_vm4, %v1981_v27, %v1983_v57 }
 0x4a8   : > { %v1990_v47 = vmul.f32 %v1986_v12, %v4192_v61  ;;  %p2779_p12 = pnand %p2778_p11, %p3008_p5  ;;  %p2784_p2 = por %p2783_p1, %p2782_p0 }
 0x4aa   : > { %p2780_p13 = pneg %p2779_p12 }
 0x4ac   : > { %2321 = vrot.lane.b32.xlu1 %v3850_v46, %s2928_s21  ;;  %v357_v46 = vadd.s32 1, %v3020_v3  ;;  %p2785_p3 = pnand %p2784_p2, %p2780_p13 }
 0x4ae   : > { %v1956_v14 = vpop.permute.xlu1 %1955  ;;  %vm361_vm5 = vcmp.le.s32.totalorder %v357_v46, 15 }
 0x4af   : > { %v1960_v39 = vsel %vm1959_vm11, %v1954_v4, %v1956_v14  ;;  %v1961_v18 = vsel %vm1959_vm11, %v1956_v14, %v3916_v52  ;;  %v2524_v33 = vsel %vm361_vm5, 1.0, %v4177_v55  ;;  %vm2250_vm11 = vcmask 736256  }
 0x4b0   : > { %v1964_v20 = vmul.f32 %v1960_v39, %v4191_v32  ;;  %v1965_v35 = vmul.f32 %v1961_v18, %v4191_v32  ;;  %vm2300_vm5 = vcmask 474112  }
 0x4b2   : > { %v1966_v17 = vadd.f32 %v1964_v20, %v1941_v2  ;;  %v1967_v45 = vadd.f32 %v1965_v35, %v1942_v34  ;;  %v4197_v34 = vld [vmem:[#allocation27_spill] sm:$0xff] }
 0x4b4   : > { %v1992_v29 = vadd.f32 %v1990_v47, %v1967_v45  ;;  %2319 = vrot.lane.b32.xlu1 %v3848_v56, %s2928_s21  ;;  %v2112_v56 = vpop.permute.xlu2 %2111  ;;  %v4198_v45 = vld [vmem:[#allocation29_spill] sm:$0xff] }
 0x4b6   : > { %v1994_v52 = vmul.f32 %v2525_v58, %v1992_v29  ;;  %v1979_v44 = vpop.permute.xlu1 %1978 }
 0x4b7   : > { %v1985_v38 = vsel %vm1984_vm4, %v1979_v44, %v1981_v27  ;;  %vm2200_vm4 = vcmask 998400  }
 0x4b8   : > { %v1989_v26 = vmul.f32 %v1985_v38, %v4192_v61  ;;  %v3988_v23 = vadd.f32 %v1994_v52, %v3925_v60  ;;  %v4193_v60 = vmov 0   ;;  %v2224_v38 = vpop.permute.xlu0 %2223 }
 0x4ba   : > { %v1991_v54 = vadd.f32 %v1989_v26, %v1966_v17  ;;  %v4199_v26 = vld [vmem:[#allocation30_spill] sm:$0xff] }
 0x4bc   : > { %v1993_v8 = vmul.f32 %v2524_v33, %v1991_v54  ;;  %2335 = vperm.xlu1 %2758, %v2760_v41   ;;  %v2166_v24 = vpop.permute.xlu2 %2165 }
 0x4be   : > { %v3995_v21 = vadd.f32 %v1993_v8, %v3922_v0  ;;  %v2041_v27 = vpop.permute.xlu1 %2040 }
 0x4bf   : > { %v2044_v48 = vsel %vm2042_vm2, %v2039_v36, %v2041_v27  ;;  %v370_v27 = vadd.s32 2, %v3027_v5  ;;  %vm2325_vm2 = vcmask 343040  }
 0x4c0   : > { %v2048_v9 = vmul.f32 %v2044_v48, %v4194_v22  ;;  %v4200_v22 = vld [vmem:[#allocation31_spill] sm:$0xff] }
 0x4c1   : > { %vm374_vm13 = vcmp.le.s32.totalorder %v370_v27, 15 }
 0x4c4   : > { %2759 = vset.pattern.permute.xlu1 %v4193_v60  ;;  %v2137_v53 = vpop.permute.xlu2 %2136 }
 0x4c6   : > { %v2014_v59 = vpop.permute.xlu1 %2013 }
 0x4c7   : > { %v2019_v43 = vsel %vm2017_vm7, %v2014_v59, %v3931_v63  ;;  %v2018_v63 = vsel %vm2017_vm7, %v2012_v40, %v2014_v59  ;;  %vm2350_vm7 = vcmask 211968  }
 0x4c8   : > { %v2023_v62 = vmul.f32 %v2019_v43, %v4195_v30  ;;  %v2022_v2 = vmul.f32 %v2018_v63, %v4195_v30 }
 0x4ca   : > { %v2050_v19 = vadd.f32 %v2048_v9, %v2023_v62  ;;  %v2049_v12 = vadd.f32 %v2047_v42, %v2022_v2  ;;  %v2527_v62 = vsel %vm374_vm13, 1.0, %v4177_v55 }
 0x4cc   : > { %v2162_v16 = vpop.permute.xlu2 %2161 }
 0x4ce   : > { %v2091_v0 = vpop.permute.xlu1 %2090 }
 0x4cf   : > { %v2094_v50 = vsel %vm2092_vm8, %v3963_v25, %v2091_v0 }
 0x4d0   : > { %v2098_v51 = vmul.f32 %v2094_v50, %v4197_v34 }
 0x4d4   : > { %v2195_v35 = vpop.permute.xlu2 %2194 }
 0x4d6   : > { %v2064_v1 = vpop.permute.xlu1 %2063 }
 0x4d7   : > { %v2069_v6 = vsel %vm2067_vm12, %v2064_v1, %v3948_v15  ;;  %v2093_v15 = vsel %vm2092_vm8, %v3969_v37, %v3963_v25 }
 0x4d8   : > { %v2073_v13 = vmul.f32 %v2069_v6, %v4196_v11  ;;  %v2097_v18 = vmul.f32 %v2093_v15, %v4197_v34 }
 0x4da   : > { %v2075_v31 = vadd.f32 %v2073_v13, %v2050_v19 }
 0x4dc   : > { %v2100_v57 = vadd.f32 %v2098_v51, %v2075_v31  ;;  %v2249_v52 = vpop.permute.xlu2 %2248 }
 0x4de   : > { %v2062_v4 = vpop.permute.xlu1 %2061 }
 0x4df   : > { %v2068_v14 = vsel %vm2067_vm12, %v2062_v4, %v2064_v1 }
 0x4e0   : > { %v2072_v39 = vmul.f32 %v2068_v14, %v4196_v11 }
 0x4e2   : > { %v2074_v32 = vadd.f32 %v2072_v39, %v2049_v12 }
 0x4e4   : > { %v2099_v20 = vadd.f32 %v2097_v18, %v2074_v32  ;;  %v2222_v8 = vpop.permute.xlu2 %2221  ;;  %v4202_v18 = vld [vmem:[#allocation24_spill] sm:$0xff] }
 0x4e5   : > { %v2227_v4 = vsel %vm2225_vm3, %v2222_v8, %v2224_v38  ;;  %v4204_v38 = vld [vmem:[#allocation23_spill] sm:$0xff] }
 0x4e6   : > { %v2114_v61 = vpop.permute.xlu1 %2113 }
 0x4e7   : > { %v2118_v47 = vsel %vm2117_vm9, %v2112_v56, %v2114_v61  ;;  %v2119_v17 = vsel %vm2117_vm9, %v2114_v61, %v3952_v7  ;;  %v2197_v56 = vpop.permute.xlu0 %2196  ;;  %v369_v7 = vadd.s32 2, %v3020_v3 }
 0x4e8   : > { %v2122_v46 = vmul.f32 %v2118_v47, %v4198_v45  ;;  %v2123_v58 = vmul.f32 %v2119_v17, %v4198_v45  ;;  %v2201_v42 = vsel %vm2200_vm4, %v2195_v35, %v2197_v56  ;;  %v414_v47 = vld [vmem:[%s4106_s6] sm:$0xf]  ;;  %v4203_v35 = vld [vmem:[#allocation20_spill] sm:$0xff] }
 0x4e9   : > { %vm373_vm10 = vcmp.le.s32.totalorder %v369_v7, 15  ;;  %2378 = vperm.xlu1 %2759, %v414_v47  }
 0x4ea   : > { %v2124_v25 = vadd.f32 %v2122_v46, %v2099_v20  ;;  %v2125_v37 = vadd.f32 %v2123_v58, %v2100_v57  ;;  %v2205_v20 = vmul.f32 %v2201_v42, %v4202_v18 }
 0x4ee   : > { %v2139_v29 = vpop.permute.xlu1 %2138 }
 0x4ef   : > { %v2143_v44 = vsel %vm2142_vm6, %v2137_v53, %v2139_v29  ;;  %v2144_v41 = vsel %vm2142_vm6, %v2139_v29, %v3980_v28  ;;  %v2526_v28 = vsel %vm373_vm10, 1.0, %v4177_v55  ;;  %v2274_v53 = vpop.permute.xlu2 %2273  ;;  %v2220_v1 = vpop.permute.xlu0 %2219 }
 0x4f0   : > { %v2147_v33 = vmul.f32 %v2143_v44, %v4199_v26  ;;  %v2148_v36 = vmul.f32 %v2144_v41, %v4199_v26  ;;  %v2226_v2 = vsel %vm2225_vm3, %v2220_v1, %v2222_v8 }
 0x4f2   : > { %v2149_v40 = vadd.f32 %v2147_v33, %v2124_v25  ;;  %v2150_v43 = vadd.f32 %v2148_v36, %v2125_v37  ;;  %v381_v36 = vadd.s32 3, %v3020_v3 }
 0x4f4   : > { %vm385_vm12 = vcmp.le.s32.totalorder %v381_v36, 15 }
 0x4f6   : > { %v2199_v54 = vpop.permute.xlu1 %2198 }
 0x4f7   : > { %v2299_v13 = vpop.permute.xlu2 %2298  ;;  %v2245_v63 = vpop.permute.xlu0 %2244  ;;  %v2202_v57 = vsel %vm2200_vm4, %v2197_v56, %v2199_v54  ;;  %v4205_v56 = vld [vmem:[#allocation26_spill] sm:$0xff] }
 0x4f8   : > { %v2206_v32 = vmul.f32 %v2202_v57, %v4202_v18 }
 0x4fe   : > { %v2164_v60 = vpop.permute.xlu1 %2163 }
 0x4ff   : > { %v2168_v48 = vsel %vm2167_vm15, %v2162_v16, %v2164_v60  ;;  %v2169_v59 = vsel %vm2167_vm15, %v2164_v60, %v2166_v24  ;;  %v2324_v31 = vpop.permute.xlu2 %2323  ;;  %v2270_v10 = vpop.permute.xlu0 %2269  ;;  %v382_v60 = vadd.s32 3, %v3027_v5 }
 0x500   : > { %v2172_v9 = vmul.f32 %v2168_v48, %v4200_v22  ;;  %v2173_v30 = vmul.f32 %v2169_v59, %v4200_v22  ;;  %v4206_v22 = vld [vmem:[#allocation28_spill] sm:$0xff] }
 0x501   : > { %vm386_vm8 = vcmp.le.s32.totalorder %v382_v60, 15 }
 0x502   : > { %v2174_v19 = vadd.f32 %v2172_v9, %v2149_v40  ;;  %v2175_v0 = vadd.f32 %v2173_v30, %v2150_v43 }
 0x504   : > { %v2176_v50 = vmul.f32 %v2526_v28, %v2174_v19  ;;  %v2177_v6 = vmul.f32 %v2527_v62, %v2175_v0 }
 0x506   : > { %v4030_v49 = vadd.f32 %v2176_v50, %v3995_v21  ;;  %v4033_v24 = vadd.f32 %v2177_v6, %v3988_v23  ;;  %v2247_v11 = vpop.permute.xlu1 %2246  ;;  %v4201_v23 = vld [vmem:[#allocation25_spill] sm:$0xff] }
 0x507   : > { %v2347_v21 = vpop.permute.xlu2 %2346  ;;  %v2251_v15 = vsel %vm2250_vm11, %v2245_v63, %v2247_v11  ;;  %v2252_v14 = vsel %vm2250_vm11, %v2247_v11, %v2249_v52  ;;  %v2230_v12 = vmul.f32 %v2226_v2, %v4201_v23  ;;  %v2295_v39 = vpop.permute.xlu0 %2294  ;;  %v2231_v61 = vmul.f32 %v2227_v4, %v4201_v23 }
 0x508   : > { %v2255_v17 = vmul.f32 %v2251_v15, %v4203_v35  ;;  %v2256_v45 = vmul.f32 %v2252_v14, %v4203_v35  ;;  %v2528_v11 = vsel %vm385_vm12, 1.0, %v4177_v55  ;;  %v4207_v15 = vld [vmem:[#allocation6_spill] sm:$0xff] }
 0x509   : > { %v2232_v25 = vadd.f32 %v2230_v12, %v2205_v20  ;;  %v2233_v37 = vadd.f32 %v2231_v61, %v2206_v32  ;;  %v4208_v14 = vmax.f32 %v4207_v15, 0.0  ;;  %v4209_v12 = vld [vmem:[#allocation7_spill] sm:$0xff] }
 0x50b   : > { %v2257_v40 = vadd.f32 %v2255_v17, %v2232_v25  ;;  %v2258_v54 = vadd.f32 %v2256_v45, %v2233_v37  ;;  %v2419_v37 = vld.sshfl [vmem:[#allocation1] sm:$0xff pattern:$0x75316420] }
 0x50e   : > { %v2272_v34 = vpop.permute.xlu1 %2271 }
 0x50f   : > { %v2276_v46 = vsel %vm2275_vm14, %v2270_v10, %v2272_v34  ;;  %v2277_v58 = vsel %vm2275_vm14, %v2272_v34, %v2274_v53  ;;  %v2345_v48 = vpop.permute.xlu2 %2344  ;;  %v2349_v28 = vpop.permute.xlu0 %2348 }
 0x510   : > { %v2280_v26 = vmul.f32 %v2276_v46, %v4204_v38  ;;  %v2281_v33 = vmul.f32 %v2277_v58, %v4204_v38  ;;  %v2352_v0 = vsel %vm2350_vm7, %v2347_v21, %v2349_v28  ;;  %v2351_v53 = vsel %vm2350_vm7, %v2345_v48, %v2347_v21  ;;  %v2420_v46 = vld.sshfl [vmem:[#allocation1 + $0x8] sm:$0xff pattern:$0x75316420] }
 0x512   : > { %v2282_v59 = vadd.f32 %v2280_v26, %v2257_v40  ;;  %v2283_v43 = vadd.f32 %v2281_v33, %v2258_v54 }
 0x516   : > { %v2297_v51 = vpop.permute.xlu1 %2296 }
 0x517   : > { %v2301_v29 = vsel %vm2300_vm5, %v2295_v39, %v2297_v51  ;;  %v2302_v52 = vsel %vm2300_vm5, %v2297_v51, %v2299_v13  ;;  %v2529_v13 = vsel %vm386_vm8, 1.0, %v4177_v55  ;;  %v2366_v2 = vpop.permute.xlu0 %2365  ;;  %v4210_v55 = vmax.f32 %v4209_v12, 0.0 }
 0x518   : > { %v2305_v7 = vmul.f32 %v2301_v29, %v4205_v56  ;;  %v2306_v27 = vmul.f32 %v2302_v52, %v4205_v56 }
 0x51a   : > { %v2307_v62 = vadd.f32 %v2305_v7, %v2282_v59  ;;  %v2308_v19 = vadd.f32 %v2306_v27, %v2283_v43 }
 0x51e   : > { %v2322_v16 = vpop.permute.xlu1 %2321 }
 0x51f   : > { %v2327_v8 = vsel %vm2325_vm2, %v2322_v16, %v2324_v31 }
 0x520   : > { %v2331_v9 = vmul.f32 %v2327_v8, %v4206_v22 }
 0x522   : > { %v2333_v50 = vadd.f32 %v2331_v9, %v2308_v19 }
 0x526   : > { %v2320_v44 = vpop.permute.xlu1 %2319 }
 0x527   : > { %v2326_v41 = vsel %vm2325_vm2, %v2320_v44, %v2322_v16 }
 0x528   : > { %v2330_v30 = vmul.f32 %v2326_v41, %v4206_v22 }
 0x52a   : > { %v2332_v3 = vadd.f32 %v2330_v30, %v2307_v62 }
 0x52e   : > { %v2336_v1 = vpop.permute.xlu1 %2335 }
 0x52f   : > { %v2355_v6 = vmul.f32 %v2351_v53, %v2336_v1  ;;  %v2356_v5 = vmul.f32 %v2352_v0, %v2336_v1 }
 0x531   : > { %v2357_v63 = vadd.f32 %v2355_v6, %v2332_v3  ;;  %v2358_v34 = vadd.f32 %v2356_v5, %v2333_v50 }
 0x533   : > { %v2359_v51 = vmul.f32 %v2528_v11, %v2357_v63  ;;  %v2360_v31 = vmul.f32 %v2529_v13, %v2358_v34 }
 0x535   : > { %v2361_v10 = vadd.f32 %v2359_v51, %v4030_v49  ;;  %v2362_v16 = vadd.f32 %v2360_v31, %v4033_v24  ;;  %v413_v24 = vld [vmem:[%s4105_s5] sm:$0x3] }
 0x537   : > { %v2368_v57 = vadd.f32 %v2366_v2, %v2361_v10  ;;  %v2369_v42 = vadd.f32 %v2366_v2, %v2362_v16 }
 0x539   : > { %v2370_v4 = vmax.f32 %v2368_v57, 0.0  ;;  %v2371_v21 = vmax.f32 %v2369_v42, 0.0 }
 0x53b   : > { %v2372_v23 = vadd.f32 %v2370_v4, %v4208_v14  ;;  %v2373_v39 = vadd.f32 %v2371_v21, %v4210_v55 }
 0x53d   : > { %v2374_v18 = vpack.c.bf16 %v2372_v23, %v2372_v23  ;;  %v2375_v32 = vpack.c.bf16 %v2373_v39, %v2373_v39 }
 0x53f   : > { %v2385_v20 = vsel %vm490_vm0, %v2374_v18, 0  ;;  %v2388_v49 = vsel %vm490_vm0, %v2375_v32, 0  ;;  %vm4211_vm0 = vcmask 1043456  }
 0x540   : > { %2397 = vmatpush.bf16.msra.mxu2 %v2385_v20  ;;  %2410 = vmatpush.bf16.msra.mxu3 %v2388_v49 }
 0x543   : > { %2557 = vmatmul.msk.bf16.vlgmr.msra.gmra.mxu3 %vm486_vm1, %v413_v24  ;;  %2556 = vmatmul.msk.bf16.vlgmr.msra.gmra.mxu2 %vm486_vm1, %v413_v24 }
 0x55b   : > { %v2379_v61 = vpop.permute.xlu1 %2378 }
 0x5c6   : > { %v2412_v47 = vpop.f32.mrf.mxu3  ;;  %v2399_v35 = vpop.f32.mrf.mxu2 }
 0x5c7   : > { %v2400_v17 = vadd.f32 %v2399_v35, %v2379_v61  ;;  %v2413_v45 = vadd.f32 %v2412_v47, %v2379_v61 }
 0x5c9   : > { %v2416_v58 = vmax.f32 %v2400_v17, 0.0  ;;  %v2417_v25 = vmax.f32 %v2413_v45, 0.0 }
 0x5cb   : > { %v2424_v29 = vadd.f32 %v2420_v46, %v2417_v25  ;;  %v2423_v52 = vadd.f32 %v2419_v37, %v2416_v58 }
 0x5cd   : > { %v2427_v44 = vrot.slane %v2424_v29, 4 }
 0x5ce   : > { %v2414_v38 = vpop.f32.mrf.mxu3  ;;  %v2401_v26 = vpop.f32.mrf.mxu2 }
 0x5cf   : > { %v2428_v33 = vsel %vm4211_vm0, %v2423_v52, %v2427_v44 }
 0x5d0   : > { %2430 = vst [vmem:[%s271_s23] sm:$0xff] %v2428_v33 }
 0x5d1   : > { %2788 = shalt.err (!%p2785_p3)
}
 0x5d2   : > { %2565 = dma.vmem_to_hbm [thread:$0]  (%p3008_p5), %s2446_s18, 128, %s2448_s29, %s2432_s28  }
 0x5d3 PF: > { %p2571_p4 = scmp.ge.s32.totalorder %s2823_s27, 2  ;;  %s2459_s9 = sand.u32 1, %s2811_s24  }
 0x5d4   : > { %s2460_s21 = scalar_lea.sflag [#allocation4], %s2459_s9 }
 0x5d5   : > { %p2568_p7 = pnand %p2571_p4, %p3012_p6 }
 0x5d7   : > { %p2569_p8 = pneg %p2568_p7 }
 0x5d9   : > { %2806 = dma.done.wait (%p2569_p8), %s2460_s21, 128  }
 0x5da   : > { %2808 = vsyncadd (%p2569_p8), %s2460_s21, 4294967168  ;;  %p17_p9 = scmp.ge.s32.totalorder %s2995_s30, 4   ;;  %s4212_s24 = smov %s2815_s25 }
 0x5db   : > { %s4213_s25 = smov %s2819_s26  ;;  %s4214_s26 = smov %s3006_s10 }
 0x5dc   : > { %s4215_s27 = smov %s2995_s30  ;;  %19 = sbr.rel (!%p17_p9) target bundleno = 3 (0x3), region = 148 }
 0x5e1   :  { %2466 = vsyncpa [#allocation4], 1 }
 0x5e2   :  { %2468 = vsyncpa [#allocation4 + $0x1], 1 }

</bundles_post_ra>
